<compile_context>
chip_gen: v7x
topology: tpu7x:2x2x1
jax: 0.10.0
libtpu: 0.0.40
codegen_flags: <defaults>
</compile_context>

<pallas_src>
import functools
import math

import jax
import jax.numpy as jnp
import numpy as np
from jax.experimental import pallas as pl
from jax.experimental.pallas import tpu as pltpu

_TAPS = tuple((di, dj) for di in range(3) for dj in range(3))


# ----------------------------------------------------------------------------
# In-kernel helpers
# ----------------------------------------------------------------------------
def _pool2x2(y, b, h, w, c):
    """2x2 max-pool on a row-major [b*h*w, c] f32 matrix -> [b, h//2, w//2, c].

    Pure pairwise VPU maxima (no XLU reduction)."""
    ho, wo = h // 2, w // 2
    yw = y.reshape(b * h * wo, 2, c)
    yw = jnp.maximum(yw[:, 0, :], yw[:, 1, :])          # pool along W
    yh = yw.reshape(b * ho, 2, wo, c)
    yh = jnp.maximum(yh[:, 0, :, :], yh[:, 1, :, :])    # pool along H
    return yh.reshape(b, ho, wo, c)


def _conv3x3_from_padded(s_ref, w_ref, b_ref, *, b, h, w, cin, cout):
    """3x3 'same' conv as 9 accumulated bf16 sub-GEMMs (f32 accumulation).

    s_ref: [b, h+2, w+2, cin] f32 zero-padded activation scratch (read only here)
    w_ref: [9*cin, cout] bf16 (BN scale folded)
    b_ref: [1, cout]     f32
    returns relu(conv + bias) as f32 [b*h*w, cout]."""
    m = b * h * w
    acc = jnp.zeros((m, cout), jnp.float32)
    for t, (di, dj) in enumerate(_TAPS):
        a = s_ref[:, di:di + h, dj:dj + w, :].reshape(m, cin).astype(jnp.bfloat16)
        acc = acc + jnp.dot(a, w_ref[t * cin:(t + 1) * cin, :],
                            preferred_element_type=jnp.float32)
    return jnp.maximum(acc + b_ref[...], 0.0)


# ----------------------------------------------------------------------------
# Fused kernel: enc1 -> enc2 -> enc3 -> conv, all in VMEM
# ----------------------------------------------------------------------------
def _prompt_encoder_kernel(p1_ref, w1_ref, b1_ref, w2_ref, b2_ref,
                           w3_ref, b3_ref, w4_ref, b4_ref,
                           o_ref, s1_ref, s2_ref, s3_ref, *, b):
    # p1_ref: [b*256, 9]   bf16  stage-1 im2col patch (built in wrapper)
    # w*_ref: [9*cin,cout] bf16  BN-scale-folded conv weights
    # b*_ref: [1, cout]    f32   folded biases
    # o_ref : [b*4, 512]   f32   lane-dense output slab
    # s*_ref: zero-padded f32 VMEM scratch holding intermediate activations.

    # Zero the padded scratch (establishes the conv zero-padding borders).
    s1_ref[...] = jnp.zeros_like(s1_ref)
    s2_ref[...] = jnp.zeros_like(s2_ref)
    s3_ref[...] = jnp.zeros_like(s3_ref)

    # ---- enc1: 1 -> 32, 16x16, pool -> 8x8 ----
    acc1 = jnp.dot(p1_ref[...], w1_ref[...], preferred_element_type=jnp.float32)
    y1 = jnp.maximum(acc1 + b1_ref[...], 0.0)                         # [b*256, 32]
    s1_ref[:, 1:9, 1:9, :] = _pool2x2(y1, b, 16, 16, 32)

    # ---- enc2: 32 -> 64, 8x8, pool -> 4x4 ----
    y2 = _conv3x3_from_padded(s1_ref, w2_ref, b2_ref, b=b, h=8, w=8, cin=32, cout=64)
    s2_ref[:, 1:5, 1:5, :] = _pool2x2(y2, b, 8, 8, 64)

    # ---- enc3: 64 -> 128, 4x4, pool -> 2x2 ----
    y3 = _conv3x3_from_padded(s2_ref, w3_ref, b3_ref, b=b, h=4, w=4, cin=64, cout=128)
    s3_ref[:, 1:3, 1:3, :] = _pool2x2(y3, b, 4, 4, 128)

    # ---- conv: 128 -> out_channels, 2x2, no pool ----
    y4 = _conv3x3_from_padded(s3_ref, w4_ref, b4_ref, b=b, h=2, w=2,
                              cin=128, cout=o_ref.shape[-1])
    o_ref[...] = y4                                                   # [b*4, cout] f32


# ----------------------------------------------------------------------------
# Wrapper
# ----------------------------------------------------------------------------
def _fold_bn(p):
    """Fold eval-mode BN scale into the conv weight; bias is already pre-folded."""
    weight, scale, bias = p["weight"], p["scale"], p["bias"]
    cin, cout = weight.shape[2], weight.shape[3]
    wmat = (weight.reshape(9 * cin, cout) * scale[None, :]).astype(jnp.bfloat16)
    bvec = bias.reshape(1, cout).astype(jnp.float32)
    return wmat, bvec


@jax.jit
def prompt_encoder_forward(x_nhwc, params):
    b, h, w, cin = x_nhwc.shape
    assert (h, w, cin) == (16, 16, 1), "kernel specialized for 16x16 single-channel prompts"

    w1, b1 = _fold_bn(params["enc1"])
    w2, b2 = _fold_bn(params["enc2"])
    w3, b3 = _fold_bn(params["enc3"])
    w4, b4 = _fold_bn(params["conv"])
    cout = w4.shape[1]

    # Stage-1 im2col in the wrapper: [b*256, 9] bf16 (9 KiB — no HBM blow-up).
    xp = jnp.pad(x_nhwc[..., 0].astype(jnp.bfloat16), ((0, 0), (1, 1), (1, 1)))
    patch1 = jnp.stack(
        [xp[:, di:di + h, dj:dj + w].reshape(b * h * w) for di, dj in _TAPS],
        axis=-1)

    out = pl.pallas_call(
        functools.partial(_prompt_encoder_kernel, b=b),
        out_shape=jax.ShapeDtypeStruct((b * 4, cout), jnp.float32),
        scratch_shapes=[
            pltpu.VMEM((b, 10, 10, 32), jnp.float32),    # padded pooled enc1 output
            pltpu.VMEM((b, 6, 6, 64), jnp.float32),      # padded pooled enc2 output
            pltpu.VMEM((b, 4, 4, 128), jnp.float32),     # padded pooled enc3 output
        ],
        compiler_params=pltpu.CompilerParams(vmem_limit_bytes=32 * 1024 * 1024),
    )(patch1, w1, b1, w2, b2, w3, b3, w4, b4)
    return out.reshape(b, 2, 2, cout)                    # NHWC


# ----------------------------------------------------------------------------
# Parameter init (deterministic, mirrors the PyTorch module shapes; eval-mode BN)
# ----------------------------------------------------------------------------
def _init_conv_bn(key, cin, cout, eps=1e-5):
    kw, kb, kg, kbeta, km, kv, key = jax.random.split(key, 7)
    bound = 1.0 / math.sqrt(cin * 9)
    weight = jax.random.uniform(kw, (3, 3, cin, cout), jnp.float32, -bound, bound)
    conv_b = jax.random.uniform(kb, (cout,), jnp.float32, -bound, bound)
    gamma = jax.random.uniform(kg, (cout,), jnp.float32, 0.5, 1.5)
    beta = 0.1 * jax.random.normal(kbeta, (cout,), jnp.float32)
    run_mean = 0.1 * jax.random.normal(km, (cout,), jnp.float32)
    run_var = jax.random.uniform(kv, (cout,), jnp.float32, 0.5, 1.5)
    scale = gamma / jnp.sqrt(run_var + eps)
    bias = (conv_b - run_mean) * scale + beta
    return {"weight": weight, "scale": scale, "bias": bias}, key


def init_prompt_encoder_params(key, out_channels=512):
    p1, key = _init_conv_bn(key, 1, 32)
    p2, key = _init_conv_bn(key, 32, 64)
    p3, key = _init_conv_bn(key, 64, 128)
    p4, key = _init_conv_bn(key, 128, out_channels)
    return {"enc1": p1, "enc2": p2, "enc3": p3, "conv": p4}, key


# ----------------------------------------------------------------------------
# Pure-JAX reference with matching bf16-operand / f32-accumulation numerics
# ----------------------------------------------------------------------------
def _conv_stage_ref(x_bf16, p, *, pool):
    b, h, w, cin = x_bf16.shape
    wmat, bvec = _fold_bn(p)
    cout = wmat.shape[1]
    xp = jnp.pad(x_bf16, ((0, 0), (1, 1), (1, 1), (0, 0)))
    patches = jnp.concatenate(
        [xp[:, i:i + h, j:j + w, :] for i, j in _TAPS], axis=-1
    ).reshape(b * h * w, 9 * cin)
    y = jnp.dot(patches, wmat, preferred_element_type=jnp.float32)
    y = jnp.maximum(y + bvec, 0.0).reshape(b, h, w, cout)
    if pool:
        y = jnp.max(y.reshape(b, h // 2, 2, w // 2, 2, cout), axis=(2, 4))
    return y


def prompt_encoder_reference(x_nhwc, params):
    x0 = x_nhwc.astype(jnp.bfloat16)
    x1 = _conv_stage_ref(x0, params["enc1"], pool=True).astype(jnp.bfloat16)
    x2 = _conv_stage_ref(x1, params["enc2"], pool=True).astype(jnp.bfloat16)
    x3 = _conv_stage_ref(x2, params["enc3"], pool=True).astype(jnp.bfloat16)
    return _conv_stage_ref(x3, params["conv"], pool=False)


# ----------------------------------------------------------------------------
if __name__ == "__main__":
    key = jax.random.PRNGKey(0)
    key, xk = jax.random.split(key)

    # PyTorch-side input is NCHW [2, 1, 16, 16]; transpose to NHWC here.
    x_nchw = jax.random.normal(xk, (2, 1, 16, 16), jnp.float32)
    x_nhwc = jnp.transpose(x_nchw, (0, 2, 3, 1))

    out_channels = 512  # module default
    params, key = init_prompt_encoder_params(key, out_channels=out_channels)

    out = jax.block_until_ready(prompt_encoder_forward(x_nhwc, params))
    assert out.shape == (2, 2, 2, out_channels), out.shape

    ref = prompt_encoder_reference(x_nhwc, params)
    # Both paths use identical bf16 operands with f32 accumulation; differences are
    # accumulation-order only (kernel sums 9 sub-GEMMs, reference does one GEMM).
    np.testing.assert_allclose(np.asarray(out), np.asarray(ref),
                               rtol=1e-2, atol=1e-2)

    print("KERNEL_OK")
</pallas_src>

<mosaic_0001>
module attributes {stable_mosaic.version = 11 : i64} {
  func.func @_prompt_encoder_kernel(%arg0: memref<512x9xbf16, #tpu.memory_space<vmem>>, %arg1: memref<9x32xbf16, #tpu.memory_space<vmem>>, %arg2: memref<1x32xf32, #tpu.memory_space<vmem>>, %arg3: memref<288x64xbf16, #tpu.memory_space<vmem>>, %arg4: memref<1x64xf32, #tpu.memory_space<vmem>>, %arg5: memref<576x128xbf16, #tpu.memory_space<vmem>>, %arg6: memref<1x128xf32, #tpu.memory_space<vmem>>, %arg7: memref<1152x512xbf16, #tpu.memory_space<vmem>>, %arg8: memref<1x512xf32, #tpu.memory_space<vmem>>, %arg9: memref<8x512xf32, #tpu.memory_space<vmem>>, %arg10: memref<2x10x10x32xf32, #tpu.memory_space<vmem>>, %arg11: memref<2x6x6x64xf32, #tpu.memory_space<vmem>>, %arg12: memref<2x4x4x128xf32, #tpu.memory_space<vmem>>) attributes {dimension_semantics = [], scalar_prefetch = 0 : i64, scratch_operands = 3 : i64, tpu.core_type = #tpu.core_type<tc>} {
    %cst = arith.constant 0.000000e+00 : f32
    %0 = vector.broadcast %cst : f32 to vector<2x10x10x32xf32>
    %c0 = arith.constant 0 : index
    %c0_0 = arith.constant 0 : index
    %c0_1 = arith.constant 0 : index
    %c0_2 = arith.constant 0 : index
    %1 = vector.load %arg10[%c0, %c0_0, %c0_1, %c0_2] : memref<2x10x10x32xf32, #tpu.memory_space<vmem>>, vector<2x10x10x32xf32>
    tpu.vector_store %arg10[%c0, %c0_0, %c0_1, %c0_2], %0 {strides = array<i32>} : memref<2x10x10x32xf32, #tpu.memory_space<vmem>>, vector<2x10x10x32xf32>,
    %cst_3 = arith.constant 0.000000e+00 : f32
    %2 = vector.broadcast %cst_3 : f32 to vector<2x6x6x64xf32>
    %c0_4 = arith.constant 0 : index
    %c0_5 = arith.constant 0 : index
    %c0_6 = arith.constant 0 : index
    %c0_7 = arith.constant 0 : index
    %3 = vector.load %arg11[%c0_4, %c0_5, %c0_6, %c0_7] : memref<2x6x6x64xf32, #tpu.memory_space<vmem>>, vector<2x6x6x64xf32>
    tpu.vector_store %arg11[%c0_4, %c0_5, %c0_6, %c0_7], %2 {strides = array<i32>} : memref<2x6x6x64xf32, #tpu.memory_space<vmem>>, vector<2x6x6x64xf32>,
    %cst_8 = arith.constant 0.000000e+00 : f32
    %4 = vector.broadcast %cst_8 : f32 to vector<2x4x4x128xf32>
    %c0_9 = arith.constant 0 : index
    %c0_10 = arith.constant 0 : index
    %c0_11 = arith.constant 0 : index
    %c0_12 = arith.constant 0 : index
    %5 = vector.load %arg12[%c0_9, %c0_10, %c0_11, %c0_12] : memref<2x4x4x128xf32, #tpu.memory_space<vmem>>, vector<2x4x4x128xf32>
    tpu.vector_store %arg12[%c0_9, %c0_10, %c0_11, %c0_12], %4 {strides = array<i32>} : memref<2x4x4x128xf32, #tpu.memory_space<vmem>>, vector<2x4x4x128xf32>,
    %c0_13 = arith.constant 0 : index
    %c0_14 = arith.constant 0 : index
    %6 = vector.load %arg0[%c0_13, %c0_14] : memref<512x9xbf16, #tpu.memory_space<vmem>>, vector<512x9xbf16>
    %c0_15 = arith.constant 0 : index
    %c0_16 = arith.constant 0 : index
    %7 = vector.load %arg1[%c0_15, %c0_16] : memref<9x32xbf16, #tpu.memory_space<vmem>>, vector<9x32xbf16>
    %cst_17 = arith.constant dense<0.000000e+00> : vector<512x32xf32>
    %8 = tpu.matmul %6, %7, %cst_17 {dimension_numbers = #tpu.dot_dimension_numbers<[1], [0], [0], [1], [0, 0, 1, 1], [], []>} : vector<512x9xbf16>, vector<9x32xbf16>, vector<512x32xf32> -> vector<512x32xf32>
    %c0_18 = arith.constant 0 : index
    %c0_19 = arith.constant 0 : index
    %9 = vector.load %arg2[%c0_18, %c0_19] : memref<1x32xf32, #tpu.memory_space<vmem>>, vector<1x32xf32>
    %10 = vector.broadcast %9 : vector<1x32xf32> to vector<512x32xf32>
    %11 = arith.addf %8, %10 : vector<512x32xf32>
    %cst_20 = arith.constant 0.000000e+00 : f32
    %12 = vector.broadcast %cst_20 : f32 to vector<512x32xf32>
    %13 = arith.maximumf %11, %12 : vector<512x32xf32>
    %14 = vector.shape_cast %13 : vector<512x32xf32> to vector<256x2x32xf32>
    %15 = vector.extract_strided_slice %14 {offsets = [0, 0, 0], sizes = [256, 1, 32], strides = [1, 1, 1]} : vector<256x2x32xf32> to vector<256x1x32xf32>
    %16 = vector.shape_cast %15 : vector<256x1x32xf32> to vector<256x32xf32>
    %17 = vector.extract_strided_slice %14 {offsets = [0, 1, 0], sizes = [256, 1, 32], strides = [1, 1, 1]} : vector<256x2x32xf32> to vector<256x1x32xf32>
    %18 = vector.shape_cast %17 : vector<256x1x32xf32> to vector<256x32xf32>
    %19 = arith.maximumf %16, %18 : vector<256x32xf32>
    %20 = vector.shape_cast %19 : vector<256x32xf32> to vector<16x2x8x32xf32>
    %21 = vector.extract_strided_slice %20 {offsets = [0, 0, 0, 0], sizes = [16, 1, 8, 32], strides = [1, 1, 1, 1]} : vector<16x2x8x32xf32> to vector<16x1x8x32xf32>
    %22 = vector.shape_cast %21 : vector<16x1x8x32xf32> to vector<16x8x32xf32>
    %23 = vector.extract_strided_slice %20 {offsets = [0, 1, 0, 0], sizes = [16, 1, 8, 32], strides = [1, 1, 1, 1]} : vector<16x2x8x32xf32> to vector<16x1x8x32xf32>
    %24 = vector.shape_cast %23 : vector<16x1x8x32xf32> to vector<16x8x32xf32>
    %25 = arith.maximumf %22, %24 : vector<16x8x32xf32>
    %26 = vector.shape_cast %25 : vector<16x8x32xf32> to vector<2x8x8x32xf32>
    %c0_21 = arith.constant 0 : index
    %c1 = arith.constant 1 : index
    %c1_22 = arith.constant 1 : index
    %c0_23 = arith.constant 0 : index
    %27 = vector.load %arg10[%c0_21, %c1, %c1_22, %c0_23] : memref<2x10x10x32xf32, #tpu.memory_space<vmem>>, vector<2x8x8x32xf32>
    tpu.vector_store %arg10[%c0_21, %c1, %c1_22, %c0_23], %26 {strides = array<i32>} : memref<2x10x10x32xf32, #tpu.memory_space<vmem>>, vector<2x8x8x32xf32>,
    %cst_24 = arith.constant 0.000000e+00 : f32
    %28 = vector.broadcast %cst_24 : f32 to vector<128x64xf32>
    %c0_25 = arith.constant 0 : index
    %c0_26 = arith.constant 0 : index
    %c0_27 = arith.constant 0 : index
    %c0_28 = arith.constant 0 : index
    %29 = vector.load %arg10[%c0_25, %c0_26, %c0_27, %c0_28] : memref<2x10x10x32xf32, #tpu.memory_space<vmem>>, vector<2x8x8x32xf32>
    %30 = vector.shape_cast %29 : vector<2x8x8x32xf32> to vector<128x32xf32>
    %31 = arith.truncf %30 : vector<128x32xf32> to vector<128x32xbf16>
    %c0_29 = arith.constant 0 : index
    %c0_30 = arith.constant 0 : index
    %32 = vector.load %arg3[%c0_29, %c0_30] : memref<288x64xbf16, #tpu.memory_space<vmem>>, vector<32x64xbf16>
    %cst_31 = arith.constant dense<0.000000e+00> : vector<128x64xf32>
    %33 = tpu.matmul %31, %32, %cst_31 {dimension_numbers = #tpu.dot_dimension_numbers<[1], [0], [0], [1], [0, 0, 1, 1], [], []>} : vector<128x32xbf16>, vector<32x64xbf16>, vector<128x64xf32> -> vector<128x64xf32>
    %34 = arith.addf %28, %33 : vector<128x64xf32>
    %c0_32 = arith.constant 0 : index
    %c0_33 = arith.constant 0 : index
    %c1_34 = arith.constant 1 : index
    %c0_35 = arith.constant 0 : index
    %35 = vector.load %arg10[%c0_32, %c0_33, %c1_34, %c0_35] : memref<2x10x10x32xf32, #tpu.memory_space<vmem>>, vector<2x8x8x32xf32>
    %36 = vector.shape_cast %35 : vector<2x8x8x32xf32> to vector<128x32xf32>
    %37 = arith.truncf %36 : vector<128x32xf32> to vector<128x32xbf16>
    %c32 = arith.constant 32 : index
    %c0_36 = arith.constant 0 : index
    %38 = vector.load %arg3[%c32, %c0_36] : memref<288x64xbf16, #tpu.memory_space<vmem>>, vector<32x64xbf16>
    %cst_37 = arith.constant dense<0.000000e+00> : vector<128x64xf32>
    %39 = tpu.matmul %37, %38, %cst_37 {dimension_numbers = #tpu.dot_dimension_numbers<[1], [0], [0], [1], [0, 0, 1, 1], [], []>} : vector<128x32xbf16>, vector<32x64xbf16>, vector<128x64xf32> -> vector<128x64xf32>
    %40 = arith.addf %34, %39 : vector<128x64xf32>
    %c0_38 = arith.constant 0 : index
    %c0_39 = arith.constant 0 : index
    %c2 = arith.constant 2 : index
    %c0_40 = arith.constant 0 : index
    %41 = vector.load %arg10[%c0_38, %c0_39, %c2, %c0_40] : memref<2x10x10x32xf32, #tpu.memory_space<vmem>>, vector<2x8x8x32xf32>
    %42 = vector.shape_cast %41 : vector<2x8x8x32xf32> to vector<128x32xf32>
    %43 = arith.truncf %42 : vector<128x32xf32> to vector<128x32xbf16>
    %c64 = arith.constant 64 : index
    %c0_41 = arith.constant 0 : index
    %44 = vector.load %arg3[%c64, %c0_41] : memref<288x64xbf16, #tpu.memory_space<vmem>>, vector<32x64xbf16>
    %cst_42 = arith.constant dense<0.000000e+00> : vector<128x64xf32>
    %45 = tpu.matmul %43, %44, %cst_42 {dimension_numbers = #tpu.dot_dimension_numbers<[1], [0], [0], [1], [0, 0, 1, 1], [], []>} : vector<128x32xbf16>, vector<32x64xbf16>, vector<128x64xf32> -> vector<128x64xf32>
    %46 = arith.addf %40, %45 : vector<128x64xf32>
    %c0_43 = arith.constant 0 : index
    %c1_44 = arith.constant 1 : index
    %c0_45 = arith.constant 0 : index
    %c0_46 = arith.constant 0 : index
    %47 = vector.load %arg10[%c0_43, %c1_44, %c0_45, %c0_46] : memref<2x10x10x32xf32, #tpu.memory_space<vmem>>, vector<2x8x8x32xf32>
    %48 = vector.shape_cast %47 : vector<2x8x8x32xf32> to vector<128x32xf32>
    %49 = arith.truncf %48 : vector<128x32xf32> to vector<128x32xbf16>
    %c96 = arith.constant 96 : index
    %c0_47 = arith.constant 0 : index
    %50 = vector.load %arg3[%c96, %c0_47] : memref<288x64xbf16, #tpu.memory_space<vmem>>, vector<32x64xbf16>
    %cst_48 = arith.constant dense<0.000000e+00> : vector<128x64xf32>
    %51 = tpu.matmul %49, %50, %cst_48 {dimension_numbers = #tpu.dot_dimension_numbers<[1], [0], [0], [1], [0, 0, 1, 1], [], []>} : vector<128x32xbf16>, vector<32x64xbf16>, vector<128x64xf32> -> vector<128x64xf32>
    %52 = arith.addf %46, %51 : vector<128x64xf32>
    %c0_49 = arith.constant 0 : index
    %c1_50 = arith.constant 1 : index
    %c1_51 = arith.constant 1 : index
    %c0_52 = arith.constant 0 : index
    %53 = vector.load %arg10[%c0_49, %c1_50, %c1_51, %c0_52] : memref<2x10x10x32xf32, #tpu.memory_space<vmem>>, vector<2x8x8x32xf32>
    %54 = vector.shape_cast %53 : vector<2x8x8x32xf32> to vector<128x32xf32>
    %55 = arith.truncf %54 : vector<128x32xf32> to vector<128x32xbf16>
    %c128 = arith.constant 128 : index
    %c0_53 = arith.constant 0 : index
    %56 = vector.load %arg3[%c128, %c0_53] : memref<288x64xbf16, #tpu.memory_space<vmem>>, vector<32x64xbf16>
    %cst_54 = arith.constant dense<0.000000e+00> : vector<128x64xf32>
    %57 = tpu.matmul %55, %56, %cst_54 {dimension_numbers = #tpu.dot_dimension_numbers<[1], [0], [0], [1], [0, 0, 1, 1], [], []>} : vector<128x32xbf16>, vector<32x64xbf16>, vector<128x64xf32> -> vector<128x64xf32>
    %58 = arith.addf %52, %57 : vector<128x64xf32>
    %c0_55 = arith.constant 0 : index
    %c1_56 = arith.constant 1 : index
    %c2_57 = arith.constant 2 : index
    %c0_58 = arith.constant 0 : index
    %59 = vector.load %arg10[%c0_55, %c1_56, %c2_57, %c0_58] : memref<2x10x10x32xf32, #tpu.memory_space<vmem>>, vector<2x8x8x32xf32>
    %60 = vector.shape_cast %59 : vector<2x8x8x32xf32> to vector<128x32xf32>
    %61 = arith.truncf %60 : vector<128x32xf32> to vector<128x32xbf16>
    %c160 = arith.constant 160 : index
    %c0_59 = arith.constant 0 : index
    %62 = vector.load %arg3[%c160, %c0_59] : memref<288x64xbf16, #tpu.memory_space<vmem>>, vector<32x64xbf16>
    %cst_60 = arith.constant dense<0.000000e+00> : vector<128x64xf32>
    %63 = tpu.matmul %61, %62, %cst_60 {dimension_numbers = #tpu.dot_dimension_numbers<[1], [0], [0], [1], [0, 0, 1, 1], [], []>} : vector<128x32xbf16>, vector<32x64xbf16>, vector<128x64xf32> -> vector<128x64xf32>
    %64 = arith.addf %58, %63 : vector<128x64xf32>
    %c0_61 = arith.constant 0 : index
    %c2_62 = arith.constant 2 : index
    %c0_63 = arith.constant 0 : index
    %c0_64 = arith.constant 0 : index
    %65 = vector.load %arg10[%c0_61, %c2_62, %c0_63, %c0_64] : memref<2x10x10x32xf32, #tpu.memory_space<vmem>>, vector<2x8x8x32xf32>
    %66 = vector.shape_cast %65 : vector<2x8x8x32xf32> to vector<128x32xf32>
    %67 = arith.truncf %66 : vector<128x32xf32> to vector<128x32xbf16>
    %c192 = arith.constant 192 : index
    %c0_65 = arith.constant 0 : index
    %68 = vector.load %arg3[%c192, %c0_65] : memref<288x64xbf16, #tpu.memory_space<vmem>>, vector<32x64xbf16>
    %cst_66 = arith.constant dense<0.000000e+00> : vector<128x64xf32>
    %69 = tpu.matmul %67, %68, %cst_66 {dimension_numbers = #tpu.dot_dimension_numbers<[1], [0], [0], [1], [0, 0, 1, 1], [], []>} : vector<128x32xbf16>, vector<32x64xbf16>, vector<128x64xf32> -> vector<128x64xf32>
    %70 = arith.addf %64, %69 : vector<128x64xf32>
    %c0_67 = arith.constant 0 : index
    %c2_68 = arith.constant 2 : index
    %c1_69 = arith.constant 1 : index
    %c0_70 = arith.constant 0 : index
    %71 = vector.load %arg10[%c0_67, %c2_68, %c1_69, %c0_70] : memref<2x10x10x32xf32, #tpu.memory_space<vmem>>, vector<2x8x8x32xf32>
    %72 = vector.shape_cast %71 : vector<2x8x8x32xf32> to vector<128x32xf32>
    %73 = arith.truncf %72 : vector<128x32xf32> to vector<128x32xbf16>
    %c224 = arith.constant 224 : index
    %c0_71 = arith.constant 0 : index
    %74 = vector.load %arg3[%c224, %c0_71] : memref<288x64xbf16, #tpu.memory_space<vmem>>, vector<32x64xbf16>
    %cst_72 = arith.constant dense<0.000000e+00> : vector<128x64xf32>
    %75 = tpu.matmul %73, %74, %cst_72 {dimension_numbers = #tpu.dot_dimension_numbers<[1], [0], [0], [1], [0, 0, 1, 1], [], []>} : vector<128x32xbf16>, vector<32x64xbf16>, vector<128x64xf32> -> vector<128x64xf32>
    %76 = arith.addf %70, %75 : vector<128x64xf32>
    %c0_73 = arith.constant 0 : index
    %c2_74 = arith.constant 2 : index
    %c2_75 = arith.constant 2 : index
    %c0_76 = arith.constant 0 : index
    %77 = vector.load %arg10[%c0_73, %c2_74, %c2_75, %c0_76] : memref<2x10x10x32xf32, #tpu.memory_space<vmem>>, vector<2x8x8x32xf32>
    %78 = vector.shape_cast %77 : vector<2x8x8x32xf32> to vector<128x32xf32>
    %79 = arith.truncf %78 : vector<128x32xf32> to vector<128x32xbf16>
    %c256 = arith.constant 256 : index
    %c0_77 = arith.constant 0 : index
    %80 = vector.load %arg3[%c256, %c0_77] : memref<288x64xbf16, #tpu.memory_space<vmem>>, vector<32x64xbf16>
    %cst_78 = arith.constant dense<0.000000e+00> : vector<128x64xf32>
    %81 = tpu.matmul %79, %80, %cst_78 {dimension_numbers = #tpu.dot_dimension_numbers<[1], [0], [0], [1], [0, 0, 1, 1], [], []>} : vector<128x32xbf16>, vector<32x64xbf16>, vector<128x64xf32> -> vector<128x64xf32>
    %82 = arith.addf %76, %81 : vector<128x64xf32>
    %c0_79 = arith.constant 0 : index
    %c0_80 = arith.constant 0 : index
    %83 = vector.load %arg4[%c0_79, %c0_80] : memref<1x64xf32, #tpu.memory_space<vmem>>, vector<1x64xf32>
    %84 = vector.broadcast %83 : vector<1x64xf32> to vector<128x64xf32>
    %85 = arith.addf %82, %84 : vector<128x64xf32>
    %cst_81 = arith.constant 0.000000e+00 : f32
    %86 = vector.broadcast %cst_81 : f32 to vector<128x64xf32>
    %87 = arith.maximumf %85, %86 : vector<128x64xf32>
    %88 = vector.shape_cast %87 : vector<128x64xf32> to vector<64x2x64xf32>
    %89 = vector.extract_strided_slice %88 {offsets = [0, 0, 0], sizes = [64, 1, 64], strides = [1, 1, 1]} : vector<64x2x64xf32> to vector<64x1x64xf32>
    %90 = vector.shape_cast %89 : vector<64x1x64xf32> to vector<64x64xf32>
    %91 = vector.extract_strided_slice %88 {offsets = [0, 1, 0], sizes = [64, 1, 64], strides = [1, 1, 1]} : vector<64x2x64xf32> to vector<64x1x64xf32>
    %92 = vector.shape_cast %91 : vector<64x1x64xf32> to vector<64x64xf32>
    %93 = arith.maximumf %90, %92 : vector<64x64xf32>
    %94 = vector.shape_cast %93 : vector<64x64xf32> to vector<8x2x4x64xf32>
    %95 = vector.extract_strided_slice %94 {offsets = [0, 0, 0, 0], sizes = [8, 1, 4, 64], strides = [1, 1, 1, 1]} : vector<8x2x4x64xf32> to vector<8x1x4x64xf32>
    %96 = vector.shape_cast %95 : vector<8x1x4x64xf32> to vector<8x4x64xf32>
    %97 = vector.extract_strided_slice %94 {offsets = [0, 1, 0, 0], sizes = [8, 1, 4, 64], strides = [1, 1, 1, 1]} : vector<8x2x4x64xf32> to vector<8x1x4x64xf32>
    %98 = vector.shape_cast %97 : vector<8x1x4x64xf32> to vector<8x4x64xf32>
    %99 = arith.maximumf %96, %98 : vector<8x4x64xf32>
    %100 = vector.shape_cast %99 : vector<8x4x64xf32> to vector<2x4x4x64xf32>
    %c0_82 = arith.constant 0 : index
    %c1_83 = arith.constant 1 : index
    %c1_84 = arith.constant 1 : index
    %c0_85 = arith.constant 0 : index
    %101 = vector.load %arg11[%c0_82, %c1_83, %c1_84, %c0_85] : memref<2x6x6x64xf32, #tpu.memory_space<vmem>>, vector<2x4x4x64xf32>
    tpu.vector_store %arg11[%c0_82, %c1_83, %c1_84, %c0_85], %100 {strides = array<i32>} : memref<2x6x6x64xf32, #tpu.memory_space<vmem>>, vector<2x4x4x64xf32>,
    %cst_86 = arith.constant 0.000000e+00 : f32
    %102 = vector.broadcast %cst_86 : f32 to vector<32x128xf32>
    %c0_87 = arith.constant 0 : index
    %c0_88 = arith.constant 0 : index
    %c0_89 = arith.constant 0 : index
    %c0_90 = arith.constant 0 : index
    %103 = vector.load %arg11[%c0_87, %c0_88, %c0_89, %c0_90] : memref<2x6x6x64xf32, #tpu.memory_space<vmem>>, vector<2x4x4x64xf32>
    %104 = vector.shape_cast %103 : vector<2x4x4x64xf32> to vector<32x64xf32>
    %105 = arith.truncf %104 : vector<32x64xf32> to vector<32x64xbf16>
    %c0_91 = arith.constant 0 : index
    %c0_92 = arith.constant 0 : index
    %106 = vector.load %arg5[%c0_91, %c0_92] : memref<576x128xbf16, #tpu.memory_space<vmem>>, vector<64x128xbf16>
    %cst_93 = arith.constant dense<0.000000e+00> : vector<32x128xf32>
    %107 = tpu.matmul %105, %106, %cst_93 {dimension_numbers = #tpu.dot_dimension_numbers<[1], [0], [0], [1], [0, 0, 1, 1], [], []>} : vector<32x64xbf16>, vector<64x128xbf16>, vector<32x128xf32> -> vector<32x128xf32>
    %108 = arith.addf %102, %107 : vector<32x128xf32>
    %c0_94 = arith.constant 0 : index
    %c0_95 = arith.constant 0 : index
    %c1_96 = arith.constant 1 : index
    %c0_97 = arith.constant 0 : index
    %109 = vector.load %arg11[%c0_94, %c0_95, %c1_96, %c0_97] : memref<2x6x6x64xf32, #tpu.memory_space<vmem>>, vector<2x4x4x64xf32>
    %110 = vector.shape_cast %109 : vector<2x4x4x64xf32> to vector<32x64xf32>
    %111 = arith.truncf %110 : vector<32x64xf32> to vector<32x64xbf16>
    %c64_98 = arith.constant 64 : index
    %c0_99 = arith.constant 0 : index
    %112 = vector.load %arg5[%c64_98, %c0_99] : memref<576x128xbf16, #tpu.memory_space<vmem>>, vector<64x128xbf16>
    %cst_100 = arith.constant dense<0.000000e+00> : vector<32x128xf32>
    %113 = tpu.matmul %111, %112, %cst_100 {dimension_numbers = #tpu.dot_dimension_numbers<[1], [0], [0], [1], [0, 0, 1, 1], [], []>} : vector<32x64xbf16>, vector<64x128xbf16>, vector<32x128xf32> -> vector<32x128xf32>
    %114 = arith.addf %108, %113 : vector<32x128xf32>
    %c0_101 = arith.constant 0 : index
    %c0_102 = arith.constant 0 : index
    %c2_103 = arith.constant 2 : index
    %c0_104 = arith.constant 0 : index
    %115 = vector.load %arg11[%c0_101, %c0_102, %c2_103, %c0_104] : memref<2x6x6x64xf32, #tpu.memory_space<vmem>>, vector<2x4x4x64xf32>
    %116 = vector.shape_cast %115 : vector<2x4x4x64xf32> to vector<32x64xf32>
    %117 = arith.truncf %116 : vector<32x64xf32> to vector<32x64xbf16>
    %c128_105 = arith.constant 128 : index
    %c0_106 = arith.constant 0 : index
    %118 = vector.load %arg5[%c128_105, %c0_106] : memref<576x128xbf16, #tpu.memory_space<vmem>>, vector<64x128xbf16>
    %cst_107 = arith.constant dense<0.000000e+00> : vector<32x128xf32>
    %119 = tpu.matmul %117, %118, %cst_107 {dimension_numbers = #tpu.dot_dimension_numbers<[1], [0], [0], [1], [0, 0, 1, 1], [], []>} : vector<32x64xbf16>, vector<64x128xbf16>, vector<32x128xf32> -> vector<32x128xf32>
    %120 = arith.addf %114, %119 : vector<32x128xf32>
    %c0_108 = arith.constant 0 : index
    %c1_109 = arith.constant 1 : index
    %c0_110 = arith.constant 0 : index
    %c0_111 = arith.constant 0 : index
    %121 = vector.load %arg11[%c0_108, %c1_109, %c0_110, %c0_111] : memref<2x6x6x64xf32, #tpu.memory_space<vmem>>, vector<2x4x4x64xf32>
    %122 = vector.shape_cast %121 : vector<2x4x4x64xf32> to vector<32x64xf32>
    %123 = arith.truncf %122 : vector<32x64xf32> to vector<32x64xbf16>
    %c192_112 = arith.constant 192 : index
    %c0_113 = arith.constant 0 : index
    %124 = vector.load %arg5[%c192_112, %c0_113] : memref<576x128xbf16, #tpu.memory_space<vmem>>, vector<64x128xbf16>
    %cst_114 = arith.constant dense<0.000000e+00> : vector<32x128xf32>
    %125 = tpu.matmul %123, %124, %cst_114 {dimension_numbers = #tpu.dot_dimension_numbers<[1], [0], [0], [1], [0, 0, 1, 1], [], []>} : vector<32x64xbf16>, vector<64x128xbf16>, vector<32x128xf32> -> vector<32x128xf32>
    %126 = arith.addf %120, %125 : vector<32x128xf32>
    %c0_115 = arith.constant 0 : index
    %c1_116 = arith.constant 1 : index
    %c1_117 = arith.constant 1 : index
    %c0_118 = arith.constant 0 : index
    %127 = vector.load %arg11[%c0_115, %c1_116, %c1_117, %c0_118] : memref<2x6x6x64xf32, #tpu.memory_space<vmem>>, vector<2x4x4x64xf32>
    %128 = vector.shape_cast %127 : vector<2x4x4x64xf32> to vector<32x64xf32>
    %129 = arith.truncf %128 : vector<32x64xf32> to vector<32x64xbf16>
    %c256_119 = arith.constant 256 : index
    %c0_120 = arith.constant 0 : index
    %130 = vector.load %arg5[%c256_119, %c0_120] : memref<576x128xbf16, #tpu.memory_space<vmem>>, vector<64x128xbf16>
    %cst_121 = arith.constant dense<0.000000e+00> : vector<32x128xf32>
    %131 = tpu.matmul %129, %130, %cst_121 {dimension_numbers = #tpu.dot_dimension_numbers<[1], [0], [0], [1], [0, 0, 1, 1], [], []>} : vector<32x64xbf16>, vector<64x128xbf16>, vector<32x128xf32> -> vector<32x128xf32>
    %132 = arith.addf %126, %131 : vector<32x128xf32>
    %c0_122 = arith.constant 0 : index
    %c1_123 = arith.constant 1 : index
    %c2_124 = arith.constant 2 : index
    %c0_125 = arith.constant 0 : index
    %133 = vector.load %arg11[%c0_122, %c1_123, %c2_124, %c0_125] : memref<2x6x6x64xf32, #tpu.memory_space<vmem>>, vector<2x4x4x64xf32>
    %134 = vector.shape_cast %133 : vector<2x4x4x64xf32> to vector<32x64xf32>
    %135 = arith.truncf %134 : vector<32x64xf32> to vector<32x64xbf16>
    %c320 = arith.constant 320 : index
    %c0_126 = arith.constant 0 : index
    %136 = vector.load %arg5[%c320, %c0_126] : memref<576x128xbf16, #tpu.memory_space<vmem>>, vector<64x128xbf16>
    %cst_127 = arith.constant dense<0.000000e+00> : vector<32x128xf32>
    %137 = tpu.matmul %135, %136, %cst_127 {dimension_numbers = #tpu.dot_dimension_numbers<[1], [0], [0], [1], [0, 0, 1, 1], [], []>} : vector<32x64xbf16>, vector<64x128xbf16>, vector<32x128xf32> -> vector<32x128xf32>
    %138 = arith.addf %132, %137 : vector<32x128xf32>
    %c0_128 = arith.constant 0 : index
    %c2_129 = arith.constant 2 : index
    %c0_130 = arith.constant 0 : index
    %c0_131 = arith.constant 0 : index
    %139 = vector.load %arg11[%c0_128, %c2_129, %c0_130, %c0_131] : memref<2x6x6x64xf32, #tpu.memory_space<vmem>>, vector<2x4x4x64xf32>
    %140 = vector.shape_cast %139 : vector<2x4x4x64xf32> to vector<32x64xf32>
    %141 = arith.truncf %140 : vector<32x64xf32> to vector<32x64xbf16>
    %c384 = arith.constant 384 : index
    %c0_132 = arith.constant 0 : index
    %142 = vector.load %arg5[%c384, %c0_132] : memref<576x128xbf16, #tpu.memory_space<vmem>>, vector<64x128xbf16>
    %cst_133 = arith.constant dense<0.000000e+00> : vector<32x128xf32>
    %143 = tpu.matmul %141, %142, %cst_133 {dimension_numbers = #tpu.dot_dimension_numbers<[1], [0], [0], [1], [0, 0, 1, 1], [], []>} : vector<32x64xbf16>, vector<64x128xbf16>, vector<32x128xf32> -> vector<32x128xf32>
    %144 = arith.addf %138, %143 : vector<32x128xf32>
    %c0_134 = arith.constant 0 : index
    %c2_135 = arith.constant 2 : index
    %c1_136 = arith.constant 1 : index
    %c0_137 = arith.constant 0 : index
    %145 = vector.load %arg11[%c0_134, %c2_135, %c1_136, %c0_137] : memref<2x6x6x64xf32, #tpu.memory_space<vmem>>, vector<2x4x4x64xf32>
    %146 = vector.shape_cast %145 : vector<2x4x4x64xf32> to vector<32x64xf32>
    %147 = arith.truncf %146 : vector<32x64xf32> to vector<32x64xbf16>
    %c448 = arith.constant 448 : index
    %c0_138 = arith.constant 0 : index
    %148 = vector.load %arg5[%c448, %c0_138] : memref<576x128xbf16, #tpu.memory_space<vmem>>, vector<64x128xbf16>
    %cst_139 = arith.constant dense<0.000000e+00> : vector<32x128xf32>
    %149 = tpu.matmul %147, %148, %cst_139 {dimension_numbers = #tpu.dot_dimension_numbers<[1], [0], [0], [1], [0, 0, 1, 1], [], []>} : vector<32x64xbf16>, vector<64x128xbf16>, vector<32x128xf32> -> vector<32x128xf32>
    %150 = arith.addf %144, %149 : vector<32x128xf32>
    %c0_140 = arith.constant 0 : index
    %c2_141 = arith.constant 2 : index
    %c2_142 = arith.constant 2 : index
    %c0_143 = arith.constant 0 : index
    %151 = vector.load %arg11[%c0_140, %c2_141, %c2_142, %c0_143] : memref<2x6x6x64xf32, #tpu.memory_space<vmem>>, vector<2x4x4x64xf32>
    %152 = vector.shape_cast %151 : vector<2x4x4x64xf32> to vector<32x64xf32>
    %153 = arith.truncf %152 : vector<32x64xf32> to vector<32x64xbf16>
    %c512 = arith.constant 512 : index
    %c0_144 = arith.constant 0 : index
    %154 = vector.load %arg5[%c512, %c0_144] : memref<576x128xbf16, #tpu.memory_space<vmem>>, vector<64x128xbf16>
    %cst_145 = arith.constant dense<0.000000e+00> : vector<32x128xf32>
    %155 = tpu.matmul %153, %154, %cst_145 {dimension_numbers = #tpu.dot_dimension_numbers<[1], [0], [0], [1], [0, 0, 1, 1], [], []>} : vector<32x64xbf16>, vector<64x128xbf16>, vector<32x128xf32> -> vector<32x128xf32>
    %156 = arith.addf %150, %155 : vector<32x128xf32>
    %c0_146 = arith.constant 0 : index
    %c0_147 = arith.constant 0 : index
    %157 = vector.load %arg6[%c0_146, %c0_147] : memref<1x128xf32, #tpu.memory_space<vmem>>, vector<1x128xf32>
    %158 = vector.broadcast %157 : vector<1x128xf32> to vector<32x128xf32>
    %159 = arith.addf %156, %158 : vector<32x128xf32>
    %cst_148 = arith.constant 0.000000e+00 : f32
    %160 = vector.broadcast %cst_148 : f32 to vector<32x128xf32>
    %161 = arith.maximumf %159, %160 : vector<32x128xf32>
    %162 = vector.shape_cast %161 : vector<32x128xf32> to vector<16x2x128xf32>
    %163 = vector.extract_strided_slice %162 {offsets = [0, 0, 0], sizes = [16, 1, 128], strides = [1, 1, 1]} : vector<16x2x128xf32> to vector<16x1x128xf32>
    %164 = vector.shape_cast %163 : vector<16x1x128xf32> to vector<16x128xf32>
    %165 = vector.extract_strided_slice %162 {offsets = [0, 1, 0], sizes = [16, 1, 128], strides = [1, 1, 1]} : vector<16x2x128xf32> to vector<16x1x128xf32>
    %166 = vector.shape_cast %165 : vector<16x1x128xf32> to vector<16x128xf32>
    %167 = arith.maximumf %164, %166 : vector<16x128xf32>
    %168 = vector.shape_cast %167 : vector<16x128xf32> to vector<4x2x2x128xf32>
    %169 = vector.extract_strided_slice %168 {offsets = [0, 0, 0, 0], sizes = [4, 1, 2, 128], strides = [1, 1, 1, 1]} : vector<4x2x2x128xf32> to vector<4x1x2x128xf32>
    %170 = vector.shape_cast %169 : vector<4x1x2x128xf32> to vector<4x2x128xf32>
    %171 = vector.extract_strided_slice %168 {offsets = [0, 1, 0, 0], sizes = [4, 1, 2, 128], strides = [1, 1, 1, 1]} : vector<4x2x2x128xf32> to vector<4x1x2x128xf32>
    %172 = vector.shape_cast %171 : vector<4x1x2x128xf32> to vector<4x2x128xf32>
    %173 = arith.maximumf %170, %172 : vector<4x2x128xf32>
    %174 = vector.shape_cast %173 : vector<4x2x128xf32> to vector<2x2x2x128xf32>
    %c0_149 = arith.constant 0 : index
    %c1_150 = arith.constant 1 : index
    %c1_151 = arith.constant 1 : index
    %c0_152 = arith.constant 0 : index
    %175 = vector.load %arg12[%c0_149, %c1_150, %c1_151, %c0_152] : memref<2x4x4x128xf32, #tpu.memory_space<vmem>>, vector<2x2x2x128xf32>
    tpu.vector_store %arg12[%c0_149, %c1_150, %c1_151, %c0_152], %174 {strides = array<i32>} : memref<2x4x4x128xf32, #tpu.memory_space<vmem>>, vector<2x2x2x128xf32>,
    %cst_153 = arith.constant 0.000000e+00 : f32
    %176 = vector.broadcast %cst_153 : f32 to vector<8x512xf32>
    %c0_154 = arith.constant 0 : index
    %c0_155 = arith.constant 0 : index
    %c0_156 = arith.constant 0 : index
    %c0_157 = arith.constant 0 : index
    %177 = vector.load %arg12[%c0_154, %c0_155, %c0_156, %c0_157] : memref<2x4x4x128xf32, #tpu.memory_space<vmem>>, vector<2x2x2x128xf32>
    %178 = vector.shape_cast %177 : vector<2x2x2x128xf32> to vector<8x128xf32>
    %179 = arith.truncf %178 : vector<8x128xf32> to vector<8x128xbf16>
    %c0_158 = arith.constant 0 : index
    %c0_159 = arith.constant 0 : index
    %180 = vector.load %arg7[%c0_158, %c0_159] : memref<1152x512xbf16, #tpu.memory_space<vmem>>, vector<128x512xbf16>
    %cst_160 = arith.constant dense<0.000000e+00> : vector<8x512xf32>
    %181 = tpu.matmul %179, %180, %cst_160 {dimension_numbers = #tpu.dot_dimension_numbers<[1], [0], [0], [1], [0, 0, 1, 1], [], []>} : vector<8x128xbf16>, vector<128x512xbf16>, vector<8x512xf32> -> vector<8x512xf32>
    %182 = arith.addf %176, %181 : vector<8x512xf32>
    %c0_161 = arith.constant 0 : index
    %c0_162 = arith.constant 0 : index
    %c1_163 = arith.constant 1 : index
    %c0_164 = arith.constant 0 : index
    %183 = vector.load %arg12[%c0_161, %c0_162, %c1_163, %c0_164] : memref<2x4x4x128xf32, #tpu.memory_space<vmem>>, vector<2x2x2x128xf32>
    %184 = vector.shape_cast %183 : vector<2x2x2x128xf32> to vector<8x128xf32>
    %185 = arith.truncf %184 : vector<8x128xf32> to vector<8x128xbf16>
    %c128_165 = arith.constant 128 : index
    %c0_166 = arith.constant 0 : index
    %186 = vector.load %arg7[%c128_165, %c0_166] : memref<1152x512xbf16, #tpu.memory_space<vmem>>, vector<128x512xbf16>
    %cst_167 = arith.constant dense<0.000000e+00> : vector<8x512xf32>
    %187 = tpu.matmul %185, %186, %cst_167 {dimension_numbers = #tpu.dot_dimension_numbers<[1], [0], [0], [1], [0, 0, 1, 1], [], []>} : vector<8x128xbf16>, vector<128x512xbf16>, vector<8x512xf32> -> vector<8x512xf32>
    %188 = arith.addf %182, %187 : vector<8x512xf32>
    %c0_168 = arith.constant 0 : index
    %c0_169 = arith.constant 0 : index
    %c2_170 = arith.constant 2 : index
    %c0_171 = arith.constant 0 : index
    %189 = vector.load %arg12[%c0_168, %c0_169, %c2_170, %c0_171] : memref<2x4x4x128xf32, #tpu.memory_space<vmem>>, vector<2x2x2x128xf32>
    %190 = vector.shape_cast %189 : vector<2x2x2x128xf32> to vector<8x128xf32>
    %191 = arith.truncf %190 : vector<8x128xf32> to vector<8x128xbf16>
    %c256_172 = arith.constant 256 : index
    %c0_173 = arith.constant 0 : index
    %192 = vector.load %arg7[%c256_172, %c0_173] : memref<1152x512xbf16, #tpu.memory_space<vmem>>, vector<128x512xbf16>
    %cst_174 = arith.constant dense<0.000000e+00> : vector<8x512xf32>
    %193 = tpu.matmul %191, %192, %cst_174 {dimension_numbers = #tpu.dot_dimension_numbers<[1], [0], [0], [1], [0, 0, 1, 1], [], []>} : vector<8x128xbf16>, vector<128x512xbf16>, vector<8x512xf32> -> vector<8x512xf32>
    %194 = arith.addf %188, %193 : vector<8x512xf32>
    %c0_175 = arith.constant 0 : index
    %c1_176 = arith.constant 1 : index
    %c0_177 = arith.constant 0 : index
    %c0_178 = arith.constant 0 : index
    %195 = vector.load %arg12[%c0_175, %c1_176, %c0_177, %c0_178] : memref<2x4x4x128xf32, #tpu.memory_space<vmem>>, vector<2x2x2x128xf32>
    %196 = vector.shape_cast %195 : vector<2x2x2x128xf32> to vector<8x128xf32>
    %197 = arith.truncf %196 : vector<8x128xf32> to vector<8x128xbf16>
    %c384_179 = arith.constant 384 : index
    %c0_180 = arith.constant 0 : index
    %198 = vector.load %arg7[%c384_179, %c0_180] : memref<1152x512xbf16, #tpu.memory_space<vmem>>, vector<128x512xbf16>
    %cst_181 = arith.constant dense<0.000000e+00> : vector<8x512xf32>
    %199 = tpu.matmul %197, %198, %cst_181 {dimension_numbers = #tpu.dot_dimension_numbers<[1], [0], [0], [1], [0, 0, 1, 1], [], []>} : vector<8x128xbf16>, vector<128x512xbf16>, vector<8x512xf32> -> vector<8x512xf32>
    %200 = arith.addf %194, %199 : vector<8x512xf32>
    %c0_182 = arith.constant 0 : index
    %c1_183 = arith.constant 1 : index
    %c1_184 = arith.constant 1 : index
    %c0_185 = arith.constant 0 : index
    %201 = vector.load %arg12[%c0_182, %c1_183, %c1_184, %c0_185] : memref<2x4x4x128xf32, #tpu.memory_space<vmem>>, vector<2x2x2x128xf32>
    %202 = vector.shape_cast %201 : vector<2x2x2x128xf32> to vector<8x128xf32>
    %203 = arith.truncf %202 : vector<8x128xf32> to vector<8x128xbf16>
    %c512_186 = arith.constant 512 : index
    %c0_187 = arith.constant 0 : index
    %204 = vector.load %arg7[%c512_186, %c0_187] : memref<1152x512xbf16, #tpu.memory_space<vmem>>, vector<128x512xbf16>
    %cst_188 = arith.constant dense<0.000000e+00> : vector<8x512xf32>
    %205 = tpu.matmul %203, %204, %cst_188 {dimension_numbers = #tpu.dot_dimension_numbers<[1], [0], [0], [1], [0, 0, 1, 1], [], []>} : vector<8x128xbf16>, vector<128x512xbf16>, vector<8x512xf32> -> vector<8x512xf32>
    %206 = arith.addf %200, %205 : vector<8x512xf32>
    %c0_189 = arith.constant 0 : index
    %c1_190 = arith.constant 1 : index
    %c2_191 = arith.constant 2 : index
    %c0_192 = arith.constant 0 : index
    %207 = vector.load %arg12[%c0_189, %c1_190, %c2_191, %c0_192] : memref<2x4x4x128xf32, #tpu.memory_space<vmem>>, vector<2x2x2x128xf32>
    %208 = vector.shape_cast %207 : vector<2x2x2x128xf32> to vector<8x128xf32>
    %209 = arith.truncf %208 : vector<8x128xf32> to vector<8x128xbf16>
    %c640 = arith.constant 640 : index
    %c0_193 = arith.constant 0 : index
    %210 = vector.load %arg7[%c640, %c0_193] : memref<1152x512xbf16, #tpu.memory_space<vmem>>, vector<128x512xbf16>
    %cst_194 = arith.constant dense<0.000000e+00> : vector<8x512xf32>
    %211 = tpu.matmul %209, %210, %cst_194 {dimension_numbers = #tpu.dot_dimension_numbers<[1], [0], [0], [1], [0, 0, 1, 1], [], []>} : vector<8x128xbf16>, vector<128x512xbf16>, vector<8x512xf32> -> vector<8x512xf32>
    %212 = arith.addf %206, %211 : vector<8x512xf32>
    %c0_195 = arith.constant 0 : index
    %c2_196 = arith.constant 2 : index
    %c0_197 = arith.constant 0 : index
    %c0_198 = arith.constant 0 : index
    %213 = vector.load %arg12[%c0_195, %c2_196, %c0_197, %c0_198] : memref<2x4x4x128xf32, #tpu.memory_space<vmem>>, vector<2x2x2x128xf32>
    %214 = vector.shape_cast %213 : vector<2x2x2x128xf32> to vector<8x128xf32>
    %215 = arith.truncf %214 : vector<8x128xf32> to vector<8x128xbf16>
    %c768 = arith.constant 768 : index
    %c0_199 = arith.constant 0 : index
    %216 = vector.load %arg7[%c768, %c0_199] : memref<1152x512xbf16, #tpu.memory_space<vmem>>, vector<128x512xbf16>
    %cst_200 = arith.constant dense<0.000000e+00> : vector<8x512xf32>
    %217 = tpu.matmul %215, %216, %cst_200 {dimension_numbers = #tpu.dot_dimension_numbers<[1], [0], [0], [1], [0, 0, 1, 1], [], []>} : vector<8x128xbf16>, vector<128x512xbf16>, vector<8x512xf32> -> vector<8x512xf32>
    %218 = arith.addf %212, %217 : vector<8x512xf32>
    %c0_201 = arith.constant 0 : index
    %c2_202 = arith.constant 2 : index
    %c1_203 = arith.constant 1 : index
    %c0_204 = arith.constant 0 : index
    %219 = vector.load %arg12[%c0_201, %c2_202, %c1_203, %c0_204] : memref<2x4x4x128xf32, #tpu.memory_space<vmem>>, vector<2x2x2x128xf32>
    %220 = vector.shape_cast %219 : vector<2x2x2x128xf32> to vector<8x128xf32>
    %221 = arith.truncf %220 : vector<8x128xf32> to vector<8x128xbf16>
    %c896 = arith.constant 896 : index
    %c0_205 = arith.constant 0 : index
    %222 = vector.load %arg7[%c896, %c0_205] : memref<1152x512xbf16, #tpu.memory_space<vmem>>, vector<128x512xbf16>
    %cst_206 = arith.constant dense<0.000000e+00> : vector<8x512xf32>
    %223 = tpu.matmul %221, %222, %cst_206 {dimension_numbers = #tpu.dot_dimension_numbers<[1], [0], [0], [1], [0, 0, 1, 1], [], []>} : vector<8x128xbf16>, vector<128x512xbf16>, vector<8x512xf32> -> vector<8x512xf32>
    %224 = arith.addf %218, %223 : vector<8x512xf32>
    %c0_207 = arith.constant 0 : index
    %c2_208 = arith.constant 2 : index
    %c2_209 = arith.constant 2 : index
    %c0_210 = arith.constant 0 : index
    %225 = vector.load %arg12[%c0_207, %c2_208, %c2_209, %c0_210] : memref<2x4x4x128xf32, #tpu.memory_space<vmem>>, vector<2x2x2x128xf32>
    %226 = vector.shape_cast %225 : vector<2x2x2x128xf32> to vector<8x128xf32>
    %227 = arith.truncf %226 : vector<8x128xf32> to vector<8x128xbf16>
    %c1024 = arith.constant 1024 : index
    %c0_211 = arith.constant 0 : index
    %228 = vector.load %arg7[%c1024, %c0_211] : memref<1152x512xbf16, #tpu.memory_space<vmem>>, vector<128x512xbf16>
    %cst_212 = arith.constant dense<0.000000e+00> : vector<8x512xf32>
    %229 = tpu.matmul %227, %228, %cst_212 {dimension_numbers = #tpu.dot_dimension_numbers<[1], [0], [0], [1], [0, 0, 1, 1], [], []>} : vector<8x128xbf16>, vector<128x512xbf16>, vector<8x512xf32> -> vector<8x512xf32>
    %230 = arith.addf %224, %229 : vector<8x512xf32>
    %c0_213 = arith.constant 0 : index
    %c0_214 = arith.constant 0 : index
    %231 = vector.load %arg8[%c0_213, %c0_214] : memref<1x512xf32, #tpu.memory_space<vmem>>, vector<1x512xf32>
    %232 = vector.broadcast %231 : vector<1x512xf32> to vector<8x512xf32>
    %233 = arith.addf %230, %232 : vector<8x512xf32>
    %cst_215 = arith.constant 0.000000e+00 : f32
    %234 = vector.broadcast %cst_215 : f32 to vector<8x512xf32>
    %235 = arith.maximumf %233, %234 : vector<8x512xf32>
    %c0_216 = arith.constant 0 : index
    %c0_217 = arith.constant 0 : index
    %236 = vector.load %arg9[%c0_216, %c0_217] : memref<8x512xf32, #tpu.memory_space<vmem>>, vector<8x512xf32>
    tpu.vector_store %arg9[%c0_216, %c0_217], %235 {strides = array<i32>} : memref<8x512xf32, #tpu.memory_space<vmem>>, vector<8x512xf32>,
    return
  }
}

</mosaic_0001>

<bundles_post_ra>
// kernel: prompt_encoder_forward.1
= control target key start
LH: loop header
LB: loop body
LE: loop exit
PB: predicated region body
PF: predicated region fallthrough
CT: control target
= control target key end

     0   :  { %vm431_vm0 = vcmask 1043456   ;;  %vm432_vm1 = vcmask 1044480   ;;  %vm334_vm2 = vcmask 72704   ;;  %v12762_v1 = vmov 65535   ;;  %s15289_s1 = inlined_call_operand.vmem [shape: bf16[9,32], index: 1, kind: input, shape index: {}]   ;;  %s15290_s0 = inlined_call_operand.vmem [shape: bf16[512,9], index: 0, kind: input, shape index: {}]   ;;  %s15291_s3 = inlined_call_operand.vmem [shape: bf16[288,64], index: 3, kind: input, shape index: {}]   ;;  %s15292_s2 = inlined_call_operand.vmem [shape: f32[1,32], index: 2, kind: input, shape index: {}]   ;;  %s15293_s5 = inlined_call_operand.vmem [shape: bf16[576,128], index: 5, kind: input, shape index: {}]   ;;  %s15294_s4 = inlined_call_operand.vmem [shape: f32[1,64], index: 4, kind: input, shape index: {}]   ;;  %s15295_s7 = inlined_call_operand.vmem [shape: bf16[1152,512], index: 7, kind: input, shape index: {}]   ;;  %s15296_s6 = inlined_call_operand.vmem [shape: f32[1,128], index: 6, kind: input, shape index: {}]   ;;  %s15297_s8 = inlined_call_operand.vmem [shape: f32[1,512], index: 8, kind: input, shape index: {}]   ;;  %s15298_s9 = inlined_call_operand.vmem [shape: f32[8,512], index: 9, kind: output, shape index: {}]  }
   0x1   :  { %v12168_v0 = vld [vmem:[%s15289_s1] sm:$0x1f]   ;;  %v433_v2 = vsel %vm431_vm0, 4294967295, %v12762_v1  ;;  %v12170_v6 = vld [vmem:[%s15290_s0 + $0x8] sm:$0xff]   ;;  %v12171_v7 = vld [vmem:[%s15290_s0 + $0x10] sm:$0xff]   ;;  %vm33_vm3 = vcmask 261120   ;;  %v859_v38 = vlaneseq }
   0x2   :  { %v12169_v3 = vld [vmem:[%s15290_s0] sm:$0xff]   ;;  %v434_v4 = vsel %vm432_vm1, %v433_v2, 0  ;;  %v12172_v8 = vld [vmem:[%s15290_s0 + $0x18] sm:$0xff]   ;;  %v12174_v10 = vld [vmem:[%s15290_s0 + $0x28] sm:$0xff]   ;;  %vm35_vm4 = vcmask 254976   ;;  %v15299_v34 = vmov 0.0  }
   0x3   :  { %v436_v5 = vand.u32 %v12168_v0, %v434_v4  ;;  %11652 = vmatprep.mubr.msk.bf16.mxu0 %vm334_vm2, %v12169_v3  ;;  %v12173_v9 = vld [vmem:[%s15290_s0 + $0x20] sm:$0xff]   ;;  %v12175_v11 = vld [vmem:[%s15290_s0 + $0x30] sm:$0xff]   ;;  %v12176_v12 = vld [vmem:[%s15290_s0 + $0x38] sm:$0xff]   ;;  %37 = vst.msk [vmem:[#allocation2 + $0x10] sm:$0xff] %vm33_vm3, %v15299_v34  ;;  %v13038_v40 = vshrl.u32 %v859_v38, 7  ;;  %vm3991_vm5 = vcmask 1041409  }
   0x4   :  { %v12177_v13 = vld [vmem:[%s15290_s0 + $0x40] sm:$0xff]   ;;  %v12178_v14 = vld [vmem:[%s15290_s0 + $0x48] sm:$0xff]   ;;  %v12179_v15 = vld [vmem:[%s15290_s0 + $0x50] sm:$0xff]   ;;  %38 = vst.msk [vmem:[#allocation2 + $0x18] sm:$0x3] %vm35_vm4, %v15299_v34  ;;  %vm3993_vm6 = vcmask 1042434  }
   0x5   :  { %11650 = vmatprep.subr.bf16.mxu0 %v436_v5  ;;  %v12180_v16 = vld [vmem:[%s15290_s0 + $0x58] sm:$0xff]   ;;  %v12181_v17 = vld [vmem:[%s15290_s0 + $0x60] sm:$0xff]   ;;  %v12182_v18 = vld [vmem:[%s15290_s0 + $0x68] sm:$0xff]   ;;  %34 = vst.msk [vmem:[#allocation2] sm:$0xff] %vm33_vm3, %v15299_v34  ;;  %v12764_v42 = vmov 1983009808  }
   0x6   :  { %11651 = vmatpush3.bf16.msra.mxu0 %v436_v5  ;;  %v12183_v19 = vld [vmem:[%s15290_s0 + $0x70] sm:$0xff]   ;;  %v12184_v20 = vld [vmem:[%s15290_s0 + $0x78] sm:$0xff]   ;;  %v12185_v21 = vld [vmem:[%s15290_s0 + $0x80] sm:$0xff]   ;;  %36 = vst.msk [vmem:[#allocation2 + $0x8] sm:$0x3] %vm35_vm4, %v15299_v34  ;;  %v857_v43 = vunpack.c.l.s4 %v12764_v42  ;;  %v13058_v62 = vsub.s32 0, %v13038_v40 }
   0x7   :  { %v12186_v22 = vld [vmem:[%s15290_s0 + $0x88] sm:$0xff]   ;;  %v12187_v23 = vld [vmem:[%s15290_s0 + $0x90] sm:$0xff]   ;;  %v12188_v24 = vld [vmem:[%s15290_s0 + $0x98] sm:$0xff]   ;;  %39 = vst.msk [vmem:[#allocation2 + $0x20] sm:$0xff] %vm33_vm3, %v15299_v34  ;;  %vm3995_vm7 = vcmask 1043459   ;;  %vm3997_vm8 = vcmask 1044484  }
   0x8   :  { %v12189_v25 = vld [vmem:[%s15290_s0 + $0xa0] sm:$0xff]   ;;  %v12190_v26 = vld [vmem:[%s15290_s0 + $0xa8] sm:$0xff]   ;;  %v12191_v27 = vld [vmem:[%s15290_s0 + $0xb0] sm:$0xff]   ;;  %40 = vst.msk [vmem:[#allocation2 + $0x28] sm:$0x3] %vm35_vm4, %v15299_v34  ;;  %v858_v44 = vunpack.c.0.s8 %v857_v43  ;;  %vm3999_vm9 = vcmask 1045509  }
   0x9   :  { %11653 = vmatmul.mubr.msk.bf16.vlgmr.msra.gmra.mrb[0].mxu0 %vm334_vm2, %v12170_v6  ;;  %v12192_v28 = vld [vmem:[%s15290_s0 + $0xb8] sm:$0xff]   ;;  %v12193_v29 = vld [vmem:[%s15290_s0 + $0xc0] sm:$0xff]   ;;  %v12194_v30 = vld [vmem:[%s15290_s0 + $0xc8] sm:$0xff]   ;;  %41 = vst.msk [vmem:[#allocation2 + $0x30] sm:$0xff] %vm33_vm3, %v15299_v34  ;;  %vm4001_vm10 = vcmask 1046534   ;;  %vm4003_vm11 = vcmask 1047559  }
   0xa   :  { %11656 = vmatprep.mubr.msk.bf16.mxu0 %vm334_vm2, %v12171_v7  ;;  %v12195_v31 = vld [vmem:[%s15290_s0 + $0xd0] sm:$0xff]   ;;  %v12196_v32 = vld [vmem:[%s15290_s0 + $0xd8] sm:$0xff]   ;;  %v12197_v33 = vld [vmem:[%s15290_s0 + $0xe0] sm:$0xff]   ;;  %42 = vst.msk [vmem:[#allocation2 + $0x38] sm:$0x3] %vm35_vm4, %v15299_v34  ;;  %v13050_v48 = vsub.s32 %v858_v44, %v13038_v40  ;;  %vm75_vm12 = vcmask 521216  }
   0xb   :  { %43 = vst.msk [vmem:[#allocation2 + $0x40] sm:$0xff] %vm33_vm3, %v15299_v34  ;;  %45 = vst.msk [vmem:[#allocation2 + $0x50] sm:$0xff] %vm33_vm3, %v15299_v34  ;;  %v12198_v35 = vld [vmem:[%s15290_s0 + $0xe8] sm:$0xff]   ;;  %v12199_v36 = vld [vmem:[%s15290_s0 + $0xf0] sm:$0xff]   ;;  %vm6577_vm13 = vcmask 519168   ;;  %vm6678_vm14 = vcmask 523264  }
   0xc   :  { %44 = vst.msk [vmem:[#allocation2 + $0x48] sm:$0x3] %vm35_vm4, %v15299_v34  ;;  %46 = vst.msk [vmem:[#allocation2 + $0x58] sm:$0x3] %vm35_vm4, %v15299_v34  ;;  %v12200_v37 = vld [vmem:[%s15290_s0 + $0xf8] sm:$0xff]   ;;  %v12201_v39 = vld [vmem:[%s15291_s3 + $0x10] sm:$0xff]  }
   0xd   :  { %47 = vst.msk [vmem:[#allocation2 + $0x60] sm:$0xff] %vm33_vm3, %v15299_v34  ;;  %49 = vst.msk [vmem:[#allocation2 + $0x70] sm:$0xff] %vm33_vm3, %v15299_v34  ;;  %11716 = vmatprep.subr.bf16.mxu1 %v12201_v39  ;;  %v12202_v41 = vld [vmem:[%s15291_s3 + $0x18] sm:$0xff]   ;;  %v13046_v45 = vld [vmem:[%s15292_s2] ss:$0 sm:$0xff] }
   0xe   :  { %48 = vst.msk [vmem:[#allocation2 + $0x68] sm:$0x3] %vm35_vm4, %v15299_v34  ;;  %50 = vst.msk [vmem:[#allocation2 + $0x78] sm:$0x3] %vm35_vm4, %v15299_v34  ;;  %11717 = vmatpush3.bf16.msra.mxu1 %v12201_v39 }
   0xf   :  { %51 = vst.msk [vmem:[#allocation2 + $0x80] sm:$0xff] %vm33_vm3, %v15299_v34  ;;  %53 = vst.msk [vmem:[#allocation2 + $0x90] sm:$0xff] %vm33_vm3, %v15299_v34  ;;  %11718 = vmatprep.subr.bf16.mxu1 %v12202_v41 }
  0x10   :  { %52 = vst.msk [vmem:[#allocation2 + $0x88] sm:$0x3] %vm35_vm4, %v15299_v34  ;;  %54 = vst.msk [vmem:[#allocation2 + $0x98] sm:$0x3] %vm35_vm4, %v15299_v34 }
  0x11   :  { %11657 = vmatmul.mubr.msk.bf16.gmra.mrb[4].mxu0 %vm334_vm2, %v12172_v8  ;;  %55 = vst.msk [vmem:[#allocation2 + $0xa0] sm:$0xff] %vm33_vm3, %v15299_v34  ;;  %57 = vst.msk [vmem:[#allocation2 + $0xb0] sm:$0xff] %vm33_vm3, %v15299_v34 }
  0x12   :  { %11660 = vmatprep.mubr.msk.bf16.mxu0 %vm334_vm2, %v12173_v9  ;;  %56 = vst.msk [vmem:[#allocation2 + $0xa8] sm:$0x3] %vm35_vm4, %v15299_v34  ;;  %58 = vst.msk [vmem:[#allocation2 + $0xb8] sm:$0x3] %vm35_vm4, %v15299_v34  ;;  %11719 = vmatpush3.bf16.msra.mxu1 %v12202_v41 }
  0x13   :  { %59 = vst.msk [vmem:[#allocation2 + $0xc0] sm:$0xff] %vm33_vm3, %v15299_v34  ;;  %61 = vst.msk [vmem:[#allocation2 + $0xd0] sm:$0xff] %vm33_vm3, %v15299_v34 }
  0x14   :  { %60 = vst.msk [vmem:[#allocation2 + $0xc8] sm:$0x3] %vm35_vm4, %v15299_v34  ;;  %62 = vst.msk [vmem:[#allocation2 + $0xd8] sm:$0x3] %vm35_vm4, %v15299_v34 }
  0x15   :  { %63 = vst.msk [vmem:[#allocation2 + $0xe0] sm:$0xff] %vm33_vm3, %v15299_v34  ;;  %65 = vst.msk [vmem:[#allocation2 + $0xf0] sm:$0xff] %vm33_vm3, %v15299_v34 }
  0x16   :  { %64 = vst.msk [vmem:[#allocation2 + $0xe8] sm:$0x3] %vm35_vm4, %v15299_v34  ;;  %66 = vst.msk [vmem:[#allocation2 + $0xf8] sm:$0x3] %vm35_vm4, %v15299_v34 }
  0x17   :  { %67 = vst.msk [vmem:[#allocation2 + $0x100] sm:$0xff] %vm33_vm3, %v15299_v34  ;;  %69 = vst.msk [vmem:[#allocation2 + $0x110] sm:$0xff] %vm33_vm3, %v15299_v34 }
  0x18   :  { %68 = vst.msk [vmem:[#allocation2 + $0x108] sm:$0x3] %vm35_vm4, %v15299_v34  ;;  %70 = vst.msk [vmem:[#allocation2 + $0x118] sm:$0x3] %vm35_vm4, %v15299_v34 }
  0x19   :  { %11661 = vmatmul.mubr.msk.bf16.gmra.mrb[8].mxu0 %vm334_vm2, %v12174_v10  ;;  %71 = vst.msk [vmem:[#allocation2 + $0x120] sm:$0xff] %vm33_vm3, %v15299_v34  ;;  %73 = vst.msk [vmem:[#allocation2 + $0x130] sm:$0xff] %vm33_vm3, %v15299_v34 }
  0x1a   :  { %11664 = vmatprep.mubr.msk.bf16.mxu0 %vm334_vm2, %v12175_v11  ;;  %72 = vst.msk [vmem:[#allocation2 + $0x128] sm:$0x3] %vm35_vm4, %v15299_v34  ;;  %74 = vst.msk [vmem:[#allocation2 + $0x138] sm:$0x3] %vm35_vm4, %v15299_v34 }
  0x1b   :  { %88 = vst [vmem:[#allocation4] sm:$0xf] %v15299_v34  ;;  %89 = vst [vmem:[#allocation4 + $0x4] sm:$0xf] %v15299_v34 }
  0x1c   :  { %90 = vst [vmem:[#allocation4 + $0x8] sm:$0xf] %v15299_v34  ;;  %91 = vst [vmem:[#allocation4 + $0xc] sm:$0xf] %v15299_v34 }
  0x1d   :  { %92 = vst [vmem:[#allocation4 + $0x10] sm:$0xf] %v15299_v34  ;;  %93 = vst [vmem:[#allocation4 + $0x14] sm:$0xf] %v15299_v34 }
  0x1e   :  { %94 = vst [vmem:[#allocation4 + $0x18] sm:$0xf] %v15299_v34  ;;  %95 = vst [vmem:[#allocation4 + $0x1c] sm:$0xf] %v15299_v34 }
  0x1f   :  { %15303 = vst [vmem:[#allocation5_spill] sm:$0xff] %v13038_v40 }
  0x21   :  { %11665 = vmatmul.mubr.msk.bf16.gmra.mrb[12].mxu0 %vm334_vm2, %v12176_v12 }
  0x22   :  { %11668 = vmatprep.mubr.msk.bf16.mxu0 %vm334_vm2, %v12177_v13 }
  0x29   :  { %11669 = vmatmul.mubr.msk.bf16.gmra.mrb[16].mxu0 %vm334_vm2, %v12178_v14 }
  0x2a   :  { %11672 = vmatprep.mubr.msk.bf16.mxu0 %vm334_vm2, %v12179_v15 }
  0x31   :  { %11673 = vmatmul.mubr.msk.bf16.gmra.mrb[20].mxu0 %vm334_vm2, %v12180_v16 }
  0x32   :  { %11676 = vmatprep.mubr.msk.bf16.mxu0 %vm334_vm2, %v12181_v17 }
  0x39   :  { %11677 = vmatmul.mubr.msk.bf16.gmra.mrb[24].mxu0 %vm334_vm2, %v12182_v18 }
  0x3a   :  { %11680 = vmatprep.mubr.msk.bf16.mxu0 %vm334_vm2, %v12183_v19 }
  0x41   :  { %11681 = vmatmul.mubr.msk.bf16.gmra.mrb[28].mxu0 %vm334_vm2, %v12184_v20 }
  0x42   :  { %11684 = vmatprep.mubr.msk.bf16.mxu0 %vm334_vm2, %v12185_v21 }
  0x49   :  { %11685 = vmatmul.mubr.msk.bf16.gmra.mrb[32].mxu0 %vm334_vm2, %v12186_v22 }
  0x4a   :  { %11688 = vmatprep.mubr.msk.bf16.mxu0 %vm334_vm2, %v12187_v23 }
  0x51   :  { %11689 = vmatmul.mubr.msk.bf16.gmra.mrb[36].mxu0 %vm334_vm2, %v12188_v24 }
  0x52   :  { %11692 = vmatprep.mubr.msk.bf16.mxu0 %vm334_vm2, %v12189_v25 }
  0x59   :  { %11693 = vmatmul.mubr.msk.bf16.gmra.mrb[40].mxu0 %vm334_vm2, %v12190_v26 }
  0x5a   :  { %11696 = vmatprep.mubr.msk.bf16.mxu0 %vm334_vm2, %v12191_v27 }
  0x61   :  { %11697 = vmatmul.mubr.msk.bf16.gmra.mrb[44].mxu0 %vm334_vm2, %v12192_v28 }
  0x62   :  { %11700 = vmatprep.mubr.msk.bf16.mxu0 %vm334_vm2, %v12193_v29 }
  0x69   :  { %11701 = vmatmul.mubr.msk.bf16.gmra.mrb[48].mxu0 %vm334_vm2, %v12194_v30 }
  0x6a   :  { %11704 = vmatprep.mubr.msk.bf16.mxu0 %vm334_vm2, %v12195_v31 }
  0x71   :  { %11705 = vmatmul.mubr.msk.bf16.gmra.mrb[52].mxu0 %vm334_vm2, %v12196_v32 }
  0x72   :  { %11708 = vmatprep.mubr.msk.bf16.mxu0 %vm334_vm2, %v12197_v33 }
  0x79   :  { %11709 = vmatmul.mubr.msk.bf16.gmra.mrb[56].mxu0 %vm334_vm2, %v12198_v35 }
  0x7a   :  { %11712 = vmatprep.mubr.msk.bf16.mxu0 %vm334_vm2, %v12199_v36 }
  0x81   :  { %11713 = vmatmul.mubr.msk.bf16.gmra.mrb[60].mxu0 %vm334_vm2, %v12200_v37 }
  0xdc   :  { %v11654_v46 = vpop.f32.mrb[0].mxu0 }
  0xdd   :  { %v481_v47 = vadd.f32 %v11654_v46, %v13046_v45  ;;  %v472_v49 = vpop.f32.mrb[1].mxu0 }
  0xde   :  { %v473_v50 = vadd.f32 %v13046_v45, %v472_v49  ;;  %v11655_v51 = vpop.f32.mrb[2].mxu0 }
  0xdf   :  { %v729_v52 = vmax.f32 %v481_v47, 0.0  ;;  %v484_v53 = vadd.f32 %v11655_v51, %v13046_v45  ;;  %v475_v54 = vpop.f32.mrb[3].mxu0 }
  0xe0   :  { %v727_v55 = vmax.f32 %v473_v50, 0.0  ;;  %v476_v56 = vadd.f32 %v13046_v45, %v475_v54 }
  0xe1   :  { %v889_v57 = vcombine.high %v729_v52, %v729_v52  ;;  %v896_v58 = vrot.slane %v729_v52, %v13050_v48  ;;  %v730_v59 = vmax.f32 %v484_v53, 0.0 }
  0xe2   :  { %v855_v60 = vcombine.high %v727_v55, %v727_v55  ;;  %v862_v61 = vrot.slane %v727_v55, %v13050_v48  ;;  %v728_v63 = vmax.f32 %v476_v56, 0.0 }
  0xe3   :  { %v903_v0 = vrot.slane %v889_v57, %v13050_v48  ;;  %v904_v1 = vcombine.high %v896_v58, %v896_v58  ;;  %v10711_v2 = vrot.slane %v896_v58, 9  ;;  %v906_v3 = vcombine.high %v730_v59, %v730_v59 }
  0xe4   :  { %v869_v4 = vrot.slane %v855_v60, %v13050_v48  ;;  %v870_v5 = vcombine.high %v862_v61, %v862_v61  ;;  %v10703_v6 = vrot.slane %v862_v61, 9  ;;  %v913_v7 = vrot.slane %v730_v59, %v13050_v48  ;;  %v11658_v8 = vpop.f32.mrb[4].mxu0 }
  0xe5   :  { %v905_v9 = vcombine.high %v903_v0, %v903_v0  ;;  %v10712_v10 = vrot.slane %v904_v1, 9  ;;  %v10713_v11 = vrot.slane %v903_v0, 9  ;;  %v2975_v12 = vmax.f32 %v896_v58, %v10711_v2  ;;  %v488_v13 = vpop.f32.mrb[5].mxu0 }
  0xe6   :  { %v871_v14 = vcombine.high %v869_v4, %v869_v4  ;;  %v10704_v15 = vrot.slane %v870_v5, 9  ;;  %v10705_v16 = vrot.slane %v869_v4, 9  ;;  %v2967_v17 = vmax.f32 %v862_v61, %v10703_v6  ;;  %v11659_v18 = vpop.f32.mrb[6].mxu0 }
  0xe7   :  { %v10714_v19 = vrot.slane %v905_v9, 9  ;;  %v2976_v20 = vmax.f32 %v904_v1, %v10712_v10  ;;  %v2977_v21 = vmax.f32 %v903_v0, %v10713_v11  ;;  %v920_v22 = vrot.slane %v906_v3, %v13050_v48  ;;  %v13064_v23 = vpop.f32.mrb[7].mxu0 }
  0xe8   :  { %v10706_v24 = vrot.slane %v871_v14, 9  ;;  %v2968_v25 = vmax.f32 %v870_v5, %v10704_v15  ;;  %v2969_v26 = vmax.f32 %v869_v4, %v10705_v16  ;;  %v3223_v27 = vmax.f32 %v2967_v17, %v2975_v12 }
  0xe9   :  { %v2978_v28 = vmax.f32 %v905_v9, %v10714_v19  ;;  %v921_v29 = vcombine.high %v913_v7, %v913_v7  ;;  %v922_v30 = vcombine.high %v920_v22, %v920_v22  ;;  %v10715_v31 = vrot.slane %v913_v7, 9 }
  0xea   :  { %v2970_v32 = vmax.f32 %v871_v14, %v10706_v24  ;;  %v3224_v33 = vmax.f32 %v2968_v25, %v2976_v20  ;;  %v3225_v35 = vmax.f32 %v2969_v26, %v2977_v21  ;;  %v3482_v36 = vrot.slane %v3223_v27, %v13058_v62 }
  0xeb   :  { %v10716_v37 = vrot.slane %v921_v29, 9  ;;  %v10717_v38 = vrot.slane %v920_v22, 9  ;;  %v10718_v39 = vrot.slane %v922_v30, 9  ;;  %v2979_v41 = vmax.f32 %v913_v7, %v10715_v31 }
  0xec   :  { %v3226_v42 = vmax.f32 %v2970_v32, %v2978_v28  ;;  %v3486_v43 = vrot.slane %v3224_v33, %v13058_v62  ;;  %v3490_v44 = vrot.slane %v3225_v35, %v13058_v62  ;;  %v872_v46 = vcombine.high %v728_v63, %v728_v63  ;;  %v13069_v47 = vpop.f32.mrb[8].mxu0 }
  0xed   :  { %v2980_v49 = vmax.f32 %v921_v29, %v10716_v37  ;;  %v2981_v50 = vmax.f32 %v920_v22, %v10717_v38  ;;  %v2982_v51 = vmax.f32 %v922_v30, %v10718_v39  ;;  %v879_v52 = vrot.slane %v728_v63, %v13050_v48  ;;  %v13072_v53 = vpop.f32.mrb[9].mxu0 }
  0xee   :  { %v3494_v54 = vrot.slane %v3226_v42, %v13058_v62  ;;  %v3992_v55 = vsel %vm3991_vm5, %v3486_v43, %v3482_v36  ;;  %v886_v56 = vrot.slane %v872_v46, %v13050_v48  ;;  %v497_v57 = vadd.f32 %v11658_v8, %v13046_v45  ;;  %v13078_v58 = vpop.f32.mrb[10].mxu0 }
  0xef   :  { %v3994_v59 = vsel %vm3993_vm6, %v3490_v44, %v3992_v55  ;;  %v887_v60 = vcombine.high %v879_v52, %v879_v52  ;;  %v10707_v61 = vrot.slane %v879_v52, 9  ;;  %v489_v63 = vadd.f32 %v13046_v45, %v488_v13  ;;  %v13082_v0 = vpop.f32.mrb[11].mxu0 }
  0xf0   :  { %v888_v1 = vcombine.high %v886_v56, %v886_v56  ;;  %v10709_v2 = vrot.slane %v886_v56, 9  ;;  %v3996_v3 = vsel %vm3995_vm7, %v3494_v54, %v3994_v59  ;;  %v733_v4 = vmax.f32 %v497_v57, 0.0 }
  0xf1   :  { %v10708_v5 = vrot.slane %v887_v60, 9  ;;  %v2971_v6 = vmax.f32 %v879_v52, %v10707_v61  ;;  %v731_v7 = vmax.f32 %v489_v63, 0.0  ;;  %v500_v8 = vadd.f32 %v11659_v18, %v13046_v45 }
  0xf2   :  { %v10710_v9 = vrot.slane %v888_v1, 9  ;;  %v2973_v10 = vmax.f32 %v886_v56, %v10709_v2  ;;  %v957_v11 = vcombine.high %v733_v4, %v733_v4  ;;  %v964_v12 = vrot.slane %v733_v4, %v13050_v48 }
  0xf3   :  { %v2972_v14 = vmax.f32 %v887_v60, %v10708_v5  ;;  %v3227_v13 = vmax.f32 %v2971_v6, %v2979_v41  ;;  %v923_v15 = vcombine.high %v731_v7, %v731_v7  ;;  %v930_v16 = vrot.slane %v731_v7, %v13050_v48 }
  0xf4   :  { %v2974_v17 = vmax.f32 %v888_v1, %v10710_v9  ;;  %v3229_v19 = vmax.f32 %v2973_v10, %v2981_v50  ;;  %v971_v20 = vrot.slane %v957_v11, %v13050_v48  ;;  %v972_v21 = vcombine.high %v964_v12, %v964_v12  ;;  %v13089_v22 = vpop.f32.mrb[12].mxu0 }
  0xf5   :  { %v3228_v24 = vmax.f32 %v2972_v14, %v2980_v49  ;;  %v3498_v18 = vrot.slane %v3227_v13, %v13058_v62  ;;  %v10727_v25 = vrot.slane %v964_v12, 9  ;;  %v937_v26 = vrot.slane %v923_v15, %v13050_v48  ;;  %v13093_v27 = vpop.f32.mrb[13].mxu0 }
  0xf6   :  { %v3230_v28 = vmax.f32 %v2974_v17, %v2982_v51  ;;  %v3506_v29 = vrot.slane %v3229_v19, %v13058_v62  ;;  %v973_v30 = vcombine.high %v971_v20, %v971_v20  ;;  %v10728_v31 = vrot.slane %v972_v21, 9  ;;  %v13096_v32 = vpop.f32.mrb[14].mxu0 }
  0xf7   :  { %v3502_v33 = vrot.slane %v3228_v24, %v13058_v62  ;;  %v3998_v35 = vsel %vm3997_vm8, %v3498_v18, %v3996_v3  ;;  %v10729_v36 = vrot.slane %v971_v20, 9  ;;  %v2991_v37 = vmax.f32 %v964_v12, %v10727_v25  ;;  %v13100_v38 = vpop.f32.mrb[15].mxu0 }
  0xf8   :  { %v3510_v39 = vrot.slane %v3230_v28, %v13058_v62  ;;  %v10730_v41 = vrot.slane %v973_v30, 9  ;;  %v2992_v42 = vmax.f32 %v972_v21, %v10728_v31  ;;  %v938_v43 = vcombine.high %v930_v16, %v930_v16 }
  0xf9   :  { %v4000_v44 = vsel %vm3999_vm9, %v3502_v33, %v3998_v35  ;;  %v2993_v46 = vmax.f32 %v971_v20, %v10729_v36  ;;  %v939_v49 = vcombine.high %v937_v26, %v937_v26  ;;  %v10719_v50 = vrot.slane %v930_v16, 9 }
  0xfa   :  { %v4002_v51 = vsel %vm4001_vm10, %v3506_v29, %v4000_v44  ;;  %v2994_v52 = vmax.f32 %v973_v30, %v10730_v41  ;;  %v10720_v54 = vrot.slane %v938_v43, 9  ;;  %v10721_v55 = vrot.slane %v937_v26, 9 }
  0xfb   :  { %v4004_v56 = vsel %vm4003_vm11, %v3510_v39, %v4002_v51  ;;  %v10722_v57 = vrot.slane %v939_v49, 9  ;;  %v2983_v59 = vmax.f32 %v930_v16, %v10719_v50  ;;  %v734_v60 = vmax.f32 %v500_v8, 0.0 }
  0xfc   :  { %4127 = vst.msk [vmem:[#allocation2 + $0x11] sm:$0xff] %vm33_vm3, %v4004_v56  ;;  %v2984_v61 = vmax.f32 %v938_v43, %v10720_v54  ;;  %v2985_v63 = vmax.f32 %v937_v26, %v10721_v55  ;;  %v492_v1 = vadd.f32 %v13046_v45, %v13064_v23  ;;  %v513_v2 = vadd.f32 %v13069_v47, %v13046_v45  ;;  %v13111_v3 = vpop.f32.mrb[16].mxu0 }
  0xfd   :  { %v2986_v4 = vmax.f32 %v939_v49, %v10722_v57  ;;  %v3231_v5 = vmax.f32 %v2983_v59, %v2991_v37  ;;  %v974_v6 = vcombine.high %v734_v60, %v734_v60  ;;  %v981_v7 = vrot.slane %v734_v60, %v13050_v48  ;;  %v13114_v9 = vpop.f32.mrb[17].mxu0 }
  0xfe   :  { %v3232_v8 = vmax.f32 %v2984_v61, %v2992_v42  ;;  %v3233_v10 = vmax.f32 %v2985_v63, %v2993_v46  ;;  %v732_v11 = vmax.f32 %v492_v1, 0.0  ;;  %v737_v12 = vmax.f32 %v513_v2, 0.0  ;;  %v13116_v14 = vpop.f32.mrb[18].mxu0 }
  0xff   :  { %v3234_v13 = vmax.f32 %v2986_v4, %v2994_v52  ;;  %v3514_v23 = vrot.slane %v3231_v5, %v13058_v62  ;;  %v988_v47 = vrot.slane %v974_v6, %v13050_v48  ;;  %v989_v15 = vcombine.high %v981_v7, %v981_v7  ;;  %v13120_v16 = vpop.f32.mrb[19].mxu0 }
 0x100   :  { %v3518_v17 = vrot.slane %v3232_v8, %v13058_v62  ;;  %v3522_v19 = vrot.slane %v3233_v10, %v13058_v62  ;;  %v10731_v20 = vrot.slane %v981_v7, 9  ;;  %v940_v21 = vcombine.high %v732_v11, %v732_v11 }
 0x101   :  { %v3526_v24 = vrot.slane %v3234_v13, %v13058_v62  ;;  %v990_v18 = vcombine.high %v988_v47, %v988_v47  ;;  %v10732_v25 = vrot.slane %v989_v15, 9  ;;  %v10733_v26 = vrot.slane %v988_v47, 9 }
 0x102   :  { %v4005_v28 = vsel %vm3991_vm5, %v3518_v17, %v3514_v23  ;;  %v2995_v29 = vmax.f32 %v981_v7, %v10731_v20  ;;  %v947_v30 = vrot.slane %v732_v11, %v13050_v48  ;;  %v954_v31 = vrot.slane %v940_v21, %v13050_v48 }
 0x103   :  { %v4006_v33 = vsel %vm3993_vm6, %v3522_v19, %v4005_v28  ;;  %v10734_v35 = vrot.slane %v990_v18, 9  ;;  %v2996_v36 = vmax.f32 %v989_v15, %v10732_v25  ;;  %v2997_v37 = vmax.f32 %v988_v47, %v10733_v26 }
 0x104   :  { %v955_v39 = vcombine.high %v947_v30, %v947_v30  ;;  %v956_v41 = vcombine.high %v954_v31, %v954_v31  ;;  %v10723_v42 = vrot.slane %v947_v30, 9  ;;  %v10725_v43 = vrot.slane %v954_v31, 9  ;;  %v13129_v44 = vpop.f32.mrb[20].mxu0 }
 0x105   :  { %v2998_v46 = vmax.f32 %v990_v18, %v10734_v35  ;;  %v4007_v49 = vsel %vm3995_vm7, %v3526_v24, %v4006_v33  ;;  %v1025_v50 = vcombine.high %v737_v12, %v737_v12  ;;  %v1032_v51 = vrot.slane %v737_v12, %v13050_v48  ;;  %v13133_v52 = vpop.f32.mrb[21].mxu0 }
 0x106   :  { %v10724_v54 = vrot.slane %v955_v39, 9  ;;  %v10726_v55 = vrot.slane %v956_v41, 9  ;;  %v2987_v56 = vmax.f32 %v947_v30, %v10723_v42  ;;  %v2989_v57 = vmax.f32 %v954_v31, %v10725_v43  ;;  %v13135_v59 = vpop.f32.mrb[22].mxu0 }
 0x107   :  { %v1039_v60 = vrot.slane %v1025_v50, %v13050_v48  ;;  %v1040_v61 = vcombine.high %v1032_v51, %v1032_v51  ;;  %v10743_v63 = vrot.slane %v1032_v51, 9  ;;  %v505_v1 = vadd.f32 %v13046_v45, %v13072_v53  ;;  %v13140_v2 = vpop.f32.mrb[23].mxu0 }
 0x108   :  { %v2988_v4 = vmax.f32 %v955_v39, %v10724_v54  ;;  %v2990_v5 = vmax.f32 %v956_v41, %v10726_v55  ;;  %v3235_v6 = vmax.f32 %v2987_v56, %v2995_v29  ;;  %v3237_v7 = vmax.f32 %v2989_v57, %v2997_v37 }
 0x109   :  { %v1041_v8 = vcombine.high %v1039_v60, %v1039_v60  ;;  %v10744_v10 = vrot.slane %v1040_v61, 9  ;;  %v10745_v11 = vrot.slane %v1039_v60, 9  ;;  %v3007_v12 = vmax.f32 %v1032_v51, %v10743_v63 }
 0x10a   :  { %v3236_v13 = vmax.f32 %v2988_v4, %v2996_v36  ;;  %v3238_v23 = vmax.f32 %v2990_v5, %v2998_v46  ;;  %v3530_v47 = vrot.slane %v3235_v6, %v13058_v62  ;;  %v3538_v15 = vrot.slane %v3237_v7, %v13058_v62 }
 0x10b   :  { %v10746_v17 = vrot.slane %v1041_v8, 9  ;;  %v3008_v19 = vmax.f32 %v1040_v61, %v10744_v10  ;;  %v3009_v20 = vmax.f32 %v1039_v60, %v10745_v11  ;;  %v735_v53 = vmax.f32 %v505_v1, 0.0 }
 0x10c   :  { %v3534_v21 = vrot.slane %v3236_v13, %v13058_v62  ;;  %v3542_v24 = vrot.slane %v3238_v23, %v13058_v62  ;;  %v4008_v18 = vsel %vm3997_vm8, %v3530_v47, %v4007_v49  ;;  %v516_v25 = vadd.f32 %v13078_v58, %v13046_v45  ;;  %v13149_v26 = vpop.f32.mrb[24].mxu0 }
 0x10d   :  { %v3010_v28 = vmax.f32 %v1041_v8, %v10746_v17  ;;  %v991_v29 = vcombine.high %v735_v53, %v735_v53  ;;  %v998_v30 = vrot.slane %v735_v53, %v13050_v48  ;;  %v508_v31 = vadd.f32 %v13046_v45, %v13082_v0  ;;  %v13154_v33 = vpop.f32.mrb[25].mxu0 }
 0x10e   :  { %v4009_v35 = vsel %vm3999_vm9, %v3534_v21, %v4008_v18  ;;  %v738_v36 = vmax.f32 %v516_v25, 0.0  ;;  %v529_v37 = vadd.f32 %v13089_v22, %v13046_v45  ;;  %v13161_v58 = vadd.f32 %v13046_v45, %v13093_v27  ;;  %v13163_v39 = vpop.f32.mrb[26].mxu0 }
 0x10f   :  { %v4010_v41 = vsel %vm4001_vm10, %v3538_v15, %v4009_v35  ;;  %v1005_v42 = vrot.slane %v991_v29, %v13050_v48  ;;  %v1006_v43 = vcombine.high %v998_v30, %v998_v30  ;;  %v10735_v0 = vrot.slane %v998_v30, 9  ;;  %v13167_v46 = vpop.f32.mrb[27].mxu0 }
 0x110   :  { %v4011_v49 = vsel %vm4003_vm11, %v3542_v24, %v4010_v41  ;;  %v1042_v50 = vcombine.high %v738_v36, %v738_v36  ;;  %v1049_v51 = vrot.slane %v738_v36, %v13050_v48  ;;  %v736_v22 = vmax.f32 %v508_v31, 0.0 }
 0x111   :  { %4128 = vst.msk [vmem:[#allocation2 + $0x21] sm:$0xff] %vm33_vm3, %v4011_v49  ;;  %v1007_v27 = vcombine.high %v1005_v42, %v1005_v42  ;;  %v10736_v54 = vrot.slane %v1006_v43, 9  ;;  %v10737_v55 = vrot.slane %v1005_v42, 9  ;;  %v2999_v56 = vmax.f32 %v998_v30, %v10735_v0 }
 0x112   :  { %v1056_v57 = vrot.slane %v1042_v50, %v13050_v48  ;;  %v1057_v60 = vcombine.high %v1049_v51, %v1049_v51  ;;  %v10747_v61 = vrot.slane %v1049_v51, 9  ;;  %v1008_v63 = vcombine.high %v736_v22, %v736_v22 }
 0x113   :  { %v10738_v1 = vrot.slane %v1007_v27, 9  ;;  %v3000_v4 = vmax.f32 %v1006_v43, %v10736_v54  ;;  %v3001_v5 = vmax.f32 %v1005_v42, %v10737_v55  ;;  %v3239_v6 = vmax.f32 %v2999_v56, %v3007_v12 }
 0x114   :  { %v1058_v7 = vcombine.high %v1056_v57, %v1056_v57  ;;  %v10748_v8 = vrot.slane %v1057_v60, 9  ;;  %v10749_v10 = vrot.slane %v1056_v57, 9  ;;  %v3011_v11 = vmax.f32 %v1049_v51, %v10747_v61  ;;  %v13173_v13 = vpop.f32.mrb[28].mxu0 }
 0x115   :  { %v3002_v23 = vmax.f32 %v1007_v27, %v10738_v1  ;;  %v3240_v47 = vmax.f32 %v3000_v4, %v3008_v19  ;;  %v3241_v15 = vmax.f32 %v3001_v5, %v3009_v20  ;;  %v3546_v17 = vrot.slane %v3239_v6, %v13058_v62  ;;  %v13176_v53 = vpop.f32.mrb[29].mxu0 }
 0x116   :  { %v10750_v21 = vrot.slane %v1058_v7, 9  ;;  %v3012_v24 = vmax.f32 %v1057_v60, %v10748_v8  ;;  %v3013_v18 = vmax.f32 %v1056_v57, %v10749_v10  ;;  %v1015_v25 = vrot.slane %v736_v22, %v13050_v48  ;;  %v13179_v29 = vpop.f32.mrb[30].mxu0 }
 0x117   :  { %v3242_v12 = vmax.f32 %v3002_v23, %v3010_v28  ;;  %v3550_v30 = vrot.slane %v3240_v47, %v13058_v62  ;;  %v3554_v31 = vrot.slane %v3241_v15, %v13058_v62  ;;  %v1022_v35 = vrot.slane %v1008_v63, %v13050_v48  ;;  %v13184_v19 = vpop.f32.mrb[31].mxu0 }
 0x118   :  { %v3014_v20 = vmax.f32 %v1058_v7, %v10750_v21  ;;  %v1023_v36 = vcombine.high %v1015_v25, %v1015_v25  ;;  %v10739_v41 = vrot.slane %v1015_v25, 9  ;;  %v741_v42 = vmax.f32 %v529_v37, 0.0 }
 0x119   :  { %v3558_v43 = vrot.slane %v3242_v12, %v13058_v62  ;;  %v4012_v0 = vsel %vm3991_vm5, %v3550_v30, %v3546_v17  ;;  %v1024_v49 = vcombine.high %v1022_v35, %v1022_v35  ;;  %v10741_v50 = vrot.slane %v1022_v35, 9 }
 0x11a   :  { %v4013_v28 = vsel %vm3993_vm6, %v3554_v31, %v4012_v0  ;;  %v10740_v51 = vrot.slane %v1023_v36, 9  ;;  %v3003_v22 = vmax.f32 %v1015_v25, %v10739_v41  ;;  %v1093_v27 = vcombine.high %v741_v42, %v741_v42 }
 0x11b   :  { %v10742_v54 = vrot.slane %v1024_v49, 9  ;;  %v3005_v55 = vmax.f32 %v1022_v35, %v10741_v50  ;;  %v4014_v56 = vsel %vm3995_vm7, %v3558_v43, %v4013_v28  ;;  %v1100_v57 = vrot.slane %v741_v42, %v13050_v48 }
 0x11c   :  { %v3004_v60 = vmax.f32 %v1023_v36, %v10740_v51  ;;  %v3243_v61 = vmax.f32 %v3003_v22, %v3011_v11  ;;  %v1107_v37 = vrot.slane %v1093_v27, %v13050_v48  ;;  %v739_v63 = vmax.f32 %v13161_v58, 0.0  ;;  %v13193_v1 = vpop.f32.mrb[32].mxu0 }
 0x11d   :  { %v3006_v4 = vmax.f32 %v1024_v49, %v10742_v54  ;;  %v3245_v5 = vmax.f32 %v3005_v55, %v3013_v18  ;;  %v1108_v6 = vcombine.high %v1100_v57, %v1100_v57  ;;  %v10759_v7 = vrot.slane %v1100_v57, 9  ;;  %v13195_v8 = vpop.f32.mrb[33].mxu0 }
 0x11e   :  { %v3244_v10 = vmax.f32 %v3004_v60, %v3012_v24  ;;  %v3562_v23 = vrot.slane %v3243_v61, %v13058_v62  ;;  %v1109_v47 = vcombine.high %v1107_v37, %v1107_v37  ;;  %v10761_v15 = vrot.slane %v1107_v37, 9  ;;  %v13198_v17 = vpop.f32.mrb[34].mxu0 }
 0x11f   :  { %v3246_v11 = vmax.f32 %v3006_v4, %v3014_v20  ;;  %v3570_v21 = vrot.slane %v3245_v5, %v13058_v62  ;;  %v10760_v25 = vrot.slane %v1108_v6, 9  ;;  %v3023_v58 = vmax.f32 %v1100_v57, %v10759_v7  ;;  %v13201_v12 = vpop.f32.mrb[35].mxu0 }
 0x120   :  { %v3566_v18 = vrot.slane %v3244_v10, %v13058_v62  ;;  %v4015_v30 = vsel %vm3997_vm8, %v3562_v23, %v4014_v56  ;;  %v10762_v31 = vrot.slane %v1109_v47, 9  ;;  %v3025_v35 = vmax.f32 %v1107_v37, %v10761_v15 }
 0x121   :  { %v3574_v24 = vrot.slane %v3246_v11, %v13058_v62  ;;  %v3024_v36 = vmax.f32 %v1108_v6, %v10760_v25  ;;  %v1059_v41 = vcombine.high %v739_v63, %v739_v63  ;;  %v1066_v42 = vrot.slane %v739_v63, %v13050_v48 }
 0x122   :  { %v4016_v20 = vsel %vm3999_vm9, %v3566_v18, %v4015_v30  ;;  %v3026_v43 = vmax.f32 %v1109_v47, %v10762_v31  ;;  %v532_v0 = vadd.f32 %v13096_v32, %v13046_v45  ;;  %v524_v49 = vadd.f32 %v13046_v45, %v13100_v38 }
 0x123   :  { %v4017_v50 = vsel %vm4001_vm10, %v3570_v21, %v4016_v20  ;;  %v1073_v28 = vrot.slane %v1059_v41, %v13050_v48  ;;  %v1074_v51 = vcombine.high %v1066_v42, %v1066_v42  ;;  %v10751_v22 = vrot.slane %v1066_v42, 9 }
 0x124   :  { %v4018_v27 = vsel %vm4003_vm11, %v3574_v24, %v4017_v50  ;;  %v742_v54 = vmax.f32 %v532_v0, 0.0  ;;  %v740_v55 = vmax.f32 %v524_v49, 0.0  ;;  %v545_v56 = vadd.f32 %v13111_v3, %v13046_v45  ;;  %v13217_v57 = vpop.f32.mrb[36].mxu0 }
 0x125   :  { %4129 = vst.msk [vmem:[#allocation2 + $0x31] sm:$0xff] %vm33_vm3, %v4018_v27  ;;  %v1075_v32 = vcombine.high %v1073_v28, %v1073_v28  ;;  %v10752_v60 = vrot.slane %v1074_v51, 9  ;;  %v10753_v38 = vrot.slane %v1073_v28, 9  ;;  %v3015_v61 = vmax.f32 %v1066_v42, %v10751_v22  ;;  %v13220_v37 = vpop.f32.mrb[37].mxu0 }
 0x126   :  { %v1110_v63 = vcombine.high %v742_v54, %v742_v54  ;;  %v1117_v4 = vrot.slane %v742_v54, %v13050_v48  ;;  %v1076_v5 = vcombine.high %v740_v55, %v740_v55  ;;  %v1083_v6 = vrot.slane %v740_v55, %v13050_v48  ;;  %v13224_v7 = vpop.f32.mrb[38].mxu0 }
 0x127   :  { %v10754_v10 = vrot.slane %v1075_v32, 9  ;;  %v3016_v3 = vmax.f32 %v1074_v51, %v10752_v60  ;;  %v3017_v23 = vmax.f32 %v1073_v28, %v10753_v38  ;;  %v3247_v47 = vmax.f32 %v3015_v61, %v3023_v58  ;;  %v13226_v15 = vpop.f32.mrb[39].mxu0 }
 0x128   :  { %v1124_v11 = vrot.slane %v1110_v63, %v13050_v48  ;;  %v1125_v21 = vcombine.high %v1117_v4, %v1117_v4  ;;  %v10763_v25 = vrot.slane %v1117_v4, 9  ;;  %v1090_v18 = vrot.slane %v1076_v5, %v13050_v48 }
 0x129   :  { %v3018_v30 = vmax.f32 %v1075_v32, %v10754_v10  ;;  %v3248_v31 = vmax.f32 %v3016_v3, %v3024_v36  ;;  %v3249_v24 = vmax.f32 %v3017_v23, %v3025_v35  ;;  %v3578_v41 = vrot.slane %v3247_v47, %v13058_v62 }
 0x12a   :  { %v1126_v42 = vcombine.high %v1124_v11, %v1124_v11  ;;  %v10764_v20 = vrot.slane %v1125_v21, 9  ;;  %v10765_v0 = vrot.slane %v1124_v11, 9  ;;  %v3027_v49 = vmax.f32 %v1117_v4, %v10763_v25 }
 0x12b   :  { %v3250_v50 = vmax.f32 %v3018_v30, %v3026_v43  ;;  %v3582_v58 = vrot.slane %v3248_v31, %v13058_v62  ;;  %v3586_v28 = vrot.slane %v3249_v24, %v13058_v62  ;;  %v1091_v51 = vcombine.high %v1083_v6, %v1083_v6 }
 0x12c   :  { %v10766_v22 = vrot.slane %v1126_v42, 9  ;;  %v3028_v27 = vmax.f32 %v1125_v21, %v10764_v20  ;;  %v3029_v54 = vmax.f32 %v1124_v11, %v10765_v0  ;;  %v1092_v55 = vcombine.high %v1090_v18, %v1090_v18  ;;  %v13233_v60 = vpop.f32.mrb[40].mxu0 }
 0x12d   :  { %v3590_v35 = vrot.slane %v3250_v50, %v13058_v62  ;;  %v4019_v36 = vsel %vm3991_vm5, %v3582_v58, %v3578_v41  ;;  %v10755_v32 = vrot.slane %v1083_v6, 9  ;;  %v10756_v38 = vrot.slane %v1091_v51, 9  ;;  %v13237_v61 = vpop.f32.mrb[41].mxu0 }
 0x12e   :  { %v4020_v43 = vsel %vm3993_vm6, %v3586_v28, %v4019_v36  ;;  %v3030_v63 = vmax.f32 %v1126_v42, %v10766_v22  ;;  %v10757_v4 = vrot.slane %v1090_v18, 9  ;;  %v10758_v5 = vrot.slane %v1092_v55, 9  ;;  %v13241_v11 = vpop.f32.mrb[42].mxu0 }
 0x12f   :  { %v3019_v10 = vmax.f32 %v1083_v6, %v10755_v32  ;;  %v3020_v3 = vmax.f32 %v1091_v51, %v10756_v38  ;;  %v4021_v23 = vsel %vm3995_vm7, %v3590_v35, %v4020_v43  ;;  %v745_v47 = vmax.f32 %v545_v56, 0.0  ;;  %v13254_v36 = vpop.f32.mrb[43].mxu0 }
 0x130   :  { %v3021_v21 = vmax.f32 %v1090_v18, %v10757_v4  ;;  %v3022_v25 = vmax.f32 %v1092_v55, %v10758_v5  ;;  %v537_v30 = vadd.f32 %v13046_v45, %v13114_v9  ;;  %v548_v31 = vadd.f32 %v13116_v14, %v13046_v45 }
 0x131   :  { %v3251_v24 = vmax.f32 %v3019_v10, %v3027_v49  ;;  %v3252_v41 = vmax.f32 %v3020_v3, %v3028_v27  ;;  %v1161_v42 = vcombine.high %v745_v47, %v745_v47  ;;  %v1168_v20 = vrot.slane %v745_v47, %v13050_v48 }
 0x132   :  { %v3253_v6 = vmax.f32 %v3021_v21, %v3029_v54  ;;  %v3254_v0 = vmax.f32 %v3022_v25, %v3030_v63  ;;  %v743_v50 = vmax.f32 %v537_v30, 0.0  ;;  %v746_v58 = vmax.f32 %v548_v31, 0.0 }
 0x133   :  { %v3594_v56 = vrot.slane %v3251_v24, %v13058_v62  ;;  %v3598_v18 = vrot.slane %v3252_v41, %v13058_v62  ;;  %v1175_v28 = vrot.slane %v1161_v42, %v13050_v48  ;;  %v1176_v51 = vcombine.high %v1168_v20, %v1168_v20 }
 0x134   :  { %v3602_v9 = vrot.slane %v3253_v6, %v13058_v62  ;;  %v3606_v14 = vrot.slane %v3254_v0, %v13058_v62  ;;  %v10775_v49 = vrot.slane %v1168_v20, 9  ;;  %v1127_v22 = vcombine.high %v743_v50, %v743_v50 }
 0x135   :  { %v4022_v27 = vsel %vm3997_vm8, %v3594_v56, %v4021_v23  ;;  %v1177_v55 = vcombine.high %v1175_v28, %v1175_v28  ;;  %v10776_v54 = vrot.slane %v1176_v51, 9  ;;  %v10777_v35 = vrot.slane %v1175_v28, 9 }
 0x136   :  { %v4023_v32 = vsel %vm3999_vm9, %v3598_v18, %v4022_v27  ;;  %v3039_v38 = vmax.f32 %v1168_v20, %v10775_v49  ;;  %v1134_v43 = vrot.slane %v743_v50, %v13050_v48  ;;  %v1141_v63 = vrot.slane %v1127_v22, %v13050_v48 }
 0x137   :  { %v4024_v4 = vsel %vm4001_vm10, %v3602_v9, %v4023_v32  ;;  %v10778_v5 = vrot.slane %v1177_v55, 9  ;;  %v3040_v10 = vmax.f32 %v1176_v51, %v10776_v54  ;;  %v3041_v3 = vmax.f32 %v1175_v28, %v10777_v35 }
 0x138   :  { %v4025_v47 = vsel %vm4003_vm11, %v3606_v14, %v4024_v4  ;;  %v1142_v23 = vcombine.high %v1134_v43, %v1134_v43  ;;  %v1143_v21 = vcombine.high %v1141_v63, %v1141_v63  ;;  %v10767_v25 = vrot.slane %v1134_v43, 9  ;;  %v4172_v4 = vld [vmem:[#allocation2 + $0x11] sm:$0xff] }
 0x139   :  { %4130 = vst.msk [vmem:[#allocation2 + $0x41] sm:$0xff] %vm33_vm3, %v4025_v47  ;;  %v3042_v30 = vmax.f32 %v1177_v55, %v10778_v5  ;;  %v10769_v31 = vrot.slane %v1141_v63, 9  ;;  %v1178_v24 = vcombine.high %v746_v58, %v746_v58  ;;  %v1185_v41 = vrot.slane %v746_v58, %v13050_v48  ;;  %v13266_v58 = vpop.f32.mrb[44].mxu0 }
 0x13a   :  { %v10768_v42 = vrot.slane %v1142_v23, 9  ;;  %v10770_v20 = vrot.slane %v1143_v21, 9  ;;  %v3031_v6 = vmax.f32 %v1134_v43, %v10767_v25  ;;  %v540_v0 = vadd.f32 %v13046_v45, %v13120_v16 }
 0x13b   :  { %v3033_v50 = vmax.f32 %v1141_v63, %v10769_v31  ;;  %v1192_v56 = vrot.slane %v1178_v24, %v13050_v48  ;;  %v1193_v18 = vcombine.high %v1185_v41, %v1185_v41  ;;  %v10779_v28 = vrot.slane %v1185_v41, 9  ;;  %v4171_v63 = vld [vmem:[#allocation2 + $0x1] sm:$0xff] }
 0x13c   :  { %v3032_v51 = vmax.f32 %v1142_v23, %v10768_v42  ;;  %v3034_v9 = vmax.f32 %v1143_v21, %v10770_v20  ;;  %v3255_v14 = vmax.f32 %v3031_v6, %v3039_v38  ;;  %v744_v49 = vmax.f32 %v540_v0, 0.0 }
 0x13d   :  { %v3257_v22 = vmax.f32 %v3033_v50, %v3041_v3  ;;  %v1194_v27 = vcombine.high %v1192_v56, %v1192_v56  ;;  %v10780_v55 = vrot.slane %v1193_v18, 9  ;;  %v10781_v54 = vrot.slane %v1192_v56, 9  ;;  %v13279_v50 = vpop.f32.mrb[45].mxu0 }
 0x13e   :  { %v3256_v35 = vmax.f32 %v3032_v51, %v3040_v10  ;;  %v3258_v32 = vmax.f32 %v3034_v9, %v3042_v30  ;;  %v3610_v43 = vrot.slane %v3255_v14, %v13058_v62  ;;  %v3043_v16 = vmax.f32 %v1185_v41, %v10779_v28 }
 0x13f   :  { %v3618_v5 = vrot.slane %v3257_v22, %v13058_v62  ;;  %v10782_v47 = vrot.slane %v1194_v27, 9  ;;  %v3044_v23 = vmax.f32 %v1193_v18, %v10780_v55  ;;  %v3045_v21 = vmax.f32 %v1192_v56, %v10781_v54 }
 0x140   :  { %v3614_v38 = vrot.slane %v3256_v35, %v13058_v62  ;;  %v3622_v3 = vrot.slane %v3258_v32, %v13058_v62  ;;  %v1144_v25 = vcombine.high %v744_v49, %v744_v49  ;;  %v1151_v31 = vrot.slane %v744_v49, %v13050_v48  ;;  %v13285_v49 = vpop.f32.mrb[46].mxu0 }
 0x141   :  { %v3046_v24 = vmax.f32 %v1194_v27, %v10782_v47  ;;  %v4187_v10 = vpack.c.bf16 %v4172_v4, %v4171_v63  ;;  %v561_v30 = vadd.f32 %v13129_v44, %v13046_v45  ;;  %v553_v41 = vadd.f32 %v13046_v45, %v13133_v52 }
 0x142   :  { %v4026_v42 = vsel %vm3991_vm5, %v3614_v38, %v3610_v43  ;;  %v1158_v20 = vrot.slane %v1144_v25, %v13050_v48  ;;  %v1159_v6 = vcombine.high %v1151_v31, %v1151_v31  ;;  %v10771_v0 = vrot.slane %v1151_v31, 9 }
 0x143   :  { %v4027_v56 = vsel %vm3993_vm6, %v3618_v5, %v4026_v42  ;;  %11720 = vmatprep.mubr.msk.bf16.mxu1 %vm33_vm3, %v4187_v10  ;;  %v749_v18 = vmax.f32 %v561_v30, 0.0  ;;  %v747_v28 = vmax.f32 %v553_v41, 0.0  ;;  %v564_v44 = vadd.f32 %v13135_v59, %v13046_v45  ;;  %v13292_v42 = vpop.f32.mrb[47].mxu0 }
 0x144   :  { %v1160_v51 = vcombine.high %v1158_v20, %v1158_v20  ;;  %v10772_v9 = vrot.slane %v1159_v6, 9  ;;  %v10773_v52 = vrot.slane %v1158_v20, 9  ;;  %v3035_v14 = vmax.f32 %v1151_v31, %v10771_v0 }
 0x145   :  { %v4028_v22 = vsel %vm3995_vm7, %v3622_v3, %v4027_v56  ;;  %v1229_v27 = vcombine.high %v749_v18, %v749_v18  ;;  %v1236_v55 = vrot.slane %v749_v18, %v13050_v48  ;;  %v1195_v54 = vcombine.high %v747_v28, %v747_v28 }
 0x146   :  { %v10774_v35 = vrot.slane %v1160_v51, 9  ;;  %v3036_v32 = vmax.f32 %v1159_v6, %v10772_v9  ;;  %v3037_v43 = vmax.f32 %v1158_v20, %v10773_v52  ;;  %v3259_v63 = vmax.f32 %v3035_v14, %v3043_v16 }
 0x147   :  { %v1243_v4 = vrot.slane %v1229_v27, %v13050_v48  ;;  %v1244_v5 = vcombine.high %v1236_v55, %v1236_v55  ;;  %v10791_v45 = vrot.slane %v1236_v55, 9  ;;  %v1202_v59 = vrot.slane %v747_v28, %v13050_v48 }
 0x148   :  { %v3038_v47 = vmax.f32 %v1160_v51, %v10774_v35  ;;  %v3260_v38 = vmax.f32 %v3036_v32, %v3044_v23  ;;  %v3261_v25 = vmax.f32 %v3037_v43, %v3045_v21  ;;  %v3626_v31 = vrot.slane %v3259_v63, %v13058_v62 }
 0x149   :  { %v1245_v3 = vcombine.high %v1243_v4, %v1243_v4  ;;  %v10792_v10 = vrot.slane %v1244_v5, 9  ;;  %v10793_v30 = vrot.slane %v1243_v4, 9  ;;  %v3055_v41 = vmax.f32 %v1236_v55, %v10791_v45 }
 0x14a   :  { %v3262_v6 = vmax.f32 %v3038_v47, %v3046_v24  ;;  %v3630_v16 = vrot.slane %v3260_v38, %v13058_v62  ;;  %v3634_v20 = vrot.slane %v3261_v25, %v13058_v62  ;;  %v4029_v0 = vsel %vm3997_vm8, %v3626_v31, %v4028_v22 }
 0x14b   :  { %v10794_v56 = vrot.slane %v1245_v3, 9  ;;  %v3056_v18 = vmax.f32 %v1244_v5, %v10792_v10  ;;  %v3057_v28 = vmax.f32 %v1243_v4, %v10793_v30  ;;  %v1209_v23 = vrot.slane %v1195_v54, %v13050_v48  ;;  %v13306_v4 = vld [vmem:[%s15292_s2] ss:$0 sm:$0xff] }
 0x14c   :  { %v3638_v21 = vrot.slane %v3262_v6, %v13058_v62  ;;  %v4030_v51 = vsel %vm3999_vm9, %v3630_v16, %v4029_v0  ;;  %v1210_v9 = vcombine.high %v1202_v59, %v1202_v59  ;;  %v10783_v52 = vrot.slane %v1202_v59, 9  ;;  %v13315_v0 = vpop.f32.mrb[48].mxu0 }
 0x14d   :  { %v4031_v14 = vsel %vm4001_vm10, %v3634_v20, %v4030_v51  ;;  %v3058_v24 = vmax.f32 %v1245_v3, %v10794_v56  ;;  %v1211_v27 = vcombine.high %v1209_v23, %v1209_v23  ;;  %v10785_v55 = vrot.slane %v1209_v23, 9 }
 0x14e   :  { %v4032_v35 = vsel %vm4003_vm11, %v3638_v21, %v4031_v14  ;;  %v10784_v32 = vrot.slane %v1210_v9, 9  ;;  %v3047_v22 = vmax.f32 %v1202_v59, %v10783_v52  ;;  %v750_v43 = vmax.f32 %v564_v44, 0.0 }
 0x14f   :  { %4131 = vst.msk [vmem:[#allocation2 + $0x51] sm:$0xff] %vm33_vm3, %v4032_v35  ;;  %v10786_v63 = vrot.slane %v1211_v27, 9  ;;  %v3049_v54 = vmax.f32 %v1209_v23, %v10785_v55  ;;  %v556_v5 = vadd.f32 %v13306_v4, %v13140_v2  ;;  %v577_v45 = vadd.f32 %v13306_v4, %v13149_v26 }
 0x150   :  { %v3048_v47 = vmax.f32 %v1210_v9, %v10784_v32  ;;  %v3263_v38 = vmax.f32 %v3047_v22, %v3055_v41  ;;  %v1246_v25 = vcombine.high %v750_v43, %v750_v43  ;;  %v1253_v44 = vrot.slane %v750_v43, %v13050_v48  ;;  %v13323_v32 = vpop.f32.mrb[49].mxu0 }
 0x151   :  { %v3050_v59 = vmax.f32 %v1211_v27, %v10786_v63  ;;  %v3265_v31 = vmax.f32 %v3049_v54, %v3057_v28  ;;  %v748_v3 = vmax.f32 %v556_v5, 0.0  ;;  %v753_v10 = vmax.f32 %v577_v45, 0.0 }
 0x152   :  { %v3264_v30 = vmax.f32 %v3048_v47, %v3056_v18  ;;  %v3642_v6 = vrot.slane %v3263_v38, %v13058_v62  ;;  %v1260_v16 = vrot.slane %v1246_v25, %v13050_v48  ;;  %v1261_v20 = vcombine.high %v1253_v44, %v1253_v44 }
 0x153   :  { %v3266_v2 = vmax.f32 %v3050_v59, %v3058_v24  ;;  %v3650_v26 = vrot.slane %v3265_v31, %v13058_v62  ;;  %v10795_v56 = vrot.slane %v1253_v44, 9  ;;  %v1212_v41 = vcombine.high %v748_v3, %v748_v3 }
 0x154   :  { %v3646_v23 = vrot.slane %v3264_v30, %v13058_v62  ;;  %v1262_v21 = vcombine.high %v1260_v16, %v1260_v16  ;;  %v10796_v51 = vrot.slane %v1261_v20, 9  ;;  %v10797_v28 = vrot.slane %v1260_v16, 9 }
 0x155   :  { %v3654_v9 = vrot.slane %v3266_v2, %v13058_v62  ;;  %v3059_v18 = vmax.f32 %v1253_v44, %v10795_v56  ;;  %v1219_v52 = vrot.slane %v748_v3, %v13050_v48  ;;  %v1226_v14 = vrot.slane %v1212_v41, %v13050_v48 }
 0x156   :  { %v4033_v27 = vsel %vm3991_vm5, %v3646_v23, %v3642_v6  ;;  %v10798_v55 = vrot.slane %v1262_v21, 9  ;;  %v3060_v24 = vmax.f32 %v1261_v20, %v10796_v51  ;;  %v3061_v35 = vmax.f32 %v1260_v16, %v10797_v28  ;;  %v13333_v20 = vpop.f32.mrb[50].mxu0 }
 0x157   :  { %v4034_v22 = vsel %vm3993_vm6, %v3650_v26, %v4033_v27  ;;  %v1227_v43 = vcombine.high %v1219_v52, %v1219_v52  ;;  %v1228_v63 = vcombine.high %v1226_v14, %v1226_v14  ;;  %v10787_v54 = vrot.slane %v1219_v52, 9 }
 0x158   :  { %v3062_v5 = vmax.f32 %v1262_v21, %v10798_v55  ;;  %v10789_v45 = vrot.slane %v1226_v14, 9  ;;  %v4035_v47 = vsel %vm3995_vm7, %v3654_v9, %v4034_v22  ;;  %v1297_v38 = vcombine.high %v753_v10, %v753_v10  ;;  %v4174_v22 = vld [vmem:[#allocation2 + $0x31] sm:$0xff] }
 0x159   :  { %v10788_v25 = vrot.slane %v1227_v43, 9  ;;  %v10790_v44 = vrot.slane %v1228_v63, 9  ;;  %v3051_v59 = vmax.f32 %v1219_v52, %v10787_v54  ;;  %v1304_v31 = vrot.slane %v753_v10, %v13050_v48  ;;  %v13337_v54 = vpop.f32.mrb[51].mxu0 }
 0x15a   :  { %v3053_v3 = vmax.f32 %v1226_v14, %v10789_v45  ;;  %v1311_v30 = vrot.slane %v1297_v38, %v13050_v48  ;;  %v569_v6 = vadd.f32 %v13306_v4, %v13154_v33  ;;  %v580_v16 = vadd.f32 %v13306_v4, %v13163_v39 }
 0x15b   :  { %v3052_v2 = vmax.f32 %v1227_v43, %v10788_v25  ;;  %v3054_v26 = vmax.f32 %v1228_v63, %v10790_v44  ;;  %v3267_v56 = vmax.f32 %v3051_v59, %v3059_v18  ;;  %v1312_v41 = vcombine.high %v1304_v31, %v1304_v31  ;;  %v4173_v25 = vld [vmem:[#allocation2 + $0x21] sm:$0xff] }
 0x15c   :  { %v3269_v23 = vmax.f32 %v3053_v3, %v3061_v35  ;;  %v1313_v21 = vcombine.high %v1311_v30, %v1311_v30  ;;  %v10807_v51 = vrot.slane %v1304_v31, 9  ;;  %v10809_v28 = vrot.slane %v1311_v30, 9 }
 0x15d   :  { %v3268_v10 = vmax.f32 %v3052_v2, %v3060_v24  ;;  %v3270_v9 = vmax.f32 %v3054_v26, %v3062_v5  ;;  %v3658_v52 = vrot.slane %v3267_v56, %v13058_v62  ;;  %v10808_v14 = vrot.slane %v1312_v41, 9 }
 0x15e   :  { %v3666_v33 = vrot.slane %v3269_v23, %v13058_v62  ;;  %v10810_v27 = vrot.slane %v1313_v21, 9  ;;  %v3071_v55 = vmax.f32 %v1304_v31, %v10807_v51  ;;  %v3073_v39 = vmax.f32 %v1311_v30, %v10809_v28 }
 0x15f   :  { %v3662_v18 = vrot.slane %v3268_v10, %v13058_v62  ;;  %v3670_v35 = vrot.slane %v3270_v9, %v13058_v62  ;;  %v4036_v43 = vsel %vm3997_vm8, %v3658_v52, %v4035_v47  ;;  %v3072_v63 = vmax.f32 %v1312_v41, %v10808_v14 }
 0x160   :  { %v3074_v24 = vmax.f32 %v1313_v21, %v10810_v27  ;;  %v751_v5 = vmax.f32 %v569_v6, 0.0  ;;  %v754_v45 = vmax.f32 %v580_v16, 0.0  ;;  %v572_v38 = vadd.f32 %v13306_v4, %v13167_v46 }
 0x161   :  { %v4037_v44 = vsel %vm3999_vm9, %v3662_v18, %v4036_v43  ;;  %v4188_v59 = vpack.c.bf16 %v4174_v22, %v4173_v25  ;;  %v593_v31 = vadd.f32 %v13306_v4, %v13173_v13  ;;  %v13349_v3 = vadd.f32 %v13306_v4, %v13176_v53 }
 0x162   :  { %v4038_v47 = vsel %vm4001_vm10, %v3666_v33, %v4037_v44  ;;  %v1263_v30 = vcombine.high %v751_v5, %v751_v5  ;;  %v1270_v6 = vrot.slane %v751_v5, %v13050_v48  ;;  %v1314_v16 = vcombine.high %v754_v45, %v754_v45 }
 0x163   :  { %v4039_v2 = vsel %vm4003_vm11, %v3670_v35, %v4038_v47  ;;  %v1321_v46 = vrot.slane %v754_v45, %v13050_v48  ;;  %v752_v26 = vmax.f32 %v572_v38, 0.0  ;;  %11721 = vmatmul.mubr.msk.bf16.vlgmr.msra.gmra.mrb[0].mxu1 %vm33_vm3, %v4188_v59  ;;  %v757_v56 = vmax.f32 %v593_v31, 0.0 }
 0x164   :  { %4132 = vst.msk [vmem:[#allocation2 + $0x61] sm:$0xff] %vm33_vm3, %v4039_v2  ;;  %v1277_v13 = vrot.slane %v1263_v30, %v13050_v48  ;;  %v1278_v53 = vcombine.high %v1270_v6, %v1270_v6  ;;  %v10799_v41 = vrot.slane %v1270_v6, 9  ;;  %v1328_v23 = vrot.slane %v1314_v16, %v13050_v48 }
 0x165   :  { %v1329_v21 = vcombine.high %v1321_v46, %v1321_v46  ;;  %v10811_v51 = vrot.slane %v1321_v46, 9  ;;  %v1280_v28 = vcombine.high %v752_v26, %v752_v26  ;;  %v1287_v10 = vrot.slane %v752_v26, %v13050_v48 }
 0x166   :  { %v1279_v9 = vcombine.high %v1277_v13, %v1277_v13  ;;  %v10800_v52 = vrot.slane %v1278_v53, 9  ;;  %v10801_v14 = vrot.slane %v1277_v13, 9  ;;  %v3063_v33 = vmax.f32 %v1270_v6, %v10799_v41 }
 0x167   :  { %v1330_v27 = vcombine.high %v1328_v23, %v1328_v23  ;;  %v10812_v22 = vrot.slane %v1329_v21, 9  ;;  %v10813_v18 = vrot.slane %v1328_v23, 9  ;;  %v3075_v35 = vmax.f32 %v1321_v46, %v10811_v51 }
 0x168   :  { %v10802_v43 = vrot.slane %v1279_v9, 9  ;;  %v3064_v5 = vmax.f32 %v1278_v53, %v10800_v52  ;;  %v3065_v45 = vmax.f32 %v1277_v13, %v10801_v14  ;;  %v3271_v38 = vmax.f32 %v3063_v33, %v3071_v55 }
 0x169   :  { %v10814_v25 = vrot.slane %v1330_v27, 9  ;;  %v3076_v44 = vmax.f32 %v1329_v21, %v10812_v22  ;;  %v3077_v59 = vmax.f32 %v1328_v23, %v10813_v18  ;;  %v1294_v31 = vrot.slane %v1280_v28, %v13050_v48 }
 0x16a   :  { %v3066_v47 = vmax.f32 %v1279_v9, %v10802_v43  ;;  %v3272_v30 = vmax.f32 %v3064_v5, %v3072_v63  ;;  %v3273_v16 = vmax.f32 %v3065_v45, %v3073_v39  ;;  %v3674_v2 = vrot.slane %v3271_v38, %v13058_v62 }
 0x16b   :  { %v3078_v26 = vmax.f32 %v1330_v27, %v10814_v25  ;;  %v1295_v6 = vcombine.high %v1287_v10, %v1287_v10  ;;  %v1296_v41 = vcombine.high %v1294_v31, %v1294_v31  ;;  %v10803_v34 = vrot.slane %v1287_v10, 9 }
 0x16c   :  { %v3274_v40 = vmax.f32 %v3066_v47, %v3074_v24  ;;  %v3678_v46 = vrot.slane %v3272_v30, %v13058_v62  ;;  %v3682_v13 = vrot.slane %v3273_v16, %v13058_v62  ;;  %v10805_v55 = vrot.slane %v1294_v31, 9 }
 0x16d   :  { %v10804_v53 = vrot.slane %v1295_v6, 9  ;;  %v10806_v21 = vrot.slane %v1296_v41, 9  ;;  %v3067_v23 = vmax.f32 %v1287_v10, %v10803_v34  ;;  %v1365_v51 = vcombine.high %v757_v56, %v757_v56  ;;  %v13370_v34 = vpop.f32.mrb[52].mxu0 }
 0x16e   :  { %v3686_v28 = vrot.slane %v3274_v40, %v13058_v62  ;;  %v4040_v39 = vsel %vm3991_vm5, %v3678_v46, %v3674_v2  ;;  %v3069_v63 = vmax.f32 %v1294_v31, %v10805_v55  ;;  %v1372_v9 = vrot.slane %v757_v56, %v13050_v48  ;;  %v13373_v38 = vpop.f32.mrb[53].mxu0 }
 0x16f   :  { %v4041_v52 = vsel %vm3993_vm6, %v3682_v13, %v4040_v39  ;;  %v3068_v14 = vmax.f32 %v1295_v6, %v10804_v53  ;;  %v3070_v24 = vmax.f32 %v1296_v41, %v10806_v21  ;;  %v3275_v33 = vmax.f32 %v3067_v23, %v3075_v35 }
 0x170   :  { %v3277_v27 = vmax.f32 %v3069_v63, %v3077_v59  ;;  %v4042_v22 = vsel %vm3995_vm7, %v3686_v28, %v4041_v52  ;;  %v1379_v18 = vrot.slane %v1365_v51, %v13050_v48  ;;  %v1380_v43 = vcombine.high %v1372_v9, %v1372_v9  ;;  %v13376_v59 = vpop.f32.mrb[54].mxu0 }
 0x171   :  { %v3276_v10 = vmax.f32 %v3068_v14, %v3076_v44  ;;  %v3278_v40 = vmax.f32 %v3070_v24, %v3078_v26  ;;  %v3690_v5 = vrot.slane %v3275_v33, %v13058_v62  ;;  %v10823_v45 = vrot.slane %v1372_v9, 9  ;;  %v13381_v2 = vpop.f32.mrb[55].mxu0 }
 0x172   :  { %v3698_v56 = vrot.slane %v3277_v27, %v13058_v62  ;;  %v1381_v25 = vcombine.high %v1379_v18, %v1379_v18  ;;  %v10824_v31 = vrot.slane %v1380_v43, 9  ;;  %v10825_v35 = vrot.slane %v1379_v18, 9 }
 0x173   :  { %v3694_v47 = vrot.slane %v3276_v10, %v13058_v62  ;;  %v3702_v30 = vrot.slane %v3278_v40, %v13058_v62  ;;  %v4043_v16 = vsel %vm3997_vm8, %v3690_v5, %v4042_v22  ;;  %v3087_v44 = vmax.f32 %v1372_v9, %v10823_v45 }
 0x174   :  { %v10826_v26 = vrot.slane %v1381_v25, 9  ;;  %v3088_v6 = vmax.f32 %v1380_v43, %v10824_v31  ;;  %v3089_v41 = vmax.f32 %v1379_v18, %v10825_v35  ;;  %v755_v46 = vmax.f32 %v13349_v3, 0.0 }
 0x175   :  { %v4044_v13 = vsel %vm3999_vm9, %v3694_v47, %v4043_v16  ;;  %v596_v55 = vadd.f32 %v13306_v4, %v13179_v29  ;;  %v588_v53 = vadd.f32 %v13306_v4, %v13184_v19  ;;  %v609_v21 = vadd.f32 %v13306_v4, %v13193_v1 }
 0x176   :  { %v4045_v23 = vsel %vm4001_vm10, %v3698_v56, %v4044_v13  ;;  %v3090_v51 = vmax.f32 %v1381_v25, %v10826_v26  ;;  %v1331_v28 = vcombine.high %v755_v46, %v755_v46  ;;  %v1338_v39 = vrot.slane %v755_v46, %v13050_v48 }
 0x177   :  { %v4046_v63 = vsel %vm4003_vm11, %v3702_v30, %v4045_v23  ;;  %v758_v3 = vmax.f32 %v596_v55, 0.0  ;;  %v756_v9 = vmax.f32 %v588_v53, 0.0  ;;  %v761_v52 = vmax.f32 %v609_v21, 0.0  ;;  %v13402_v30 = vpop.f32.mrb[56].mxu0 }
 0x178   :  { %4133 = vst.msk [vmem:[#allocation2 + $0x71] sm:$0xff] %vm33_vm3, %v4046_v63  ;;  %v1345_v29 = vrot.slane %v1331_v28, %v13050_v48  ;;  %v1346_v14 = vcombine.high %v1338_v39, %v1338_v39  ;;  %v10815_v19 = vrot.slane %v1338_v39, 9  ;;  %v601_v1 = vadd.f32 %v13306_v4, %v13195_v8  ;;  %v13404_v55 = vpop.f32.mrb[57].mxu0 }
 0x179   :  { %v1382_v24 = vcombine.high %v758_v3, %v758_v3  ;;  %v1389_v33 = vrot.slane %v758_v3, %v13050_v48  ;;  %v1348_v27 = vcombine.high %v756_v9, %v756_v9  ;;  %v1355_v22 = vrot.slane %v756_v9, %v13050_v48 }
 0x17a   :  { %v1347_v18 = vcombine.high %v1345_v29, %v1345_v29  ;;  %v10816_v43 = vrot.slane %v1346_v14, 9  ;;  %v10817_v10 = vrot.slane %v1345_v29, 9  ;;  %v3079_v40 = vmax.f32 %v1338_v39, %v10815_v19 }
 0x17b   :  { %v1396_v5 = vrot.slane %v1382_v24, %v13050_v48  ;;  %v1397_v45 = vcombine.high %v1389_v33, %v1389_v33  ;;  %v10827_v56 = vrot.slane %v1389_v33, 9  ;;  %v1362_v25 = vrot.slane %v1348_v27, %v13050_v48 }
 0x17c   :  { %v10818_v31 = vrot.slane %v1347_v18, 9  ;;  %v3080_v35 = vmax.f32 %v1346_v14, %v10816_v43  ;;  %v3081_v47 = vmax.f32 %v1345_v29, %v10817_v10  ;;  %v3279_v8 = vmax.f32 %v3079_v40, %v3087_v44  ;;  %v13411_v40 = vpop.f32.mrb[58].mxu0 }
 0x17d   :  { %v1398_v16 = vcombine.high %v1396_v5, %v1396_v5  ;;  %v10828_v26 = vrot.slane %v1397_v45, 9  ;;  %v10829_v46 = vrot.slane %v1396_v5, 9  ;;  %v3091_v13 = vmax.f32 %v1389_v33, %v10827_v56 }
 0x17e   :  { %v3082_v53 = vmax.f32 %v1347_v18, %v10818_v31  ;;  %v3280_v21 = vmax.f32 %v3080_v35, %v3088_v6  ;;  %v3281_v23 = vmax.f32 %v3081_v47, %v3089_v41  ;;  %v3706_v28 = vrot.slane %v3279_v8, %v13058_v62 }
 0x17f   :  { %v10830_v39 = vrot.slane %v1398_v16, 9  ;;  %v3092_v63 = vmax.f32 %v1397_v45, %v10828_v26  ;;  %v3093_v3 = vmax.f32 %v1396_v5, %v10829_v46  ;;  %v1363_v9 = vcombine.high %v1355_v22, %v1355_v22 }
 0x180   :  { %v3282_v14 = vmax.f32 %v3082_v53, %v3090_v51  ;;  %v3710_v44 = vrot.slane %v3280_v21, %v13058_v62  ;;  %v3714_v29 = vrot.slane %v3281_v23, %v13058_v62  ;;  %v1364_v19 = vcombine.high %v1362_v25, %v1362_v25 }
 0x181   :  { %v3094_v24 = vmax.f32 %v1398_v16, %v10830_v39  ;;  %v10819_v27 = vrot.slane %v1355_v22, 9  ;;  %v10820_v33 = vrot.slane %v1363_v9, 9  ;;  %v10821_v43 = vrot.slane %v1362_v25, 9 }
 0x182   :  { %v3718_v18 = vrot.slane %v3282_v14, %v13058_v62  ;;  %v4047_v6 = vsel %vm3991_vm5, %v3710_v44, %v3706_v28  ;;  %v10822_v41 = vrot.slane %v1364_v19, 9  ;;  %v1433_v10 = vcombine.high %v761_v52, %v761_v52  ;;  %v13420_v44 = vpop.f32.mrb[59].mxu0 }
 0x183   :  { %v4048_v5 = vsel %vm3993_vm6, %v3714_v29, %v4047_v6  ;;  %v3083_v51 = vmax.f32 %v1355_v22, %v10819_v27  ;;  %v3084_v45 = vmax.f32 %v1363_v9, %v10820_v33  ;;  %v3085_v56 = vmax.f32 %v1362_v25, %v10821_v43  ;;  %v4176_v27 = vld [vmem:[#allocation2 + $0x51] sm:$0xff] }
 0x184   :  { %v3086_v31 = vmax.f32 %v1364_v19, %v10822_v41  ;;  %v4049_v35 = vsel %vm3995_vm7, %v3718_v18, %v4048_v5  ;;  %v1440_v47 = vrot.slane %v761_v52, %v13050_v48  ;;  %v1447_v8 = vrot.slane %v1433_v10, %v13050_v48 }
 0x185   :  { %v3283_v16 = vmax.f32 %v3083_v51, %v3091_v13  ;;  %v3284_v26 = vmax.f32 %v3084_v45, %v3092_v63  ;;  %v3285_v46 = vmax.f32 %v3085_v56, %v3093_v3  ;;  %v759_v53 = vmax.f32 %v601_v1, 0.0  ;;  %v4175_v45 = vld [vmem:[#allocation2 + $0x41] sm:$0xff] }
 0x186   :  { %v3286_v21 = vmax.f32 %v3086_v31, %v3094_v24  ;;  %v1448_v23 = vcombine.high %v1440_v47, %v1440_v47  ;;  %v1449_v28 = vcombine.high %v1447_v8, %v1447_v8  ;;  %v10839_v39 = vrot.slane %v1440_v47, 9 }
 0x187   :  { %v3722_v14 = vrot.slane %v3283_v16, %v13058_v62  ;;  %v3726_v22 = vrot.slane %v3284_v26, %v13058_v62  ;;  %v3730_v25 = vrot.slane %v3285_v46, %v13058_v62  ;;  %v10841_v9 = vrot.slane %v1447_v8, 9 }
 0x188   :  { %v3734_v52 = vrot.slane %v3286_v21, %v13058_v62  ;;  %v10840_v29 = vrot.slane %v1448_v23, 9  ;;  %v10842_v13 = vrot.slane %v1449_v28, 9  ;;  %v3103_v63 = vmax.f32 %v1440_v47, %v10839_v39 }
 0x189   :  { %v4050_v1 = vsel %vm3997_vm8, %v3722_v14, %v4049_v35  ;;  %v3105_v3 = vmax.f32 %v1447_v8, %v10841_v9  ;;  %v1399_v19 = vcombine.high %v759_v53, %v759_v53  ;;  %v1406_v24 = vrot.slane %v759_v53, %v13050_v48 }
 0x18a   :  { %v4051_v33 = vsel %vm3999_vm9, %v3726_v22, %v4050_v1  ;;  %v3104_v43 = vmax.f32 %v1448_v23, %v10840_v29  ;;  %v3106_v18 = vmax.f32 %v1449_v28, %v10842_v13  ;;  %v612_v6 = vadd.f32 %v13306_v4, %v13198_v17 }
 0x18b   :  { %v4052_v41 = vsel %vm4001_vm10, %v3730_v25, %v4051_v33  ;;  %v1413_v10 = vrot.slane %v1399_v19, %v13050_v48  ;;  %v1414_v5 = vcombine.high %v1406_v24, %v1406_v24  ;;  %v10831_v51 = vrot.slane %v1406_v24, 9 }
 0x18c   :  { %v4053_v56 = vsel %vm4003_vm11, %v3734_v52, %v4052_v41  ;;  %v762_v31 = vmax.f32 %v612_v6, 0.0  ;;  %v604_v35 = vadd.f32 %v13306_v4, %v13201_v12  ;;  %v4189_v47 = vpack.c.bf16 %v4176_v27, %v4175_v45 }
 0x18d   :  { %4134 = vst.msk [vmem:[#allocation2 + $0x81] sm:$0xff] %vm33_vm3, %v4053_v56  ;;  %v1415_v8 = vcombine.high %v1413_v10, %v1413_v10  ;;  %v10832_v16 = vrot.slane %v1414_v5, 9  ;;  %v10833_v26 = vrot.slane %v1413_v10, 9  ;;  %v3095_v17 = vmax.f32 %v1406_v24, %v10831_v51 }
 0x18e   :  { %v1450_v46 = vcombine.high %v762_v31, %v762_v31  ;;  %v1457_v53 = vrot.slane %v762_v31, %v13050_v48  ;;  %v760_v21 = vmax.f32 %v604_v35, 0.0  ;;  %11724 = vmatprep.mubr.msk.bf16.mxu1 %vm33_vm3, %v4189_v47  ;;  %v625_v23 = vadd.f32 %v13306_v4, %v13217_v57 }
 0x18f   :  { %v10834_v28 = vrot.slane %v1415_v8, 9  ;;  %v3096_v39 = vmax.f32 %v1414_v5, %v10832_v16  ;;  %v3097_v14 = vmax.f32 %v1413_v10, %v10833_v26  ;;  %v3287_v12 = vmax.f32 %v3095_v17, %v3103_v63  ;;  %v13443_v5 = vpop.f32.mrb[60].mxu0 }
 0x190   :  { %v1464_v22 = vrot.slane %v1450_v46, %v13050_v48  ;;  %v1465_v25 = vcombine.high %v1457_v53, %v1457_v53  ;;  %v10843_v9 = vrot.slane %v1457_v53, 9  ;;  %v1416_v52 = vcombine.high %v760_v21, %v760_v21 }
 0x191   :  { %v3098_v29 = vmax.f32 %v1415_v8, %v10834_v28  ;;  %v3288_v13 = vmax.f32 %v3096_v39, %v3104_v43  ;;  %v3289_v1 = vmax.f32 %v3097_v14, %v3105_v3  ;;  %v3738_v19 = vrot.slane %v3287_v12, %v13058_v62  ;;  %v13446_v43 = vpop.f32.mrb[61].mxu0 }
 0x192   :  { %v1466_v24 = vcombine.high %v1464_v22, %v1464_v22  ;;  %v10844_v27 = vrot.slane %v1465_v25, 9  ;;  %v10845_v33 = vrot.slane %v1464_v22, 9  ;;  %v3107_v6 = vmax.f32 %v1457_v53, %v10843_v9  ;;  %v13452_v39 = vpop.f32.mrb[62].mxu0 }
 0x193   :  { %v3290_v41 = vmax.f32 %v3098_v29, %v3106_v18  ;;  %v3742_v57 = vrot.slane %v3288_v13, %v13058_v62  ;;  %v3746_v10 = vrot.slane %v3289_v1, %v13058_v62  ;;  %v1423_v63 = vrot.slane %v760_v21, %v13050_v48 }
 0x194   :  { %v10846_v51 = vrot.slane %v1466_v24, 9  ;;  %v3108_v45 = vmax.f32 %v1465_v25, %v10844_v27  ;;  %v3109_v56 = vmax.f32 %v1464_v22, %v10845_v33  ;;  %v1430_v3 = vrot.slane %v1416_v52, %v13050_v48 }
 0x195   :  { %v3750_v31 = vrot.slane %v3290_v41, %v13058_v62  ;;  %v4054_v35 = vsel %vm3991_vm5, %v3742_v57, %v3738_v19  ;;  %v1431_v18 = vcombine.high %v1423_v63, %v1423_v63  ;;  %v10835_v47 = vrot.slane %v1423_v63, 9 }
 0x196   :  { %v4055_v8 = vsel %vm3993_vm6, %v3746_v10, %v4054_v35  ;;  %v3110_v16 = vmax.f32 %v1466_v24, %v10846_v51  ;;  %v1432_v26 = vcombine.high %v1430_v3, %v1430_v3  ;;  %v10837_v17 = vrot.slane %v1430_v3, 9  ;;  %v13461_v10 = vpop.f32.mrb[63].mxu0 }
 0x197   :  { %v10836_v46 = vrot.slane %v1431_v18, 9  ;;  %v3099_v53 = vmax.f32 %v1423_v63, %v10835_v47  ;;  %v4056_v21 = vsel %vm3995_vm7, %v3750_v31, %v4055_v8  ;;  %v765_v28 = vmax.f32 %v625_v23, 0.0 }
 0x198   :  { %v10838_v14 = vrot.slane %v1432_v26, 9  ;;  %v3101_v12 = vmax.f32 %v1430_v3, %v10837_v17  ;;  %v617_v22 = vadd.f32 %v13306_v4, %v13220_v37  ;;  %v628_v25 = vadd.f32 %v13306_v4, %v13224_v7 }
 0x199   :  { %v3100_v9 = vmax.f32 %v1431_v18, %v10836_v46  ;;  %v3291_v52 = vmax.f32 %v3099_v53, %v3107_v6  ;;  %v1501_v29 = vcombine.high %v765_v28, %v765_v28  ;;  %v1508_v13 = vrot.slane %v765_v28, %v13050_v48 }
 0x19a   :  { %v3102_v1 = vmax.f32 %v1432_v26, %v10838_v14  ;;  %v3293_v19 = vmax.f32 %v3101_v12, %v3109_v56  ;;  %v763_v24 = vmax.f32 %v617_v22, 0.0  ;;  %v766_v27 = vmax.f32 %v628_v25, 0.0 }
 0x19b   :  { %v3292_v23 = vmax.f32 %v3100_v9, %v3108_v45  ;;  %v3754_v33 = vrot.slane %v3291_v52, %v13058_v62  ;;  %v1515_v41 = vrot.slane %v1501_v29, %v13050_v48  ;;  %v1516_v57 = vcombine.high %v1508_v13, %v1508_v13 }
 0x19c   :  { %v3294_v37 = vmax.f32 %v3102_v1, %v3110_v16  ;;  %v3762_v7 = vrot.slane %v3293_v19, %v13058_v62  ;;  %v10855_v63 = vrot.slane %v1508_v13, 9  ;;  %v1467_v6 = vcombine.high %v763_v24, %v763_v24 }
 0x19d   :  { %v3758_v51 = vrot.slane %v3292_v23, %v13058_v62  ;;  %v4057_v3 = vsel %vm3997_vm8, %v3754_v33, %v4056_v21  ;;  %v1517_v56 = vcombine.high %v1515_v41, %v1515_v41  ;;  %v10856_v31 = vrot.slane %v1516_v57, 9 }
 0x19e   :  { %v3766_v45 = vrot.slane %v3294_v37, %v13058_v62  ;;  %v10857_v35 = vrot.slane %v1515_v41, 9  ;;  %v3119_v18 = vmax.f32 %v1508_v13, %v10855_v63  ;;  %v1474_v47 = vrot.slane %v763_v24, %v13050_v48 }
 0x19f   :  { %v4058_v8 = vsel %vm3999_vm9, %v3758_v51, %v4057_v3  ;;  %v10858_v26 = vrot.slane %v1517_v56, 9  ;;  %v3120_v16 = vmax.f32 %v1516_v57, %v10856_v31  ;;  %v1481_v17 = vrot.slane %v1467_v6, %v13050_v48 }
 0x1a0   :  { %v4059_v46 = vsel %vm4001_vm10, %v3762_v7, %v4058_v8  ;;  %v3121_v53 = vmax.f32 %v1515_v41, %v10857_v35  ;;  %v1482_v28 = vcombine.high %v1474_v47, %v1474_v47  ;;  %v10847_v14 = vrot.slane %v1474_v47, 9 }
 0x1a1   :  { %v4060_v21 = vsel %vm4003_vm11, %v3766_v45, %v4059_v46  ;;  %v3122_v12 = vmax.f32 %v1517_v56, %v10858_v26  ;;  %v1483_v22 = vcombine.high %v1481_v17, %v1481_v17  ;;  %v10849_v25 = vrot.slane %v1481_v17, 9 }
 0x1a2   :  { %4135 = vst.msk [vmem:[#allocation2 + $0xb1] sm:$0xff] %vm33_vm3, %v4060_v21  ;;  %v10848_v9 = vrot.slane %v1482_v28, 9  ;;  %v3111_v52 = vmax.f32 %v1474_v47, %v10847_v14  ;;  %v1518_v29 = vcombine.high %v766_v27, %v766_v27  ;;  %v1525_v13 = vrot.slane %v766_v27, %v13050_v48 }
 0x1a3   :  { %v10850_v1 = vrot.slane %v1483_v22, 9  ;;  %v3113_v19 = vmax.f32 %v1481_v17, %v10849_v25  ;;  %v620_v24 = vadd.f32 %v13306_v4, %v13226_v15  ;;  %v641_v23 = vadd.f32 %v13306_v4, %v13233_v60  ;;  %v12203_v15 = vld [vmem:[%s15291_s3] sm:$0xff]  }
 0x1a4   :  { %v3112_v33 = vmax.f32 %v1482_v28, %v10848_v9  ;;  %v3295_v41 = vmax.f32 %v3111_v52, %v3119_v18  ;;  %v1532_v57 = vrot.slane %v1518_v29, %v13050_v48  ;;  %v1533_v37 = vcombine.high %v1525_v13, %v1525_v13  ;;  %11736 = vmatprep.subr.bf16.mxu1 %v12203_v15 }
 0x1a5   :  { %v3114_v7 = vmax.f32 %v1483_v22, %v10850_v1  ;;  %v3297_v63 = vmax.f32 %v3113_v19, %v3121_v53  ;;  %v10859_v6 = vrot.slane %v1525_v13, 9  ;;  %v764_v51 = vmax.f32 %v620_v24, 0.0  ;;  %11737 = vmatpush3.bf16.msra.mxu1 %v12203_v15 }
 0x1a6   :  { %v3296_v3 = vmax.f32 %v3112_v33, %v3120_v16  ;;  %v3770_v27 = vrot.slane %v3295_v41, %v13058_v62  ;;  %v1534_v56 = vcombine.high %v1532_v57, %v1532_v57  ;;  %v10860_v31 = vrot.slane %v1533_v37, 9 }
 0x1a7   :  { %v3298_v45 = vmax.f32 %v3114_v7, %v3122_v12  ;;  %v3778_v60 = vrot.slane %v3297_v63, %v13058_v62  ;;  %v10861_v35 = vrot.slane %v1532_v57, 9  ;;  %v3123_v18 = vmax.f32 %v1525_v13, %v10859_v6 }
 0x1a8   :  { %v3774_v47 = vrot.slane %v3296_v3, %v13058_v62  ;;  %v10862_v8 = vrot.slane %v1534_v56, 9  ;;  %v3124_v26 = vmax.f32 %v1533_v37, %v10860_v31  ;;  %v1484_v17 = vcombine.high %v764_v51, %v764_v51 }
 0x1a9   :  { %v3782_v16 = vrot.slane %v3298_v45, %v13058_v62  ;;  %v3125_v46 = vmax.f32 %v1532_v57, %v10861_v35  ;;  %v1491_v53 = vrot.slane %v764_v51, %v13050_v48  ;;  %v769_v28 = vmax.f32 %v641_v23, 0.0 }
 0x1aa   :  { %v4061_v14 = vsel %vm3991_vm5, %v3774_v47, %v3770_v27  ;;  %v3126_v21 = vmax.f32 %v1534_v56, %v10862_v8  ;;  %v1498_v12 = vrot.slane %v1484_v17, %v13050_v48  ;;  %v633_v22 = vadd.f32 %v13306_v4, %v13237_v61 }
 0x1ab   :  { %v4062_v25 = vsel %vm3993_vm6, %v3778_v60, %v4061_v14  ;;  %v1499_v9 = vcombine.high %v1491_v53, %v1491_v53  ;;  %v10851_v52 = vrot.slane %v1491_v53, 9  ;;  %v1569_v29 = vcombine.high %v769_v28, %v769_v28  ;;  %v4178_v14 = vld [vmem:[#allocation2 + $0x71] sm:$0xff] }
 0x1ac   :  { %v1500_v13 = vcombine.high %v1498_v12, %v1498_v12  ;;  %v10853_v1 = vrot.slane %v1498_v12, 9  ;;  %v4063_v19 = vsel %vm3995_vm7, %v3782_v16, %v4062_v25  ;;  %v1576_v24 = vrot.slane %v769_v28, %v13050_v48 }
 0x1ad   :  { %v10852_v23 = vrot.slane %v1499_v9, 9  ;;  %v3115_v33 = vmax.f32 %v1491_v53, %v10851_v52  ;;  %v1583_v41 = vrot.slane %v1569_v29, %v13050_v48  ;;  %v767_v57 = vmax.f32 %v633_v22, 0.0  ;;  %v4177_v52 = vld [vmem:[#allocation2 + $0x61] sm:$0xff] }
 0x1ae   :  { %v10854_v37 = vrot.slane %v1500_v13, 9  ;;  %v3117_v7 = vmax.f32 %v1498_v12, %v10853_v1  ;;  %v1584_v63 = vcombine.high %v1576_v24, %v1576_v24  ;;  %v10871_v61 = vrot.slane %v1576_v24, 9 }
 0x1af   :  { %v3116_v6 = vmax.f32 %v1499_v9, %v10852_v23  ;;  %v3299_v51 = vmax.f32 %v3115_v33, %v3123_v18  ;;  %v1585_v3 = vcombine.high %v1583_v41, %v1583_v41  ;;  %v10873_v27 = vrot.slane %v1583_v41, 9 }
 0x1b0   :  { %v3118_v56 = vmax.f32 %v1500_v13, %v10854_v37  ;;  %v3301_v31 = vmax.f32 %v3117_v7, %v3125_v46  ;;  %v10872_v15 = vrot.slane %v1584_v63, 9  ;;  %v3135_v45 = vmax.f32 %v1576_v24, %v10871_v61 }
 0x1b1   :  { %v3300_v60 = vmax.f32 %v3116_v6, %v3124_v26  ;;  %v3786_v35 = vrot.slane %v3299_v51, %v13058_v62  ;;  %v10874_v47 = vrot.slane %v1585_v3, 9  ;;  %v3137_v8 = vmax.f32 %v1583_v41, %v10873_v27 }
 0x1b2   :  { %v3302_v17 = vmax.f32 %v3118_v56, %v3126_v21  ;;  %v3794_v16 = vrot.slane %v3301_v31, %v13058_v62  ;;  %v3136_v53 = vmax.f32 %v1584_v63, %v10872_v15  ;;  %v1535_v28 = vcombine.high %v767_v57, %v767_v57 }
 0x1b3   :  { %v3790_v12 = vrot.slane %v3300_v60, %v13058_v62  ;;  %v4064_v18 = vsel %vm3997_vm8, %v3786_v35, %v4063_v19  ;;  %v3138_v22 = vmax.f32 %v1585_v3, %v10874_v47  ;;  %v1542_v46 = vrot.slane %v767_v57, %v13050_v48  ;;  %v12204_v57 = vld [vmem:[%s15291_s3 + $0x8] sm:$0xff]  }
 0x1b4   :  { %v3798_v25 = vrot.slane %v3302_v17, %v13058_v62  ;;  %v1549_v26 = vrot.slane %v1535_v28, %v13050_v48  ;;  %v644_v9 = vadd.f32 %v13306_v4, %v13241_v11  ;;  %v636_v21 = vadd.f32 %v13306_v4, %v13254_v36  ;;  %v12205_v11 = vld [vmem:[%s15291_s3 + $0x20] sm:$0xff]   ;;  %11738 = vmatprep.subr.bf16.mxu1 %v12204_v57 }
 0x1b5   :  { %v4065_v29 = vsel %vm3999_vm9, %v3790_v12, %v4064_v18  ;;  %v1550_v13 = vcombine.high %v1542_v46, %v1542_v46  ;;  %v10863_v1 = vrot.slane %v1542_v46, 9  ;;  %v4190_v24 = vpack.c.bf16 %v4178_v14, %v4177_v52  ;;  %11739 = vmatpush3.bf16.msra.mxu1 %v12204_v57 }
 0x1b6   :  { %v4066_v19 = vsel %vm4001_vm10, %v3794_v16, %v4065_v29  ;;  %v1551_v23 = vcombine.high %v1549_v26, %v1549_v26  ;;  %v10865_v33 = vrot.slane %v1549_v26, 9  ;;  %v770_v41 = vmax.f32 %v644_v9, 0.0  ;;  %11756 = vmatprep.subr.bf16.mxu1 %v12205_v11 }
 0x1b7   :  { %v4067_v36 = vsel %vm4003_vm11, %v3798_v25, %v4066_v19  ;;  %v10864_v37 = vrot.slane %v1550_v13, 9  ;;  %v3127_v7 = vmax.f32 %v1542_v46, %v10863_v1  ;;  %v768_v63 = vmax.f32 %v636_v21, 0.0  ;;  %11725 = vmatmul.mubr.msk.bf16.gmra.mrb[4].mxu1 %vm33_vm3, %v4190_v24 }
 0x1b8   :  { %4136 = vst.msk [vmem:[#allocation2 + $0xc1] sm:$0xff] %vm33_vm3, %v4067_v36  ;;  %v10866_v61 = vrot.slane %v1551_v23, 9  ;;  %v3129_v6 = vmax.f32 %v1549_v26, %v10865_v33  ;;  %v1586_v51 = vcombine.high %v770_v41, %v770_v41  ;;  %v1593_v3 = vrot.slane %v770_v41, %v13050_v48 }
 0x1b9   :  { %v3128_v27 = vmax.f32 %v1550_v13, %v10864_v37  ;;  %v3303_v56 = vmax.f32 %v3127_v7, %v3135_v45  ;;  %v1552_v31 = vcombine.high %v768_v63, %v768_v63  ;;  %v1559_v15 = vrot.slane %v768_v63, %v13050_v48 }
 0x1ba   :  { %v3130_v60 = vmax.f32 %v1551_v23, %v10866_v61  ;;  %v3305_v35 = vmax.f32 %v3129_v6, %v3137_v8  ;;  %v1600_v47 = vrot.slane %v1586_v51, %v13050_v48  ;;  %v1601_v17 = vcombine.high %v1593_v3, %v1593_v3 }
 0x1bb   :  { %v3304_v16 = vmax.f32 %v3128_v27, %v3136_v53  ;;  %v3802_v28 = vrot.slane %v3303_v56, %v13058_v62  ;;  %v10875_v14 = vrot.slane %v1593_v3, 9  ;;  %v1566_v12 = vrot.slane %v1552_v31, %v13050_v48 }
 0x1bc   :  { %v3306_v18 = vmax.f32 %v3130_v60, %v3138_v22  ;;  %v3810_v46 = vrot.slane %v3305_v35, %v13058_v62  ;;  %v1602_v45 = vcombine.high %v1600_v47, %v1600_v47  ;;  %v10876_v25 = vrot.slane %v1601_v17, 9 }
 0x1bd   :  { %v3806_v26 = vrot.slane %v3304_v16, %v13058_v62  ;;  %v10877_v9 = vrot.slane %v1600_v47, 9  ;;  %v3139_v21 = vmax.f32 %v1593_v3, %v10875_v14  ;;  %v1567_v8 = vcombine.high %v1559_v15, %v1559_v15 }
 0x1be   :  { %v3814_v52 = vrot.slane %v3306_v18, %v13058_v62  ;;  %v10878_v29 = vrot.slane %v1602_v45, 9  ;;  %v3140_v13 = vmax.f32 %v1601_v17, %v10876_v25  ;;  %v1568_v53 = vcombine.high %v1566_v12, %v1566_v12 }
 0x1bf   :  { %v4068_v1 = vsel %vm3991_vm5, %v3806_v26, %v3802_v28  ;;  %v3141_v24 = vmax.f32 %v1600_v47, %v10877_v9  ;;  %v10867_v19 = vrot.slane %v1559_v15, 9  ;;  %v10868_v23 = vrot.slane %v1567_v8, 9 }
 0x1c0   :  { %v4069_v22 = vsel %vm3993_vm6, %v3810_v46, %v4068_v1  ;;  %v3142_v33 = vmax.f32 %v1602_v45, %v10878_v29  ;;  %v10869_v41 = vrot.slane %v1566_v12, 9  ;;  %v10870_v57 = vrot.slane %v1568_v53, 9 }
 0x1c1   :  { %v3131_v11 = vmax.f32 %v1559_v15, %v10867_v19  ;;  %v3132_v36 = vmax.f32 %v1567_v8, %v10868_v23  ;;  %v4070_v37 = vsel %vm3995_vm7, %v3814_v52, %v4069_v22  ;;  %v657_v7 = vadd.f32 %v13306_v4, %v13266_v58 }
 0x1c2   :  { %v3133_v63 = vmax.f32 %v1566_v12, %v10869_v41  ;;  %v3134_v61 = vmax.f32 %v1568_v53, %v10870_v57  ;;  %v649_v6 = vadd.f32 %v13306_v4, %v13279_v50  ;;  %v660_v51 = vadd.f32 %v13306_v4, %v13285_v49 }
 0x1c3   :  { %v3307_v3 = vmax.f32 %v3131_v11, %v3139_v21  ;;  %v3308_v27 = vmax.f32 %v3132_v36, %v3140_v13  ;;  %v773_v56 = vmax.f32 %v657_v7, 0.0  ;;  %v652_v31 = vadd.f32 %v13306_v4, %v13292_v42 }
 0x1c4   :  { %v3309_v15 = vmax.f32 %v3133_v63, %v3141_v24  ;;  %v3310_v60 = vmax.f32 %v3134_v61, %v3142_v33  ;;  %v771_v35 = vmax.f32 %v649_v6, 0.0  ;;  %v774_v47 = vmax.f32 %v660_v51, 0.0 }
 0x1c5   :  { %v3818_v58 = vrot.slane %v3307_v3, %v13058_v62  ;;  %v3822_v17 = vrot.slane %v3308_v27, %v13058_v62  ;;  %v1637_v16 = vcombine.high %v773_v56, %v773_v56  ;;  %v1644_v50 = vrot.slane %v773_v56, %v13050_v48 }
 0x1c6   :  { %v3826_v28 = vrot.slane %v3309_v15, %v13058_v62  ;;  %v3830_v49 = vrot.slane %v3310_v60, %v13058_v62  ;;  %v1603_v14 = vcombine.high %v771_v35, %v771_v35  ;;  %v1610_v12 = vrot.slane %v771_v35, %v13050_v48 }
 0x1c7   :  { %v4071_v42 = vsel %vm3997_vm8, %v3818_v58, %v4070_v37  ;;  %v1651_v4 = vrot.slane %v1637_v16, %v13050_v48  ;;  %v1652_v18 = vcombine.high %v1644_v50, %v1644_v50  ;;  %v10887_v46 = vrot.slane %v1644_v50, 9 }
 0x1c8   :  { %v4072_v45 = vsel %vm3999_vm9, %v3822_v17, %v4071_v42  ;;  %v1617_v25 = vrot.slane %v1603_v14, %v13050_v48  ;;  %v1618_v26 = vcombine.high %v1610_v12, %v1610_v12  ;;  %v10879_v9 = vrot.slane %v1610_v12, 9 }
 0x1c9   :  { %v4073_v21 = vsel %vm4001_vm10, %v3826_v28, %v4072_v45  ;;  %v1653_v8 = vcombine.high %v1651_v4, %v1651_v4  ;;  %v10888_v52 = vrot.slane %v1652_v18, 9  ;;  %v10889_v29 = vrot.slane %v1651_v4, 9 }
 0x1ca   :  { %v4074_v13 = vsel %vm4003_vm11, %v3830_v49, %v4073_v21  ;;  %v3151_v53 = vmax.f32 %v1644_v50, %v10887_v46  ;;  %v1619_v1 = vcombine.high %v1617_v25, %v1617_v25  ;;  %v10880_v24 = vrot.slane %v1618_v26, 9 }
 0x1cb   :  { %4137 = vst.msk [vmem:[#allocation2 + $0xd1] sm:$0xff] %vm33_vm3, %v4074_v13  ;;  %v10890_v19 = vrot.slane %v1653_v8, 9  ;;  %v3152_v23 = vmax.f32 %v1652_v18, %v10888_v52  ;;  %v3153_v22 = vmax.f32 %v1651_v4, %v10889_v29  ;;  %v10881_v33 = vrot.slane %v1617_v25, 9  ;;  %v13563_v13 = vld [vmem:[%s15292_s2] ss:$0 sm:$0xff] }
 0x1cc   :  { %v10882_v41 = vrot.slane %v1619_v1, 9  ;;  %v3143_v57 = vmax.f32 %v1610_v12, %v10879_v9  ;;  %v3144_v11 = vmax.f32 %v1618_v26, %v10880_v24  ;;  %v1654_v36 = vcombine.high %v774_v47, %v774_v47 }
 0x1cd   :  { %v3154_v37 = vmax.f32 %v1653_v8, %v10890_v19  ;;  %v3145_v7 = vmax.f32 %v1617_v25, %v10881_v33  ;;  %v1661_v63 = vrot.slane %v774_v47, %v13050_v48  ;;  %v772_v61 = vmax.f32 %v652_v31, 0.0 }
 0x1ce   :  { %v3146_v6 = vmax.f32 %v1619_v1, %v10882_v41  ;;  %v3311_v51 = vmax.f32 %v3143_v57, %v3151_v53  ;;  %v3312_v3 = vmax.f32 %v3144_v11, %v3152_v23  ;;  %v1668_v27 = vrot.slane %v1654_v36, %v13050_v48 }
 0x1cf   :  { %v3313_v56 = vmax.f32 %v3145_v7, %v3153_v22  ;;  %v1669_v15 = vcombine.high %v1661_v63, %v1661_v63  ;;  %v10891_v60 = vrot.slane %v1661_v63, 9  ;;  %v1620_v35 = vcombine.high %v772_v61, %v772_v61 }
 0x1d0   :  { %v3314_v58 = vmax.f32 %v3146_v6, %v3154_v37  ;;  %v3834_v17 = vrot.slane %v3311_v51, %v13058_v62  ;;  %v3838_v16 = vrot.slane %v3312_v3, %v13058_v62  ;;  %v1670_v50 = vcombine.high %v1668_v27, %v1668_v27 }
 0x1d1   :  { %v3842_v28 = vrot.slane %v3313_v56, %v13058_v62  ;;  %v10892_v49 = vrot.slane %v1669_v15, 9  ;;  %v10893_v47 = vrot.slane %v1668_v27, 9  ;;  %v3155_v31 = vmax.f32 %v1661_v63, %v10891_v60 }
 0x1d2   :  { %v3846_v14 = vrot.slane %v3314_v58, %v13058_v62  ;;  %v4075_v12 = vsel %vm3991_vm5, %v3838_v16, %v3834_v17  ;;  %v10894_v42 = vrot.slane %v1670_v50, 9  ;;  %v1627_v4 = vrot.slane %v772_v61, %v13050_v48 }
 0x1d3   :  { %v4076_v18 = vsel %vm3993_vm6, %v3842_v28, %v4075_v12  ;;  %v3156_v46 = vmax.f32 %v1669_v15, %v10892_v49  ;;  %v3157_v45 = vmax.f32 %v1668_v27, %v10893_v47  ;;  %v1634_v25 = vrot.slane %v1620_v35, %v13050_v48 }
 0x1d4   :  { %v3158_v26 = vmax.f32 %v1670_v50, %v10894_v42  ;;  %v1635_v9 = vcombine.high %v1627_v4, %v1627_v4  ;;  %v10883_v21 = vrot.slane %v1627_v4, 9  ;;  %v4077_v8 = vsel %vm3995_vm7, %v3846_v14, %v4076_v18 }
 0x1d5   :  { %v1636_v52 = vcombine.high %v1634_v25, %v1634_v25  ;;  %v10885_v29 = vrot.slane %v1634_v25, 9  ;;  %v673_v53 = vadd.f32 %v13563_v13, %v13315_v0  ;;  %v665_v1 = vadd.f32 %v13563_v13, %v13323_v32 }
 0x1d6   :  { %v10884_v24 = vrot.slane %v1635_v9, 9  ;;  %v3147_v19 = vmax.f32 %v1627_v4, %v10883_v21  ;;  %v676_v23 = vadd.f32 %v13563_v13, %v13333_v20  ;;  %v668_v22 = vadd.f32 %v13563_v13, %v13337_v54 }
 0x1d7   :  { %v10886_v33 = vrot.slane %v1636_v52, 9  ;;  %v3149_v41 = vmax.f32 %v1634_v25, %v10885_v29  ;;  %v777_v57 = vmax.f32 %v673_v53, 0.0  ;;  %v775_v11 = vmax.f32 %v665_v1, 0.0 }
 0x1d8   :  { %v3148_v36 = vmax.f32 %v1635_v9, %v10884_v24  ;;  %v3315_v37 = vmax.f32 %v3147_v19, %v3155_v31  ;;  %v778_v7 = vmax.f32 %v676_v23, 0.0  ;;  %v13573_v63 = vmax.f32 %v668_v22, 0.0 }
 0x1d9   :  { %v3150_v0 = vmax.f32 %v1636_v52, %v10886_v33  ;;  %v3317_v61 = vmax.f32 %v3149_v41, %v3157_v45  ;;  %v1705_v32 = vcombine.high %v777_v57, %v777_v57  ;;  %v1712_v6 = vrot.slane %v777_v57, %v13050_v48 }
 0x1da   :  { %v3316_v51 = vmax.f32 %v3148_v36, %v3156_v46  ;;  %v3850_v20 = vrot.slane %v3315_v37, %v13058_v62  ;;  %v1671_v3 = vcombine.high %v775_v11, %v775_v11  ;;  %v1678_v54 = vrot.slane %v775_v11, %v13050_v48 }
 0x1db   :  { %v3318_v27 = vmax.f32 %v3150_v0, %v3158_v26  ;;  %v3858_v56 = vrot.slane %v3317_v61, %v13058_v62  ;;  %v1719_v15 = vrot.slane %v1705_v32, %v13050_v48  ;;  %v1720_v60 = vcombine.high %v1712_v6, %v1712_v6 }
 0x1dc   :  { %v3854_v35 = vrot.slane %v3316_v51, %v13058_v62  ;;  %v4078_v58 = vsel %vm3997_vm8, %v3850_v20, %v4077_v8  ;;  %v10903_v17 = vrot.slane %v1712_v6, 9  ;;  %v1685_v16 = vrot.slane %v1671_v3, %v13050_v48 }
 0x1dd   :  { %v3862_v50 = vrot.slane %v3318_v27, %v13058_v62  ;;  %v1721_v28 = vcombine.high %v1719_v15, %v1719_v15  ;;  %v10904_v49 = vrot.slane %v1720_v60, 9  ;;  %v10905_v47 = vrot.slane %v1719_v15, 9  ;;  %v4179_v27 = vld [vmem:[#allocation2 + $0xa1] sm:$0xff] }
 0x1de   :  { %v4079_v31 = vsel %vm3999_vm9, %v3854_v35, %v4078_v58  ;;  %v3167_v14 = vmax.f32 %v1712_v6, %v10903_v17  ;;  %v1686_v12 = vcombine.high %v1678_v54, %v1678_v54  ;;  %v1687_v42 = vcombine.high %v1685_v16, %v1685_v16 }
 0x1df   :  { %v4080_v4 = vsel %vm4001_vm10, %v3858_v56, %v4079_v31  ;;  %v10906_v18 = vrot.slane %v1721_v28, 9  ;;  %v3168_v46 = vmax.f32 %v1720_v60, %v10904_v49  ;;  %v3169_v45 = vmax.f32 %v1719_v15, %v10905_v47  ;;  %v13597_v56 = vld [vmem:[#allocation2 + $0xb1] sm:$0xff] }
 0x1e0   :  { %v4081_v25 = vsel %vm4003_vm11, %v3862_v50, %v4080_v4  ;;  %v10895_v26 = vrot.slane %v1678_v54, 9  ;;  %v10896_v9 = vrot.slane %v1686_v12, 9  ;;  %v10897_v21 = vrot.slane %v1685_v16, 9 }
 0x1e1   :  { %4138 = vst.msk [vmem:[#allocation2 + $0xe1] sm:$0xff] %vm33_vm3, %v4081_v25  ;;  %v3170_v8 = vmax.f32 %v1721_v28, %v10906_v18  ;;  %v10898_v52 = vrot.slane %v1687_v42, 9  ;;  %v1722_v29 = vcombine.high %v778_v7, %v778_v7  ;;  %v1729_v53 = vrot.slane %v778_v7, %v13050_v48 }
 0x1e2   :  { %v3159_v1 = vmax.f32 %v1678_v54, %v10895_v26  ;;  %v3160_v24 = vmax.f32 %v1686_v12, %v10896_v9  ;;  %v3161_v19 = vmax.f32 %v1685_v16, %v10897_v21  ;;  %v1688_v23 = vcombine.high %v13573_v63, %v13573_v63 }
 0x1e3   :  { %v3162_v22 = vmax.f32 %v1687_v42, %v10898_v52  ;;  %v1736_v33 = vrot.slane %v1722_v29, %v13050_v48  ;;  %v1737_v41 = vcombine.high %v1729_v53, %v1729_v53  ;;  %v10907_v57 = vrot.slane %v1729_v53, 9 }
 0x1e4   :  { %v3319_v11 = vmax.f32 %v3159_v1, %v3167_v14  ;;  %v3320_v36 = vmax.f32 %v3160_v24, %v3168_v46  ;;  %v3321_v37 = vmax.f32 %v3161_v19, %v3169_v45  ;;  %v1695_v0 = vrot.slane %v13573_v63, %v13050_v48 }
 0x1e5   :  { %v3322_v61 = vmax.f32 %v3162_v22, %v3170_v8  ;;  %v1738_v32 = vcombine.high %v1736_v33, %v1736_v33  ;;  %v10908_v7 = vrot.slane %v1737_v41, 9  ;;  %v10909_v6 = vrot.slane %v1736_v33, 9 }
 0x1e6   :  { %v3866_v51 = vrot.slane %v3319_v11, %v13058_v62  ;;  %v3870_v20 = vrot.slane %v3320_v36, %v13058_v62  ;;  %v3874_v3 = vrot.slane %v3321_v37, %v13058_v62  ;;  %v3171_v54 = vmax.f32 %v1729_v53, %v10907_v57 }
 0x1e7   :  { %v3878_v15 = vrot.slane %v3322_v61, %v13058_v62  ;;  %v10910_v60 = vrot.slane %v1738_v32, 9  ;;  %v3172_v35 = vmax.f32 %v1737_v41, %v10908_v7  ;;  %v3173_v58 = vmax.f32 %v1736_v33, %v10909_v6 }
 0x1e8   :  { %v4082_v63 = vsel %vm3991_vm5, %v3870_v20, %v3866_v51  ;;  %v1702_v17 = vrot.slane %v1688_v23, %v13050_v48  ;;  %v1703_v16 = vcombine.high %v1695_v0, %v1695_v0  ;;  %v10899_v50 = vrot.slane %v1695_v0, 9 }
 0x1e9   :  { %v4083_v28 = vsel %vm3993_vm6, %v3874_v3, %v4082_v63  ;;  %v3174_v49 = vmax.f32 %v1738_v32, %v10910_v60  ;;  %v4191_v47 = vpack.c.bf16 %v13597_v56, %v4179_v27  ;;  %v689_v31 = vadd.f32 %v13563_v13, %v13370_v34 }
 0x1ea   :  { %v1704_v14 = vcombine.high %v1702_v17, %v1702_v17  ;;  %v10900_v12 = vrot.slane %v1703_v16, 9  ;;  %v10901_v42 = vrot.slane %v1702_v17, 9  ;;  %v3163_v4 = vmax.f32 %v1695_v0, %v10899_v50 }
 0x1eb   :  { %v4084_v18 = vsel %vm3995_vm7, %v3878_v15, %v4083_v28  ;;  %11728 = vmatprep.mubr.msk.bf16.mxu1 %vm33_vm3, %v4191_v47  ;;  %v781_v46 = vmax.f32 %v689_v31, 0.0  ;;  %v681_v45 = vadd.f32 %v13563_v13, %v13373_v38  ;;  %v692_v25 = vadd.f32 %v13563_v13, %v13376_v59 }
 0x1ec   :  { %v10902_v26 = vrot.slane %v1704_v14, 9  ;;  %v3164_v9 = vmax.f32 %v1703_v16, %v10900_v12  ;;  %v3165_v21 = vmax.f32 %v1702_v17, %v10901_v42  ;;  %v3323_v8 = vmax.f32 %v3163_v4, %v3171_v54 }
 0x1ed   :  { %v1773_v34 = vcombine.high %v781_v46, %v781_v46  ;;  %v1780_v52 = vrot.slane %v781_v46, %v13050_v48  ;;  %v779_v29 = vmax.f32 %v681_v45, 0.0  ;;  %v782_v53 = vmax.f32 %v692_v25, 0.0 }
 0x1ee   :  { %v3166_v1 = vmax.f32 %v1704_v14, %v10902_v26  ;;  %v3324_v24 = vmax.f32 %v3164_v9, %v3172_v35  ;;  %v3325_v19 = vmax.f32 %v3165_v21, %v3173_v58  ;;  %v3882_v23 = vrot.slane %v3323_v8, %v13058_v62 }
 0x1ef   :  { %v1787_v22 = vrot.slane %v1773_v34, %v13050_v48  ;;  %v1788_v38 = vcombine.high %v1780_v52, %v1780_v52  ;;  %v10919_v33 = vrot.slane %v1780_v52, 9  ;;  %v1739_v41 = vcombine.high %v779_v29, %v779_v29 }
 0x1f0   :  { %v3326_v59 = vmax.f32 %v3166_v1, %v3174_v49  ;;  %v3886_v57 = vrot.slane %v3324_v24, %v13058_v62  ;;  %v3890_v11 = vrot.slane %v3325_v19, %v13058_v62  ;;  %v4085_v36 = vsel %vm3997_vm8, %v3882_v23, %v4084_v18 }
 0x1f1   :  { %v1789_v37 = vcombine.high %v1787_v22, %v1787_v22  ;;  %v10920_v0 = vrot.slane %v1788_v38, 9  ;;  %v10921_v61 = vrot.slane %v1787_v22, 9  ;;  %v3183_v32 = vmax.f32 %v1780_v52, %v10919_v33 }
 0x1f2   :  { %v3894_v7 = vrot.slane %v3326_v59, %v13058_v62  ;;  %v4086_v6 = vsel %vm3999_vm9, %v3886_v57, %v4085_v36  ;;  %v1746_v51 = vrot.slane %v779_v29, %v13050_v48  ;;  %v1753_v20 = vrot.slane %v1739_v41, %v13050_v48 }
 0x1f3   :  { %v4087_v3 = vsel %vm4001_vm10, %v3890_v11, %v4086_v6  ;;  %v10922_v54 = vrot.slane %v1789_v37, 9  ;;  %v3184_v27 = vmax.f32 %v1788_v38, %v10920_v0  ;;  %v3185_v15 = vmax.f32 %v1787_v22, %v10921_v61 }
 0x1f4   :  { %v4088_v60 = vsel %vm4003_vm11, %v3894_v7, %v4087_v3  ;;  %v1754_v35 = vcombine.high %v1746_v51, %v1746_v51  ;;  %v1755_v58 = vcombine.high %v1753_v20, %v1753_v20  ;;  %v10911_v63 = vrot.slane %v1746_v51, 9 }
 0x1f5   :  { %4139 = vst.msk [vmem:[#allocation2 + $0xf1] sm:$0xff] %vm33_vm3, %v4088_v60  ;;  %v3186_v17 = vmax.f32 %v1789_v37, %v10922_v54  ;;  %v10913_v16 = vrot.slane %v1753_v20, 9  ;;  %v1790_v50 = vcombine.high %v782_v53, %v782_v53  ;;  %v1797_v28 = vrot.slane %v782_v53, %v13050_v48 }
 0x1f6   :  { %v10912_v49 = vrot.slane %v1754_v35, 9  ;;  %v10914_v47 = vrot.slane %v1755_v58, 9  ;;  %v3175_v31 = vmax.f32 %v1746_v51, %v10911_v63  ;;  %v684_v14 = vadd.f32 %v13563_v13, %v13381_v2 }
 0x1f7   :  { %v3177_v12 = vmax.f32 %v1753_v20, %v10913_v16  ;;  %v1804_v42 = vrot.slane %v1790_v50, %v13050_v48  ;;  %v1805_v4 = vcombine.high %v1797_v28, %v1797_v28  ;;  %v10923_v18 = vrot.slane %v1797_v28, 9 }
 0x1f8   :  { %v3176_v46 = vmax.f32 %v1754_v35, %v10912_v49  ;;  %v3178_v45 = vmax.f32 %v1755_v58, %v10914_v47  ;;  %v3327_v25 = vmax.f32 %v3175_v31, %v3183_v32  ;;  %v780_v26 = vmax.f32 %v684_v14, 0.0 }
 0x1f9   :  { %v3329_v9 = vmax.f32 %v3177_v12, %v3185_v15  ;;  %v1806_v21 = vcombine.high %v1804_v42, %v1804_v42  ;;  %v10924_v8 = vrot.slane %v1805_v4, 9  ;;  %v10925_v34 = vrot.slane %v1804_v42, 9 }
 0x1fa   :  { %v3328_v52 = vmax.f32 %v3176_v46, %v3184_v27  ;;  %v3330_v29 = vmax.f32 %v3178_v45, %v3186_v17  ;;  %v3898_v53 = vrot.slane %v3327_v25, %v13058_v62  ;;  %v3187_v1 = vmax.f32 %v1797_v28, %v10923_v18 }
 0x1fb   :  { %v3906_v2 = vrot.slane %v3329_v9, %v13058_v62  ;;  %v10926_v24 = vrot.slane %v1806_v21, 9  ;;  %v3188_v19 = vmax.f32 %v1805_v4, %v10924_v8  ;;  %v3189_v23 = vmax.f32 %v1804_v42, %v10925_v34 }
 0x1fc   :  { %v3902_v22 = vrot.slane %v3328_v52, %v13058_v62  ;;  %v3910_v38 = vrot.slane %v3330_v29, %v13058_v62  ;;  %v1756_v33 = vcombine.high %v780_v26, %v780_v26  ;;  %v1763_v41 = vrot.slane %v780_v26, %v13050_v48 }
 0x1fd   :  { %v3190_v59 = vmax.f32 %v1806_v21, %v10926_v24  ;;  %v705_v57 = vadd.f32 %v13563_v13, %v13402_v30  ;;  %v697_v11 = vadd.f32 %v13563_v13, %v13404_v55  ;;  %v708_v36 = vadd.f32 %v13563_v13, %v13411_v40 }
 0x1fe   :  { %v4089_v37 = vsel %vm3991_vm5, %v3902_v22, %v3898_v53  ;;  %v1770_v0 = vrot.slane %v1756_v33, %v13050_v48  ;;  %v1771_v61 = vcombine.high %v1763_v41, %v1763_v41  ;;  %v10915_v32 = vrot.slane %v1763_v41, 9 }
 0x1ff   :  { %v4090_v7 = vsel %vm3993_vm6, %v3906_v2, %v4089_v37  ;;  %v785_v6 = vmax.f32 %v705_v57, 0.0  ;;  %v783_v51 = vmax.f32 %v697_v11, 0.0  ;;  %v786_v20 = vmax.f32 %v708_v36, 0.0 }
 0x200   :  { %v1772_v3 = vcombine.high %v1770_v0, %v1770_v0  ;;  %v10916_v54 = vrot.slane %v1771_v61, 9  ;;  %v10917_v30 = vrot.slane %v1770_v0, 9  ;;  %v3179_v27 = vmax.f32 %v1763_v41, %v10915_v32 }
 0x201   :  { %v4091_v55 = vsel %vm3995_vm7, %v3910_v38, %v4090_v7  ;;  %v1841_v15 = vcombine.high %v785_v6, %v785_v6  ;;  %v1848_v40 = vrot.slane %v785_v6, %v13050_v48  ;;  %v1807_v60 = vcombine.high %v783_v51, %v783_v51  ;;  %v13655_v38 = vld [vmem:[#allocation2 + $0xd1] sm:$0xff] }
 0x202   :  { %v10918_v35 = vrot.slane %v1772_v3, 9  ;;  %v3180_v58 = vmax.f32 %v1771_v61, %v10916_v54  ;;  %v3181_v63 = vmax.f32 %v1770_v0, %v10917_v30  ;;  %v3331_v17 = vmax.f32 %v3179_v27, %v3187_v1  ;;  %v13662_v61 = vld [vmem:[#allocation2 + $0xc1] sm:$0xff] }
 0x203   :  { %v1855_v16 = vrot.slane %v1841_v15, %v13050_v48  ;;  %v1856_v50 = vcombine.high %v1848_v40, %v1848_v40  ;;  %v10935_v28 = vrot.slane %v1848_v40, 9  ;;  %v1814_v49 = vrot.slane %v783_v51, %v13050_v48 }
 0x204   :  { %v3182_v47 = vmax.f32 %v1772_v3, %v10918_v35  ;;  %v3332_v31 = vmax.f32 %v3180_v58, %v3188_v19  ;;  %v3333_v14 = vmax.f32 %v3181_v63, %v3189_v23  ;;  %v3914_v12 = vrot.slane %v3331_v17, %v13058_v62 }
 0x205   :  { %v1857_v42 = vcombine.high %v1855_v16, %v1855_v16  ;;  %v10936_v4 = vrot.slane %v1856_v50, 9  ;;  %v10937_v18 = vrot.slane %v1855_v16, 9  ;;  %v3199_v46 = vmax.f32 %v1848_v40, %v10935_v28 }
 0x206   :  { %v3334_v45 = vmax.f32 %v3182_v47, %v3190_v59  ;;  %v3918_v25 = vrot.slane %v3332_v31, %v13058_v62  ;;  %v3922_v26 = vrot.slane %v3333_v14, %v13058_v62  ;;  %v4092_v9 = vsel %vm3997_vm8, %v3914_v12, %v4091_v55 }
 0x207   :  { %v10938_v21 = vrot.slane %v1857_v42, 9  ;;  %v3200_v8 = vmax.f32 %v1856_v50, %v10936_v4  ;;  %v3201_v34 = vmax.f32 %v1855_v16, %v10937_v18  ;;  %v1821_v52 = vrot.slane %v1807_v60, %v13050_v48 }
 0x208   :  { %v3926_v29 = vrot.slane %v3334_v45, %v13058_v62  ;;  %v4093_v53 = vsel %vm3999_vm9, %v3918_v25, %v4092_v9  ;;  %v1822_v1 = vcombine.high %v1814_v49, %v1814_v49  ;;  %v10927_v2 = vrot.slane %v1814_v49, 9 }
 0x209   :  { %v4094_v24 = vsel %vm4001_vm10, %v3922_v26, %v4093_v53  ;;  %v3202_v19 = vmax.f32 %v1857_v42, %v10938_v21  ;;  %v1823_v23 = vcombine.high %v1821_v52, %v1821_v52  ;;  %v10929_v22 = vrot.slane %v1821_v52, 9 }
 0x20a   :  { %v4095_v33 = vsel %vm4003_vm11, %v3926_v29, %v4094_v24  ;;  %v10928_v41 = vrot.slane %v1822_v1, 9  ;;  %v3191_v59 = vmax.f32 %v1814_v49, %v10927_v2  ;;  %v1858_v57 = vcombine.high %v786_v20, %v786_v20 }
 0x20b   :  { %4140 = vst.msk [vmem:[#allocation2 + $0x101] sm:$0xff] %vm33_vm3, %v4095_v33  ;;  %v10930_v11 = vrot.slane %v1823_v23, 9  ;;  %v3193_v36 = vmax.f32 %v1821_v52, %v10929_v22  ;;  %v1865_v37 = vrot.slane %v786_v20, %v13050_v48  ;;  %v700_v0 = vadd.f32 %v13563_v13, %v13420_v44 }
 0x20c   :  { %v3192_v32 = vmax.f32 %v1822_v1, %v10928_v41  ;;  %v3335_v7 = vmax.f32 %v3191_v59, %v3199_v46  ;;  %v1872_v6 = vrot.slane %v1858_v57, %v13050_v48  ;;  %v13667_v51 = vpack.c.bf16 %v13655_v38, %v13662_v61 }
 0x20d   :  { %v3194_v3 = vmax.f32 %v1823_v23, %v10930_v11  ;;  %v3337_v54 = vmax.f32 %v3193_v36, %v3201_v34  ;;  %v1873_v30 = vcombine.high %v1865_v37, %v1865_v37  ;;  %v10939_v27 = vrot.slane %v1865_v37, 9 }
 0x20e   :  { %v3336_v55 = vmax.f32 %v3192_v32, %v3200_v8  ;;  %v3930_v20 = vrot.slane %v3335_v7, %v13058_v62  ;;  %v1874_v15 = vcombine.high %v1872_v6, %v1872_v6  ;;  %v10941_v40 = vrot.slane %v1872_v6, 9  ;;  %11729 = vmatmul.mubr.msk.bf16.gmra.mrb[8].mxu1 %vm33_vm3, %v13667_v51 }
 0x20f   :  { %v3338_v44 = vmax.f32 %v3194_v3, %v3202_v19  ;;  %v3938_v60 = vrot.slane %v3337_v54, %v13058_v62  ;;  %v10940_v35 = vrot.slane %v1873_v30, 9  ;;  %v3203_v58 = vmax.f32 %v1865_v37, %v10939_v27 }
 0x210   :  { %v3934_v63 = vrot.slane %v3336_v55, %v13058_v62  ;;  %v10942_v17 = vrot.slane %v1874_v15, 9  ;;  %v3205_v16 = vmax.f32 %v1872_v6, %v10941_v40  ;;  %v784_v50 = vmax.f32 %v700_v0, 0.0 }
 0x211   :  { %v3942_v28 = vrot.slane %v3338_v44, %v13058_v62  ;;  %v3204_v49 = vmax.f32 %v1873_v30, %v10940_v35  ;;  %v721_v47 = vadd.f32 %v13563_v13, %v13443_v5  ;;  %v713_v31 = vadd.f32 %v13563_v13, %v13446_v43 }
 0x212   :  { %v4096_v14 = vsel %vm3991_vm5, %v3934_v63, %v3930_v20  ;;  %v3206_v12 = vmax.f32 %v1874_v15, %v10942_v17  ;;  %v1824_v42 = vcombine.high %v784_v50, %v784_v50  ;;  %v1831_v4 = vrot.slane %v784_v50, %v13050_v48 }
 0x213   :  { %v4097_v18 = vsel %vm3993_vm6, %v3938_v60, %v4096_v14  ;;  %v789_v46 = vmax.f32 %v721_v47, 0.0  ;;  %v787_v45 = vmax.f32 %v713_v31, 0.0  ;;  %v724_v25 = vadd.f32 %v13563_v13, %v13452_v39 }
 0x214   :  { %v1838_v26 = vrot.slane %v1824_v42, %v13050_v48  ;;  %v1839_v9 = vcombine.high %v1831_v4, %v1831_v4  ;;  %v10931_v5 = vrot.slane %v1831_v4, 9  ;;  %v4098_v21 = vsel %vm3995_vm7, %v3942_v28, %v4097_v18 }
 0x215   :  { %v1909_v43 = vcombine.high %v789_v46, %v789_v46  ;;  %v1916_v8 = vrot.slane %v789_v46, %v13050_v48  ;;  %v1875_v34 = vcombine.high %v787_v45, %v787_v45  ;;  %v1882_v52 = vrot.slane %v787_v45, %v13050_v48 }
 0x216   :  { %v1840_v29 = vcombine.high %v1838_v26, %v1838_v26  ;;  %v10932_v53 = vrot.slane %v1839_v9, 9  ;;  %v10933_v1 = vrot.slane %v1838_v26, 9  ;;  %v3195_v2 = vmax.f32 %v1831_v4, %v10931_v5 }
 0x217   :  { %v1923_v24 = vrot.slane %v1909_v43, %v13050_v48  ;;  %v1924_v19 = vcombine.high %v1916_v8, %v1916_v8  ;;  %v10951_v39 = vrot.slane %v1916_v8, 9  ;;  %v1889_v23 = vrot.slane %v1875_v34, %v13050_v48 }
 0x218   :  { %v10934_v22 = vrot.slane %v1840_v29, 9  ;;  %v3196_v33 = vmax.f32 %v1839_v9, %v10932_v53  ;;  %v3197_v41 = vmax.f32 %v1838_v26, %v10933_v1  ;;  %v3339_v59 = vmax.f32 %v3195_v2, %v3203_v58  ;;  %v13706_v2 = vld [vmem:[#allocation2 + $0xf1] sm:$0xff] }
 0x219   :  { %v1925_v57 = vcombine.high %v1923_v24, %v1923_v24  ;;  %v10952_v11 = vrot.slane %v1924_v19, 9  ;;  %v10953_v36 = vrot.slane %v1923_v24, 9  ;;  %v3215_v37 = vmax.f32 %v1916_v8, %v10951_v39 }
 0x21a   :  { %v3198_v0 = vmax.f32 %v1840_v29, %v10934_v22  ;;  %v3340_v32 = vmax.f32 %v3196_v33, %v3204_v49  ;;  %v3341_v7 = vmax.f32 %v3197_v41, %v3205_v16  ;;  %v3946_v6 = vrot.slane %v3339_v59, %v13058_v62  ;;  %v13711_v22 = vld [vmem:[#allocation2 + $0xe1] sm:$0xff] }
 0x21b   :  { %v10954_v3 = vrot.slane %v1925_v57, 9  ;;  %v3216_v54 = vmax.f32 %v1924_v19, %v10952_v11  ;;  %v3217_v30 = vmax.f32 %v1923_v24, %v10953_v36  ;;  %v1890_v27 = vcombine.high %v1882_v52, %v1882_v52  ;;  %v4143_v11 = vld [vmem:[#allocation2] sm:$0xff]  ;;  %v13720_v36 = vld [vmem:[#allocation2 + $0x10] sm:$0xff] }
 0x21c   :  { %v3342_v55 = vmax.f32 %v3198_v0, %v3206_v12  ;;  %v3950_v20 = vrot.slane %v3340_v32, %v13058_v62  ;;  %v3954_v15 = vrot.slane %v3341_v7, %v13058_v62  ;;  %v4099_v40 = vsel %vm3997_vm8, %v3946_v6, %v4098_v21 }
 0x21d   :  { %v3218_v44 = vmax.f32 %v1925_v57, %v10954_v3  ;;  %v1891_v60 = vcombine.high %v1889_v23, %v1889_v23  ;;  %v10943_v35 = vrot.slane %v1882_v52, 9  ;;  %v10944_v58 = vrot.slane %v1890_v27, 9 }
 0x21e   :  { %v3958_v63 = vrot.slane %v3342_v55, %v13058_v62  ;;  %v4100_v17 = vsel %vm3999_vm9, %v3950_v20, %v4099_v40  ;;  %v10945_v16 = vrot.slane %v1889_v23, 9  ;;  %v790_v50 = vmax.f32 %v724_v25, 0.0 }
 0x21f   :  { %v4101_v28 = vsel %vm4001_vm10, %v3954_v15, %v4100_v17  ;;  %v10946_v49 = vrot.slane %v1891_v60, 9  ;;  %v3207_v47 = vmax.f32 %v1882_v52, %v10943_v35  ;;  %v3208_v31 = vmax.f32 %v1890_v27, %v10944_v58 }
 0x220   :  { %v4102_v14 = vsel %vm4003_vm11, %v3958_v63, %v4101_v28  ;;  %v3209_v12 = vmax.f32 %v1889_v23, %v10945_v16  ;;  %v1926_v42 = vcombine.high %v790_v50, %v790_v50  ;;  %v1933_v4 = vrot.slane %v790_v50, %v13050_v48 }
 0x221   :  { %4141 = vst.msk [vmem:[#allocation2 + $0x111] sm:$0xff] %vm33_vm3, %v4102_v14  ;;  %v3210_v18 = vmax.f32 %v1891_v60, %v10946_v49  ;;  %v3343_v46 = vmax.f32 %v3207_v47, %v3215_v37  ;;  %v3344_v45 = vmax.f32 %v3208_v31, %v3216_v54  ;;  %v716_v26 = vadd.f32 %v13563_v13, %v13461_v10  ;;  %v13737_v47 = vld [vmem:[#allocation2 + $0x30] sm:$0xff] }
 0x222   :  { %v3345_v25 = vmax.f32 %v3209_v12, %v3217_v30  ;;  %v1940_v9 = vrot.slane %v1926_v42, %v13050_v48  ;;  %v1941_v5 = vcombine.high %v1933_v4, %v1933_v4  ;;  %v10955_v53 = vrot.slane %v1933_v4, 9  ;;  %v13726_v30 = vld [vmem:[#allocation2 + $0x101] sm:$0xff]  ;;  %v13740_v14 = vld [vmem:[#allocation2 + $0x50] sm:$0xff] }
 0x223   :  { %v3346_v21 = vmax.f32 %v3210_v18, %v3218_v44  ;;  %v3962_v43 = vrot.slane %v3343_v46, %v13058_v62  ;;  %v3966_v8 = vrot.slane %v3344_v45, %v13058_v62  ;;  %v788_v34 = vmax.f32 %v716_v26, 0.0  ;;  %v13745_v18 = vld [vmem:[#allocation2 + $0x20] sm:$0xff] }
 0x224   :  { %v3970_v52 = vrot.slane %v3345_v25, %v13058_v62  ;;  %v1942_v29 = vcombine.high %v1940_v9, %v1940_v9  ;;  %v10957_v1 = vrot.slane %v1940_v9, 9  ;;  %v10956_v39 = vrot.slane %v1941_v5, 9  ;;  %v13747_v46 = vld [vmem:[#allocation2 + $0x22] sm:$0xff] }
 0x225   :  { %v3974_v24 = vrot.slane %v3346_v21, %v13058_v62  ;;  %v4103_v10 = vsel %vm3991_vm5, %v3966_v8, %v3962_v43  ;;  %v1892_v13 = vcombine.high %v788_v34, %v788_v34  ;;  %v1899_v33 = vrot.slane %v788_v34, %v13050_v48  ;;  %v13753_v26 = vld [vmem:[#allocation2 + $0x40] sm:$0xff]  ;;  %v12206_v25 = vld [vmem:[%s15291_s3 + $0x28] sm:$0xff]   ;;  %v13767_v8 = vld [vmem:[#allocation2 + $0x32] sm:$0xff] }
 0x226   :  { %v4104_v19 = vsel %vm3993_vm6, %v3970_v52, %v4103_v10  ;;  %v10958_v23 = vrot.slane %v1942_v29, 9  ;;  %v13718_v57 = vpack.c.bf16 %v13706_v2, %v13711_v22  ;;  %v3219_v37 = vmax.f32 %v1933_v4, %v10955_v53  ;;  %v13769_v34 = vld [vmem:[#allocation2 + $0x42] sm:$0xff] }
 0x227   :  { %v1906_v41 = vrot.slane %v1892_v13, %v13050_v48  ;;  %v4105_v59 = vsel %vm3995_vm7, %v3974_v24, %v4104_v19  ;;  %v3221_v0 = vmax.f32 %v1940_v9, %v10957_v1  ;;  %v1907_v7 = vcombine.high %v1899_v33, %v1899_v33  ;;  %v13758_v9 = vld [vmem:[#allocation2 + $0x12] sm:$0xff]  ;;  %v13771_v52 = vld [vmem:[#allocation2 + $0x62] sm:$0xff] }
 0x228   :  { %v13722_v32 = vld [vmem:[#allocation2 + $0x111] sm:$0xff]  ;;  %v10947_v3 = vrot.slane %v1899_v33, 9  ;;  %11732 = vmatprep.mubr.msk.bf16.mxu1 %vm33_vm3, %v13718_v57  ;;  %v3220_v27 = vmax.f32 %v1941_v5, %v10956_v39  ;;  %v3222_v55 = vmax.f32 %v1942_v29, %v10958_v23  ;;  %v4159_v15 = vpack.c.bf16 %v13720_v36, %v4143_v11  ;;  %v13773_v29 = vld [vmem:[#allocation2 + $0xc2] sm:$0xff] }
 0x229   :  { %v1908_v6 = vcombine.high %v1906_v41, %v1906_v41  ;;  %v10949_v54 = vrot.slane %v1906_v41, 9  ;;  %v13730_v20 = vpack.c.bf16 %v13722_v32, %v13726_v30  ;;  %v10948_v40 = vrot.slane %v1907_v7, 9  ;;  %v13760_v5 = vld [vmem:[#allocation2 + $0x31] sm:$0xff]  ;;  %v13780_v24 = vld [vmem:[#allocation2 + $0xe2] sm:$0xff] }
 0x22a   :  { %v3211_v60 = vmax.f32 %v1899_v33, %v10947_v3  ;;  %v13751_v45 = vpack.c.bf16 %v13737_v47, %v13745_v18  ;;  %v13765_v43 = vpack.c.bf16 %v13740_v14, %v13753_v26  ;;  %v13778_v1 = vld [vmem:[#allocation2 + $0x52] sm:$0xff]  ;;  %v13782_v10 = vld [vmem:[#allocation2 + $0x102] sm:$0xff]  ;;  %v4840_v19 = vpack.c.bf16 %v13711_v22, %v13655_v38 }
 0x22b   :  { %v10950_v44 = vrot.slane %v1908_v6, 9  ;;  %v3213_v35 = vmax.f32 %v1906_v41, %v10949_v54  ;;  %11733 = vmatmul.mubr.msk.bf16.gmra.mrb[12].mxu1 %vm33_vm3, %v13730_v20  ;;  %v3212_v58 = vmax.f32 %v1907_v7, %v10948_v40  ;;  %v13784_v13 = vld [vmem:[#allocation2 + $0x21] sm:$0xff]  ;;  %v13794_v33 = vld [vmem:[#allocation2 + $0xb2] sm:$0xff]  ;;  %v4659_v3 = vpack.c.bf16 %v13753_v26, %v13737_v47 }
 0x22c   :  { %v3347_v17 = vmax.f32 %v3211_v60, %v3219_v37  ;;  %11740 = vmatprep.mubr.msk.bf16.mxu1 %vm33_vm3, %v4159_v15  ;;  %v12743_v23 = vld [vmem:[%s15291_s3 + $0x20] sm:$0xff]   ;;  %v13796_v41 = vld [vmem:[#allocation2 + $0x51] sm:$0xff]  ;;  %v12210_v37 = vld [vmem:[%s15291_s3 + $0x48] sm:$0xff]  }
 0x22d   :  { %v3214_v63 = vmax.f32 %v1908_v6, %v10950_v44  ;;  %v3349_v16 = vmax.f32 %v3213_v35, %v3221_v0  ;;  %v3348_v50 = vmax.f32 %v3212_v58, %v3220_v27  ;;  %v12207_v0 = vld [vmem:[%s15291_s3 + $0x30] sm:$0xff]   ;;  %v13820_v15 = vld [vmem:[#allocation2 + $0x41] sm:$0xff]  ;;  %v13866_v35 = vpack.c.bf16 %v13778_v1, %v13769_v34 }
 0x22e   :  { %v3978_v49 = vrot.slane %v3347_v17, %v13058_v62  ;;  %v13808_v7 = vld [vmem:[#allocation2 + $0xd2] sm:$0xff]  ;;  %v13822_v40 = vld [vmem:[#allocation2 + $0x61] sm:$0xff] }
 0x22f   :  { %v3350_v28 = vmax.f32 %v3214_v63, %v3222_v55  ;;  %v3986_v31 = vrot.slane %v3349_v16, %v13058_v62  ;;  %v3982_v12 = vrot.slane %v3348_v50, %v13058_v62  ;;  %v13810_v6 = vld [vmem:[#allocation2 + $0xf2] sm:$0xff]  ;;  %v4151_v58 = vld [vmem:[#allocation2 + $0xa0] sm:$0xff]  ;;  %v13859_v16 = vpack.c.bf16 %v13767_v8, %v13747_v46 }
 0x230   :  { %v4106_v4 = vsel %vm3997_vm8, %v3978_v49, %v4105_v59  ;;  %v13798_v59 = vld [vmem:[#allocation2 + $0x71] sm:$0xff]  ;;  %v4149_v50 = vld [vmem:[#allocation2 + $0x60] sm:$0xff]  ;;  %v13891_v54 = vpack.c.bf16 %v13810_v6, %v13780_v24 }
 0x231   :  { %v3990_v42 = vrot.slane %v3350_v28, %v13058_v62  ;;  %v4107_v21 = vsel %vm3999_vm9, %v3982_v12, %v4106_v4  ;;  %v13818_v55 = vld [vmem:[#allocation2 + $0x70] sm:$0xff]  ;;  %v12208_v17 = vld [vmem:[%s15291_s3 + $0x38] sm:$0xff]   ;;  %v4473_v60 = vld [vmem:[#allocation2 + $0xa2] sm:$0xff]  ;;  %v4660_v11 = vpack.c.bf16 %v4149_v50, %v13740_v14 }
 0x232   :  { %v4108_v53 = vsel %vm4001_vm10, %v3986_v31, %v4107_v21  ;;  %v13830_v63 = vld [vmem:[#allocation2 + $0xb0] sm:$0xff]  ;;  %v13837_v28 = vpack.c.bf16 %v13818_v55, %v4149_v50  ;;  %v4155_v21 = vld [vmem:[#allocation2 + $0xe0] sm:$0xff]  ;;  %v4485_v27 = vpack.c.bf16 %v13794_v33, %v4473_v60 }
 0x233   :  { %11741 = vmatmul.mubr.msk.bf16.vlgmr.msra.gmra.mrb[0].mxu1 %vm33_vm3, %v13751_v45  ;;  %v4109_v39 = vsel %vm4003_vm11, %v3990_v42, %v4108_v53  ;;  %v4163_v49 = vpack.c.bf16 %v13830_v63, %v4151_v58  ;;  %v4154_v31 = vld [vmem:[#allocation2 + $0xd0] sm:$0xff]  ;;  %v4153_v42 = vld [vmem:[#allocation2 + $0xc0] sm:$0xff] }
 0x234   :  { %11757 = vmatpush3.bf16.msra.mxu1 %v12743_v23  ;;  %11744 = vmatprep.mubr.msk.bf16.mxu1 %vm33_vm3, %v13765_v43  ;;  %4142 = vst.msk [vmem:[#allocation2 + $0x121] sm:$0xff] %vm33_vm3, %v4109_v39  ;;  %v4156_v12 = vld [vmem:[#allocation2 + $0xf0] sm:$0xff]  ;;  %v13843_v4 = vpack.c.bf16 %v4154_v31, %v4153_v42  ;;  %v4465_v39 = vld [vmem:[#allocation2 + $0x2] sm:$0xff]  ;;  %v4662_v26 = vpack.c.bf16 %v4153_v42, %v13830_v63 }
 0x235   :  { %11758 = vmatprep.subr.bf16.mxu1 %v12206_v25  ;;  %v13845_v53 = vpack.c.bf16 %v4156_v12, %v4155_v21  ;;  %v4157_v23 = vld [vmem:[#allocation2 + $0x100] sm:$0xff]  ;;  %v13897_v60 = vld [vmem:[#allocation2 + $0x112] sm:$0xff]  ;;  %v4663_v14 = vpack.c.bf16 %v4155_v21, %v4154_v31  ;;  %v4836_v63 = vpack.c.bf16 %v13820_v15, %v13760_v5 }
 0x236   :  { %v4819_v50 = vld [vmem:[#allocation2 + $0x11] sm:$0xff]  ;;  %v12213_v42 = vld [vmem:[%s15291_s3 + $0x60] sm:$0xff]  }
 0x237   :  { %v12212_v31 = vld [vmem:[%s15291_s3 + $0x58] sm:$0xff]   ;;  %v13946_v21 = vld [vmem:[#allocation2 + $0x81] sm:$0xff]  ;;  %v12221_v22 = vld [vmem:[%s15293_s5 + $0x30] sm:$0xff]  }
 0x238   :  { %11759 = vmatpush3.bf16.msra.mxu1 %v12206_v25  ;;  %v4158_v25 = vld [vmem:[#allocation2 + $0x110] sm:$0xff]  ;;  %v12219_v38 = vld [vmem:[%s15293_s5 + $0x20] sm:$0xff]  }
 0x239   :  { %11776 = vmatprep.subr.bf16.mxu1 %v12207_v0  ;;  %v13851_v58 = vpack.c.bf16 %v4158_v25, %v4157_v23  ;;  %11896 = vmatprep.subr.bf16.mxu0 %v12219_v38 }
 0x23a   :  { %11897 = vmatpush3.bf16.msra.mxu0 %v12219_v38 }
 0x23b   :  { %11745 = vmatmul.mubr.msk.bf16.gmra.mrb[4].mxu1 %vm33_vm3, %v13837_v28 }
 0x23c   :  { %11748 = vmatprep.mubr.msk.bf16.mxu1 %vm33_vm3, %v4163_v49  ;;  %v4481_v49 = vpack.c.bf16 %v13758_v9, %v4465_v39  ;;  %v12209_v39 = vld [vmem:[%s15291_s3 + $0x40] sm:$0xff]  }
 0x243   :  { %11749 = vmatmul.mubr.msk.bf16.gmra.mrb[8].mxu1 %vm33_vm3, %v13843_v4 }
 0x244   :  { %11752 = vmatprep.mubr.msk.bf16.mxu1 %vm33_vm3, %v13845_v53 }
 0x24b   :  { %11753 = vmatmul.mubr.msk.bf16.gmra.mrb[12].mxu1 %vm33_vm3, %v13851_v58 }
 0x24c   :  { %11760 = vmatprep.mubr.msk.bf16.mxu1 %vm33_vm3, %v4481_v49  ;;  %v13875_v49 = vld [vmem:[#allocation2 + $0x72] sm:$0xff] }
 0x24d   :  { %v13879_v44 = vpack.c.bf16 %v13875_v49, %v13771_v52 }
 0x253   :  { %11761 = vmatmul.mubr.msk.bf16.vlgmr.msra.gmra.mrb[0].mxu1 %vm33_vm3, %v13859_v16 }
 0x254   :  { %11777 = vmatpush3.bf16.msra.mxu1 %v12207_v0  ;;  %11764 = vmatprep.mubr.msk.bf16.mxu1 %vm33_vm3, %v13866_v35  ;;  %v13887_v0 = vpack.c.bf16 %v13808_v7, %v13773_v29 }
 0x255   :  { %11778 = vmatprep.subr.bf16.mxu1 %v12208_v17 }
 0x258   :  { %11779 = vmatpush3.bf16.msra.mxu1 %v12208_v17  ;;  %v13901_v17 = vpack.c.bf16 %v13897_v60, %v13782_v10 }
 0x259   :  { %11796 = vmatprep.subr.bf16.mxu1 %v12209_v39 }
 0x25b   :  { %11765 = vmatmul.mubr.msk.bf16.gmra.mrb[4].mxu1 %vm33_vm3, %v13879_v44 }
 0x25c   :  { %11768 = vmatprep.mubr.msk.bf16.mxu1 %vm33_vm3, %v4485_v27  ;;  %v4658_v27 = vpack.c.bf16 %v13745_v18, %v13720_v36  ;;  %v12211_v36 = vld [vmem:[%s15291_s3 + $0x50] sm:$0xff]   ;;  %v13919_v18 = vld [vmem:[#allocation2 + $0x80] sm:$0xff] }
 0x25d   :  { %v4661_v47 = vpack.c.bf16 %v13919_v18, %v13818_v55  ;;  %v4835_v55 = vpack.c.bf16 %v13784_v13, %v4819_v50 }
 0x263   :  { %11769 = vmatmul.mubr.msk.bf16.gmra.mrb[8].mxu1 %vm33_vm3, %v13887_v0 }
 0x264   :  { %11772 = vmatprep.mubr.msk.bf16.mxu1 %vm33_vm3, %v13891_v54 }
 0x26b   :  { %11773 = vmatmul.mubr.msk.bf16.gmra.mrb[12].mxu1 %vm33_vm3, %v13901_v17 }
 0x26c   :  { %11780 = vmatprep.mubr.msk.bf16.mxu1 %vm33_vm3, %v4658_v27  ;;  %v13962_v27 = vld [vmem:[#allocation2 + $0x121] sm:$0xff] }
 0x273   :  { %11781 = vmatmul.mubr.msk.bf16.vlgmr.msra.gmra.mrb[0].mxu1 %vm33_vm3, %v4659_v3  ;;  %v13928_v3 = vld [vmem:[#allocation2 + $0x120] sm:$0xff] }
 0x274   :  { %11797 = vmatpush3.bf16.msra.mxu1 %v12209_v39  ;;  %11784 = vmatprep.mubr.msk.bf16.mxu1 %vm33_vm3, %v4660_v11  ;;  %v4664_v11 = vpack.c.bf16 %v4157_v23, %v4156_v12  ;;  %v4837_v12 = vpack.c.bf16 %v13822_v40, %v13796_v41  ;;  %v4839_v23 = vpack.c.bf16 %v13662_v61, %v13597_v56  ;;  %v12220_v61 = vld [vmem:[%s15293_s5 + $0x28] sm:$0xff]  }
 0x275   :  { %11798 = vmatprep.subr.bf16.mxu1 %v12210_v37  ;;  %v15304_v39 = vpack.c.bf16 %v13726_v30, %v13706_v2  ;;  %v15305_v56 = vpack.c.bf16 %v13747_v46, %v13758_v9  ;;  %v12214_v2 = vld [vmem:[%s15291_s3 + $0x68] sm:$0xff]   ;;  %11898 = vmatprep.subr.bf16.mxu0 %v12220_v61  ;;  %v12215_v30 = vld [vmem:[%s15291_s3 + $0x70] sm:$0xff]   ;;  %v15307_v46 = vpack.c.bf16 %v13771_v52, %v13778_v1 }
 0x276   :  { %11899 = vmatpush3.bf16.msra.mxu0 %v12220_v61  ;;  %v5003_v9 = vld [vmem:[#allocation2 + $0x82] sm:$0xff]  ;;  %v15309_v52 = vpack.c.bf16 %v13780_v24, %v13808_v7  ;;  %v15310_v1 = vpack.c.bf16 %v13782_v10, %v13810_v6  ;;  %v5181_v10 = vld [vmem:[#allocation2 + $0x90] sm:$0xff]  ;;  %v15311_v7 = vpack.c.bf16 %v13760_v5, %v13784_v13 }
 0x277   :  { %11900 = vmatprep.subr.bf16.mxu0 %v12221_v22  ;;  %v12217_v24 = vld [vmem:[%s15291_s3 + $0x80] sm:$0xff]   ;;  %v12218_v6 = vld [vmem:[%s15291_s3 + $0x88] sm:$0xff]   ;;  %v5366_v13 = vld [vmem:[#allocation2 + $0x131] sm:$0xff] }
 0x278   :  { %11799 = vmatpush3.bf16.msra.mxu1 %v12210_v37  ;;  %v4665_v37 = vpack.c.bf16 %v13928_v3, %v4158_v25  ;;  %v4838_v25 = vpack.c.bf16 %v13946_v21, %v13798_v59 }
 0x279   :  { %11816 = vmatprep.subr.bf16.mxu1 %v12211_v36 }
 0x27a   :  { %11901 = vmatpush3.bf16.msra.mxu0 %v12221_v22 }
 0x27b   :  { %11785 = vmatmul.mubr.msk.bf16.gmra.mrb[4].mxu1 %vm33_vm3, %v4661_v47 }
 0x27c   :  { %11788 = vmatprep.mubr.msk.bf16.mxu1 %vm33_vm3, %v4662_v26 }
 0x283   :  { %11789 = vmatmul.mubr.msk.bf16.gmra.mrb[8].mxu1 %vm33_vm3, %v4663_v14 }
 0x284   :  { %11792 = vmatprep.mubr.msk.bf16.mxu1 %vm33_vm3, %v4664_v11 }
 0x28b   :  { %11793 = vmatmul.mubr.msk.bf16.gmra.mrb[12].mxu1 %vm33_vm3, %v4665_v37 }
 0x28c   :  { %11800 = vmatprep.mubr.msk.bf16.mxu1 %vm33_vm3, %v4835_v55 }
 0x293   :  { %11801 = vmatmul.mubr.msk.bf16.vlgmr.msra.gmra.mrb[0].mxu1 %vm33_vm3, %v4836_v63 }
 0x294   :  { %11817 = vmatpush3.bf16.msra.mxu1 %v12211_v36  ;;  %11804 = vmatprep.mubr.msk.bf16.mxu1 %vm33_vm3, %v4837_v12  ;;  %v4842_v36 = vpack.c.bf16 %v13962_v27, %v13722_v32  ;;  %v15306_v32 = vpack.c.bf16 %v13769_v34, %v13767_v8  ;;  %v5015_v8 = vpack.c.bf16 %v5003_v9, %v13875_v49 }
 0x295   :  { %11818 = vmatprep.subr.bf16.mxu1 %v12212_v31  ;;  %v15308_v34 = vpack.c.bf16 %v13773_v29, %v13794_v33  ;;  %v12216_v29 = vld [vmem:[%s15291_s3 + $0x78] sm:$0xff]  }
 0x298   :  { %11819 = vmatpush3.bf16.msra.mxu1 %v12212_v31 }
 0x299   :  { %11836 = vmatprep.subr.bf16.mxu1 %v12213_v42 }
 0x29b   :  { %11805 = vmatmul.mubr.msk.bf16.gmra.mrb[4].mxu1 %vm33_vm3, %v4838_v25 }
 0x29c   :  { %11808 = vmatprep.mubr.msk.bf16.mxu1 %vm33_vm3, %v4839_v23 }
 0x2a3   :  { %11809 = vmatmul.mubr.msk.bf16.gmra.mrb[8].mxu1 %vm33_vm3, %v4840_v19  ;;  %v5011_v19 = vld [vmem:[#allocation2 + $0x122] sm:$0xff] }
 0x2a4   :  { %11812 = vmatprep.mubr.msk.bf16.mxu1 %vm33_vm3, %v15304_v39  ;;  %v5019_v49 = vpack.c.bf16 %v5011_v19, %v13897_v60 }
 0x2ab   :  { %11813 = vmatmul.mubr.msk.bf16.gmra.mrb[12].mxu1 %vm33_vm3, %v4842_v36 }
 0x2ac   :  { %11820 = vmatprep.mubr.msk.bf16.mxu1 %vm33_vm3, %v15305_v56 }
 0x2b3   :  { %11821 = vmatmul.mubr.msk.bf16.vlgmr.msra.gmra.mrb[0].mxu1 %vm33_vm3, %v15306_v32 }
 0x2b4   :  { %11837 = vmatpush3.bf16.msra.mxu1 %v12213_v42  ;;  %11824 = vmatprep.mubr.msk.bf16.mxu1 %vm33_vm3, %v15307_v46 }
 0x2b5   :  { %11838 = vmatprep.subr.bf16.mxu1 %v12214_v2 }
 0x2b8   :  { %11839 = vmatpush3.bf16.msra.mxu1 %v12214_v2 }
 0x2b9   :  { %11856 = vmatprep.subr.bf16.mxu1 %v12215_v30 }
 0x2bb   :  { %11825 = vmatmul.mubr.msk.bf16.gmra.mrb[4].mxu1 %vm33_vm3, %v5015_v8 }
 0x2bc   :  { %11828 = vmatprep.mubr.msk.bf16.mxu1 %vm33_vm3, %v15308_v34 }
 0x2c3   :  { %11829 = vmatmul.mubr.msk.bf16.gmra.mrb[8].mxu1 %vm33_vm3, %v15309_v52 }
 0x2c4   :  { %11832 = vmatprep.mubr.msk.bf16.mxu1 %vm33_vm3, %v15310_v1 }
 0x2cb   :  { %11833 = vmatmul.mubr.msk.bf16.gmra.mrb[12].mxu1 %vm33_vm3, %v5019_v49 }
 0x2cc   :  { %11840 = vmatprep.mubr.msk.bf16.mxu1 %vm33_vm3, %v13751_v45  ;;  %v5193_v45 = vpack.c.bf16 %v5181_v10, %v13919_v18 }
 0x2d3   :  { %11841 = vmatmul.mubr.msk.bf16.vlgmr.msra.gmra.mrb[0].mxu1 %vm33_vm3, %v13765_v43  ;;  %v5189_v43 = vld [vmem:[#allocation2 + $0x130] sm:$0xff] }
 0x2d4   :  { %11857 = vmatpush3.bf16.msra.mxu1 %v12215_v30  ;;  %11844 = vmatprep.mubr.msk.bf16.mxu1 %vm33_vm3, %v13837_v28  ;;  %v5197_v33 = vpack.c.bf16 %v5189_v43, %v13928_v3  ;;  %v15312_v28 = vpack.c.bf16 %v13796_v41, %v13820_v15  ;;  %v5374_v41 = vpack.c.bf16 %v5366_v13, %v13962_v27  ;;  %v15314_v15 = vmov 0.0  }
 0x2d5   :  { %11858 = vmatprep.subr.bf16.mxu1 %v12216_v29  ;;  %78 = vst.msk [vmem:[#allocation3 + $0x10] sm:$0x3f] %vm75_vm12, %v15314_v15  ;;  %76 = vst.msk [vmem:[#allocation3] sm:$0x3f] %vm75_vm12, %v15314_v15 }
 0x2d6   :  { %77 = vst.msk [vmem:[#allocation3 + $0x8] sm:$0x3f] %vm75_vm12, %v15314_v15  ;;  %79 = vst.msk [vmem:[#allocation3 + $0x18] sm:$0x3f] %vm75_vm12, %v15314_v15 }
 0x2d7   :  { %80 = vst.msk [vmem:[#allocation3 + $0x20] sm:$0x3f] %vm75_vm12, %v15314_v15  ;;  %81 = vst.msk [vmem:[#allocation3 + $0x28] sm:$0x3f] %vm75_vm12, %v15314_v15 }
 0x2d8   :  { %11859 = vmatpush3.bf16.msra.mxu1 %v12216_v29  ;;  %82 = vst.msk [vmem:[#allocation3 + $0x30] sm:$0x3f] %vm75_vm12, %v15314_v15  ;;  %83 = vst.msk [vmem:[#allocation3 + $0x38] sm:$0x3f] %vm75_vm12, %v15314_v15 }
 0x2d9   :  { %11876 = vmatprep.subr.bf16.mxu1 %v12217_v24  ;;  %84 = vst.msk [vmem:[#allocation3 + $0x40] sm:$0x3f] %vm75_vm12, %v15314_v15  ;;  %85 = vst.msk [vmem:[#allocation3 + $0x48] sm:$0x3f] %vm75_vm12, %v15314_v15 }
 0x2da   :  { %86 = vst.msk [vmem:[#allocation3 + $0x50] sm:$0x3f] %vm75_vm12, %v15314_v15  ;;  %87 = vst.msk [vmem:[#allocation3 + $0x58] sm:$0x3f] %vm75_vm12, %v15314_v15 }
 0x2db   :  { %11845 = vmatmul.mubr.msk.bf16.gmra.mrb[4].mxu1 %vm33_vm3, %v5193_v45 }
 0x2dc   :  { %11848 = vmatprep.mubr.msk.bf16.mxu1 %vm33_vm3, %v13843_v4  ;;  %v15313_v4 = vpack.c.bf16 %v13798_v59, %v13822_v40  ;;  %v14089_v40 = vld [vmem:[%s15293_s5] sm:$0xff]  }
 0x2e3   :  { %11849 = vmatmul.mubr.msk.bf16.gmra.mrb[8].mxu1 %vm33_vm3, %v13845_v53  ;;  %v5358_v53 = vld [vmem:[#allocation2 + $0x91] sm:$0xff] }
 0x2e4   :  { %11852 = vmatprep.mubr.msk.bf16.mxu1 %vm33_vm3, %v13851_v58  ;;  %v5370_v5 = vpack.c.bf16 %v5358_v53, %v13946_v21 }
 0x2eb   :  { %11853 = vmatmul.mubr.msk.bf16.gmra.mrb[12].mxu1 %vm33_vm3, %v5197_v33 }
 0x2ec   :  { %11860 = vmatprep.mubr.msk.bf16.mxu1 %vm33_vm3, %v15311_v7 }
 0x2f3   :  { %11861 = vmatmul.mubr.msk.bf16.vlgmr.msra.gmra.mrb[0].mxu1 %vm33_vm3, %v15312_v28 }
 0x2f4   :  { %11877 = vmatpush3.bf16.msra.mxu1 %v12217_v24  ;;  %11864 = vmatprep.mubr.msk.bf16.mxu1 %vm33_vm3, %v15313_v4 }
 0x2f5   :  { %11878 = vmatprep.subr.bf16.mxu1 %v12218_v6 }
 0x2f8   :  { %11879 = vmatpush3.bf16.msra.mxu1 %v12218_v6 }
 0x2fb   :  { %11865 = vmatmul.mubr.msk.bf16.gmra.mrb[4].mxu1 %vm33_vm3, %v5370_v5 }
 0x2fc   :  { %11868 = vmatprep.mubr.msk.bf16.mxu1 %vm33_vm3, %v13667_v51  ;;  %v5535_v51 = vld [vmem:[#allocation2 + $0x92] sm:$0xff] }
 0x2fd   :  { %v5547_v59 = vpack.c.bf16 %v5535_v51, %v5003_v9 }
 0x303   :  { %11869 = vmatmul.mubr.msk.bf16.gmra.mrb[8].mxu1 %vm33_vm3, %v13718_v57  ;;  %v5543_v57 = vld [vmem:[#allocation2 + $0x132] sm:$0xff] }
 0x304   :  { %11872 = vmatprep.mubr.msk.bf16.mxu1 %vm33_vm3, %v13730_v20  ;;  %v5551_v20 = vpack.c.bf16 %v5543_v57, %v5011_v19 }
 0x30b   :  { %11873 = vmatmul.mubr.msk.bf16.gmra.mrb[12].mxu1 %vm33_vm3, %v5374_v41 }
 0x30c   :  { %11880 = vmatprep.mubr.msk.bf16.mxu1 %vm33_vm3, %v13859_v16 }
 0x313   :  { %11881 = vmatmul.mubr.msk.bf16.vlgmr.msra.gmra.mrb[0].mxu1 %vm33_vm3, %v13866_v35 }
 0x314   :  { %11884 = vmatprep.mubr.msk.bf16.mxu1 %vm33_vm3, %v13879_v44  ;;  %v14095_v44 = vld [vmem:[%s15294_s4] ss:$0 sm:$0xff] }
 0x31b   :  { %11885 = vmatmul.mubr.msk.bf16.gmra.mrb[4].mxu1 %vm33_vm3, %v5547_v59 }
 0x31c   :  { %11888 = vmatprep.mubr.msk.bf16.mxu1 %vm33_vm3, %v13887_v0 }
 0x323   :  { %11889 = vmatmul.mubr.msk.bf16.gmra.mrb[8].mxu1 %vm33_vm3, %v13891_v54  ;;  %v12222_v54 = vld [vmem:[%s15293_s5 + $0x38] sm:$0xff]  }
 0x324   :  { %11892 = vmatprep.mubr.msk.bf16.mxu1 %vm33_vm3, %v13901_v17  ;;  %11902 = vmatprep.subr.bf16.mxu0 %v12222_v54 }
 0x325   :  { %11903 = vmatpush3.bf16.msra.mxu0 %v12222_v54 }
 0x326   :  { %11908 = vmatprep.subr.bf16.mxu0 %v14089_v40 }
 0x32b   :  { %11893 = vmatmul.mubr.msk.bf16.gmra.mrb[12].mxu1 %vm33_vm3, %v5551_v20 }
 0x3e6   :  { %v11882_v35 = vpop.f32.mrb[0].mxu1 }
 0x3e7   :  { %v5714_v16 = vadd.f32 %v11882_v35, %v14095_v44  ;;  %v5626_v58 = vpop.f32.mrb[1].mxu1 }
 0x3e8   :  { %v5712_v0 = vadd.f32 %v14095_v44, %v5626_v58  ;;  %v11883_v60 = vpop.f32.mrb[2].mxu1 }
 0x3e9   :  { %v5730_v17 = vmax.f32 %v5714_v16, 0.0  ;;  %v5715_v18 = vadd.f32 %v11883_v60, %v14095_v44  ;;  %v5629_v47 = vpop.f32.mrb[3].mxu1 }
 0x3ea   :  { %v5728_v26 = vmax.f32 %v5712_v0, 0.0  ;;  %v5713_v14 = vadd.f32 %v14095_v44, %v5629_v47 }
 0x3eb   :  { %v5794_v11 = vcombine.high %v5730_v17, %v5730_v17  ;;  %v5801_v3 = vrot.slane %v5730_v17, %v13050_v48  ;;  %v5731_v37 = vmax.f32 %v5715_v18, 0.0 }
 0x3ec   :  { %v5760_v50 = vcombine.high %v5728_v26, %v5728_v26  ;;  %v5767_v55 = vrot.slane %v5728_v26, %v13050_v48  ;;  %v5729_v63 = vmax.f32 %v5713_v14, 0.0 }
 0x3ed   :  { %v5808_v31 = vrot.slane %v5794_v11, %v13050_v48  ;;  %v5809_v12 = vcombine.high %v5801_v3, %v5801_v3  ;;  %v11058_v42 = vrot.slane %v5801_v3, 9  ;;  %v5811_v21 = vcombine.high %v5731_v37, %v5731_v37 }
 0x3ee   :  { %v5774_v25 = vrot.slane %v5760_v50, %v13050_v48  ;;  %v5775_v23 = vcombine.high %v5767_v55, %v5767_v55  ;;  %v11050_v39 = vrot.slane %v5767_v55, 9  ;;  %v5818_v27 = vrot.slane %v5731_v37, %v13050_v48  ;;  %v11886_v36 = vpop.f32.mrb[4].mxu1 }
 0x3ef   :  { %v5810_v56 = vcombine.high %v5808_v31, %v5808_v31  ;;  %v11059_v38 = vrot.slane %v5809_v12, 9  ;;  %v11060_v61 = vrot.slane %v5808_v31, 9  ;;  %v6296_v2 = vmax.f32 %v5801_v3, %v11058_v42  ;;  %v14106_v22 = vpop.f32.mrb[5].mxu1 }
 0x3f0   :  { %v5776_v32 = vcombine.high %v5774_v25, %v5774_v25  ;;  %v11051_v30 = vrot.slane %v5775_v23, 9  ;;  %v11052_v46 = vrot.slane %v5774_v25, 9  ;;  %v6288_v9 = vmax.f32 %v5767_v55, %v11050_v39  ;;  %v14108_v8 = vpop.f32.mrb[6].mxu1 }
 0x3f1   :  { %v11061_v34 = vrot.slane %v5810_v56, 9  ;;  %v6297_v52 = vmax.f32 %v5809_v12, %v11059_v38  ;;  %v6298_v1 = vmax.f32 %v5808_v31, %v11060_v61  ;;  %v5825_v19 = vrot.slane %v5811_v21, %v13050_v48  ;;  %v14111_v49 = vpop.f32.mrb[7].mxu1 }
 0x3f2   :  { %v11053_v29 = vrot.slane %v5776_v32, 9  ;;  %v6289_v24 = vmax.f32 %v5775_v23, %v11051_v30  ;;  %v6290_v10 = vmax.f32 %v5774_v25, %v11052_v46  ;;  %v5826_v45 = vcombine.high %v5818_v27, %v5818_v27 }
 0x3f3   :  { %v6299_v43 = vmax.f32 %v5810_v56, %v11061_v34  ;;  %v5827_v33 = vcombine.high %v5825_v19, %v5825_v19  ;;  %v11062_v7 = vrot.slane %v5818_v27, 9  ;;  %v11064_v6 = vrot.slane %v5825_v19, 9 }
 0x3f4   :  { %v6291_v28 = vmax.f32 %v5776_v32, %v11053_v29  ;;  %v11063_v4 = vrot.slane %v5826_v45, 9  ;;  %v5777_v53 = vcombine.high %v5729_v63, %v5729_v63  ;;  %v5784_v5 = vrot.slane %v5729_v63, %v13050_v48 }
 0x3f5   :  { %v11065_v13 = vrot.slane %v5827_v33, 9  ;;  %v6300_v41 = vmax.f32 %v5818_v27, %v11062_v7  ;;  %v6302_v51 = vmax.f32 %v5825_v19, %v11064_v6  ;;  %v5718_v59 = vadd.f32 %v11886_v36, %v14095_v44 }
 0x3f6   :  { %v6301_v57 = vmax.f32 %v5826_v45, %v11063_v4  ;;  %v5791_v20 = vrot.slane %v5777_v53, %v13050_v48  ;;  %v5792_v15 = vcombine.high %v5784_v5, %v5784_v5  ;;  %v11054_v54 = vrot.slane %v5784_v5, 9  ;;  %v11890_v35 = vpop.f32.mrb[8].mxu1 }
 0x3f7   :  { %v6303_v16 = vmax.f32 %v5827_v33, %v11065_v13  ;;  %v6356_v58 = vmax.f32 %v6296_v2, %v6300_v41  ;;  %v6358_v0 = vmax.f32 %v6298_v1, %v6302_v51  ;;  %v5734_v60 = vmax.f32 %v5718_v59, 0.0  ;;  %v5658_v17 = vpop.f32.mrb[9].mxu1 }
 0x3f8   :  { %v6357_v18 = vmax.f32 %v6297_v52, %v6301_v57  ;;  %v5793_v47 = vcombine.high %v5791_v20, %v5791_v20  ;;  %v11055_v26 = vrot.slane %v5792_v15, 9  ;;  %v11056_v14 = vrot.slane %v5791_v20, 9  ;;  %v11891_v11 = vpop.f32.mrb[10].mxu1 }
 0x3f9   :  { %v6359_v3 = vmax.f32 %v6299_v43, %v6303_v16  ;;  %v6435_v37 = vrot.slane %v6356_v58, %v13058_v62  ;;  %v6443_v50 = vrot.slane %v6358_v0, %v13058_v62  ;;  %v6292_v55 = vmax.f32 %v5784_v5, %v11054_v54  ;;  %v14118_v63 = vpop.f32.mrb[11].mxu1 }
 0x3fa   :  { %v6439_v31 = vrot.slane %v6357_v18, %v13058_v62  ;;  %v11057_v12 = vrot.slane %v5793_v47, 9  ;;  %v6293_v42 = vmax.f32 %v5792_v15, %v11055_v26  ;;  %v6294_v21 = vmax.f32 %v5791_v20, %v11056_v14 }
 0x3fb   :  { %v6447_v25 = vrot.slane %v6359_v3, %v13058_v62  ;;  %v6352_v23 = vmax.f32 %v6288_v9, %v6292_v55  ;;  %v5862_v39 = vcombine.high %v5734_v60, %v5734_v60  ;;  %v5869_v27 = vrot.slane %v5734_v60, %v13050_v48 }
 0x3fc   :  { %v6547_v36 = vsel %vm3991_vm5, %v6439_v31, %v6435_v37  ;;  %v6295_v56 = vmax.f32 %v5793_v47, %v11057_v12  ;;  %v6353_v38 = vmax.f32 %v6289_v24, %v6293_v42  ;;  %v6354_v61 = vmax.f32 %v6290_v10, %v6294_v21 }
 0x3fd   :  { %v6548_v2 = vsel %vm3993_vm6, %v6443_v50, %v6547_v36  ;;  %v6419_v32 = vrot.slane %v6352_v23, %v13058_v62  ;;  %v5876_v30 = vrot.slane %v5862_v39, %v13050_v48  ;;  %v5877_v46 = vcombine.high %v5869_v27, %v5869_v27 }
 0x3fe   :  { %v6549_v34 = vsel %vm3995_vm7, %v6447_v25, %v6548_v2  ;;  %v6355_v52 = vmax.f32 %v6291_v28, %v6295_v56  ;;  %v6423_v9 = vrot.slane %v6353_v38, %v13058_v62  ;;  %v6427_v1 = vrot.slane %v6354_v61, %v13058_v62  ;;  %v14130_v19 = vpop.f32.mrb[12].mxu1 }
 0x3ff   :  { %6579 = vst.msk [vmem:[#allocation3 + $0x11] sm:$0xf] %vm6577_vm13, %v6549_v34  ;;  %v5878_v29 = vcombine.high %v5876_v30, %v5876_v30  ;;  %v11074_v24 = vrot.slane %v5869_v27, 9  ;;  %v11075_v10 = vrot.slane %v5877_v46, 9  ;;  %v11076_v45 = vrot.slane %v5876_v30, 9  ;;  %v14133_v43 = vpop.f32.mrb[13].mxu1 }
 0x400   :  { %v6431_v33 = vrot.slane %v6355_v52, %v13058_v62  ;;  %v6544_v7 = vsel %vm3991_vm5, %v6423_v9, %v6419_v32  ;;  %v5716_v6 = vadd.f32 %v14095_v44, %v14106_v22  ;;  %v5719_v28 = vadd.f32 %v14108_v8, %v14095_v44  ;;  %v14141_v4 = vpop.f32.mrb[14].mxu1 }
 0x401   :  { %v6545_v53 = vsel %vm3993_vm6, %v6427_v1, %v6544_v7  ;;  %v11077_v5 = vrot.slane %v5878_v29, 9  ;;  %v6312_v13 = vmax.f32 %v5869_v27, %v11074_v24  ;;  %v6313_v41 = vmax.f32 %v5877_v46, %v11075_v10  ;;  %v14144_v51 = vpop.f32.mrb[15].mxu1 }
 0x402   :  { %v6546_v59 = vsel %vm3995_vm7, %v6431_v33, %v6545_v53  ;;  %v6314_v57 = vmax.f32 %v5876_v30, %v11076_v45  ;;  %v5732_v20 = vmax.f32 %v5716_v6, 0.0  ;;  %v5735_v15 = vmax.f32 %v5719_v28, 0.0 }
 0x403   :  { %6578 = vst.msk [vmem:[#allocation3 + $0x9] sm:$0xf] %vm6577_vm13, %v6546_v59  ;;  %v6315_v22 = vmax.f32 %v5878_v29, %v11077_v5  ;;  %v5717_v8 = vadd.f32 %v14095_v44, %v14111_v49  ;;  %v5722_v54 = vadd.f32 %v11890_v35, %v14095_v44  ;;  %v5720_v16 = vadd.f32 %v14095_v44, %v5658_v17 }
 0x404   :  { %v5828_v58 = vcombine.high %v5732_v20, %v5732_v20  ;;  %v5835_v0 = vrot.slane %v5732_v20, %v13050_v48  ;;  %v5879_v60 = vcombine.high %v5735_v15, %v5735_v15  ;;  %v5886_v18 = vrot.slane %v5735_v15, %v13050_v48 }
 0x405   :  { %v5733_v47 = vmax.f32 %v5717_v8, 0.0  ;;  %v5738_v26 = vmax.f32 %v5722_v54, 0.0  ;;  %v14154_v14 = vmax.f32 %v5720_v16, 0.0  ;;  %v14157_v3 = vadd.f32 %v11891_v11, %v14095_v44 }
 0x406   :  { %v5842_v37 = vrot.slane %v5828_v58, %v13050_v48  ;;  %v5843_v49 = vcombine.high %v5835_v0, %v5835_v0  ;;  %v11066_v50 = vrot.slane %v5835_v0, 9  ;;  %v5893_v35 = vrot.slane %v5879_v60, %v13050_v48 }
 0x407   :  { %v5894_v17 = vcombine.high %v5886_v18, %v5886_v18  ;;  %v11078_v55 = vrot.slane %v5886_v18, 9  ;;  %v5845_v31 = vcombine.high %v5733_v47, %v5733_v47  ;;  %v5852_v12 = vrot.slane %v5733_v47, %v13050_v48 }
 0x408   :  { %v5844_v42 = vcombine.high %v5842_v37, %v5842_v37  ;;  %v11067_v21 = vrot.slane %v5843_v49, 9  ;;  %v11068_v25 = vrot.slane %v5842_v37, 9  ;;  %v6304_v23 = vmax.f32 %v5835_v0, %v11066_v50 }
 0x409   :  { %v5895_v39 = vcombine.high %v5893_v35, %v5893_v35  ;;  %v11079_v27 = vrot.slane %v5894_v17, 9  ;;  %v11080_v36 = vrot.slane %v5893_v35, 9  ;;  %v6316_v11 = vmax.f32 %v5886_v18, %v11078_v55 }
 0x40a   :  { %v11069_v56 = vrot.slane %v5844_v42, 9  ;;  %v6305_v38 = vmax.f32 %v5843_v49, %v11067_v21  ;;  %v6306_v61 = vmax.f32 %v5842_v37, %v11068_v25  ;;  %v5859_v2 = vrot.slane %v5845_v31, %v13050_v48 }
 0x40b   :  { %v11081_v32 = vrot.slane %v5895_v39, 9  ;;  %v6317_v30 = vmax.f32 %v5894_v17, %v11079_v27  ;;  %v6318_v46 = vmax.f32 %v5893_v35, %v11080_v36  ;;  %v6364_v34 = vmax.f32 %v6312_v13, %v6316_v11 }
 0x40c   :  { %v6307_v52 = vmax.f32 %v5844_v42, %v11069_v56  ;;  %v5860_v9 = vcombine.high %v5852_v12, %v5852_v12  ;;  %v5861_v1 = vcombine.high %v5859_v2, %v5859_v2  ;;  %v11070_v29 = vrot.slane %v5852_v12, 9 }
 0x40d   :  { %v6319_v24 = vmax.f32 %v5895_v39, %v11081_v32  ;;  %v6365_v10 = vmax.f32 %v6313_v41, %v6317_v30  ;;  %v6366_v45 = vmax.f32 %v6314_v57, %v6318_v46  ;;  %v6467_v33 = vrot.slane %v6364_v34, %v13058_v62 }
 0x40e   :  { %v11071_v7 = vrot.slane %v5860_v9, 9  ;;  %v11072_v6 = vrot.slane %v5859_v2, 9  ;;  %v11073_v28 = vrot.slane %v5861_v1, 9  ;;  %v6308_v53 = vmax.f32 %v5852_v12, %v11070_v29 }
 0x40f   :  { %v6367_v5 = vmax.f32 %v6315_v22, %v6319_v24  ;;  %v6471_v59 = vrot.slane %v6365_v10, %v13058_v62  ;;  %v6475_v20 = vrot.slane %v6366_v45, %v13058_v62  ;;  %v5930_v15 = vcombine.high %v5738_v26, %v5738_v26 }
 0x410   :  { %v6309_v13 = vmax.f32 %v5860_v9, %v11071_v7  ;;  %v6310_v8 = vmax.f32 %v5859_v2, %v11072_v6  ;;  %v6311_v54 = vmax.f32 %v5861_v1, %v11073_v28  ;;  %v6360_v16 = vmax.f32 %v6304_v23, %v6308_v53 }
 0x411   :  { %v6479_v58 = vrot.slane %v6367_v5, %v13058_v62  ;;  %v6553_v41 = vsel %vm3991_vm5, %v6471_v59, %v6467_v33  ;;  %v5937_v57 = vrot.slane %v5738_v26, %v13050_v48  ;;  %v5944_v0 = vrot.slane %v5930_v15, %v13050_v48 }
 0x412   :  { %v6554_v60 = vsel %vm3993_vm6, %v6475_v20, %v6553_v41  ;;  %v6361_v22 = vmax.f32 %v6305_v38, %v6309_v13  ;;  %v6362_v18 = vmax.f32 %v6306_v61, %v6310_v8  ;;  %v6363_v47 = vmax.f32 %v6307_v52, %v6311_v54 }
 0x413   :  { %v6555_v37 = vsel %vm3995_vm7, %v6479_v58, %v6554_v60  ;;  %v6451_v49 = vrot.slane %v6360_v16, %v13058_v62  ;;  %v5945_v50 = vcombine.high %v5937_v57, %v5937_v57  ;;  %v5946_v35 = vcombine.high %v5944_v0, %v5944_v0 }
 0x414   :  { %6581 = vst.msk [vmem:[#allocation3 + $0x21] sm:$0xf] %vm6577_vm13, %v6555_v37  ;;  %v6455_v17 = vrot.slane %v6361_v22, %v13058_v62  ;;  %v6459_v55 = vrot.slane %v6362_v18, %v13058_v62  ;;  %v6463_v26 = vrot.slane %v6363_v47, %v13058_v62  ;;  %v11090_v31 = vrot.slane %v5937_v57, 9 }
 0x415   :  { %v11091_v12 = vrot.slane %v5945_v50, 9  ;;  %v11092_v42 = vrot.slane %v5944_v0, 9  ;;  %v5896_v21 = vcombine.high %v14154_v14, %v14154_v14  ;;  %v11093_v23 = vrot.slane %v5946_v35, 9 }
 0x416   :  { %v6550_v25 = vsel %vm3991_vm5, %v6455_v17, %v6451_v49  ;;  %v5903_v39 = vrot.slane %v14154_v14, %v13050_v48  ;;  %v5739_v27 = vmax.f32 %v14157_v3, 0.0  ;;  %v6328_v11 = vmax.f32 %v5937_v57, %v11090_v31 }
 0x417   :  { %v6551_v36 = vsel %vm3993_vm6, %v6459_v55, %v6550_v25  ;;  %v6329_v56 = vmax.f32 %v5945_v50, %v11091_v12  ;;  %v6330_v38 = vmax.f32 %v5944_v0, %v11092_v42  ;;  %v5910_v2 = vrot.slane %v5896_v21, %v13050_v48 }
 0x418   :  { %v6552_v61 = vsel %vm3995_vm7, %v6463_v26, %v6551_v36  ;;  %v5911_v32 = vcombine.high %v5903_v39, %v5903_v39  ;;  %v11082_v30 = vrot.slane %v5903_v39, 9  ;;  %v5947_v46 = vcombine.high %v5739_v27, %v5739_v27 }
 0x419   :  { %6580 = vst.msk [vmem:[#allocation3 + $0x19] sm:$0xf] %vm6577_vm13, %v6552_v61  ;;  %v5954_v34 = vrot.slane %v5739_v27, %v13050_v48  ;;  %v5721_v14 = vadd.f32 %v14095_v44, %v14118_v63  ;;  %v5726_v3 = vadd.f32 %v14130_v19, %v14095_v44  ;;  %v6331_v52 = vmax.f32 %v5946_v35, %v11093_v23 }
 0x41a   :  { %v5912_v9 = vcombine.high %v5910_v2, %v5910_v2  ;;  %v11083_v1 = vrot.slane %v5911_v32, 9  ;;  %v11084_v29 = vrot.slane %v5910_v2, 9  ;;  %v5961_v24 = vrot.slane %v5947_v46, %v13050_v48 }
 0x41b   :  { %v5962_v10 = vcombine.high %v5954_v34, %v5954_v34  ;;  %v11094_v45 = vrot.slane %v5954_v34, 9  ;;  %v5737_v33 = vmax.f32 %v5721_v14, 0.0  ;;  %v6320_v6 = vmax.f32 %v5903_v39, %v11082_v30 }
 0x41c   :  { %v11085_v7 = vrot.slane %v5912_v9, 9  ;;  %v6321_v28 = vmax.f32 %v5911_v32, %v11083_v1  ;;  %v5742_v53 = vmax.f32 %v5726_v3, 0.0  ;;  %v5963_v5 = vcombine.high %v5961_v24, %v5961_v24 }
 0x41d   :  { %v11095_v59 = vrot.slane %v5962_v10, 9  ;;  %v11096_v20 = vrot.slane %v5961_v24, 9  ;;  %v6332_v63 = vmax.f32 %v5954_v34, %v11094_v45  ;;  %v6322_v15 = vmax.f32 %v5910_v2, %v11084_v29 }
 0x41e   :  { %v5913_v13 = vcombine.high %v5737_v33, %v5737_v33  ;;  %v5920_v19 = vrot.slane %v5737_v33, %v13050_v48  ;;  %v5998_v8 = vcombine.high %v5742_v53, %v5742_v53  ;;  %v11097_v54 = vrot.slane %v5963_v5, 9 }
 0x41f   :  { %v6333_v16 = vmax.f32 %v5962_v10, %v11095_v59  ;;  %v6334_v58 = vmax.f32 %v5961_v24, %v11096_v20  ;;  %v6372_v41 = vmax.f32 %v6328_v11, %v6332_v63  ;;  %v6005_v22 = vrot.slane %v5742_v53, %v13050_v48 }
 0x420   :  { %v5927_v57 = vrot.slane %v5913_v13, %v13050_v48  ;;  %v5928_v0 = vcombine.high %v5920_v19, %v5920_v19  ;;  %v11086_v60 = vrot.slane %v5920_v19, 9  ;;  %v6335_v18 = vmax.f32 %v5963_v5, %v11097_v54 }
 0x421   :  { %v6373_v47 = vmax.f32 %v6329_v56, %v6333_v16  ;;  %v6374_v37 = vmax.f32 %v6330_v38, %v6334_v58  ;;  %v6499_v49 = vrot.slane %v6372_v41, %v13058_v62  ;;  %v6012_v42 = vrot.slane %v5998_v8, %v13050_v48 }
 0x422   :  { %v5929_v50 = vcombine.high %v5927_v57, %v5927_v57  ;;  %v11087_v35 = vrot.slane %v5928_v0, 9  ;;  %v11088_v17 = vrot.slane %v5927_v57, 9  ;;  %v6324_v55 = vmax.f32 %v5920_v19, %v11086_v60 }
 0x423   :  { %v6375_v26 = vmax.f32 %v6331_v52, %v6335_v18  ;;  %v6503_v31 = vrot.slane %v6373_v47, %v13058_v62  ;;  %v6507_v12 = vrot.slane %v6374_v37, %v13058_v62  ;;  %v6323_v27 = vmax.f32 %v5912_v9, %v11085_v7  ;;  %v12224_v9 = vld [vmem:[#allocation3 + $0x11] ss:$8 sps:$4 sm:$0xff]  }
 0x424   :  { %v11089_v21 = vrot.slane %v5929_v50, 9  ;;  %v6325_v25 = vmax.f32 %v5928_v0, %v11087_v35  ;;  %v6326_v23 = vmax.f32 %v5927_v57, %v11088_v17  ;;  %v6368_v39 = vmax.f32 %v6320_v6, %v6324_v55  ;;  %v12223_v6 = vld [vmem:[#allocation3 + $0x1] ss:$8 sps:$4 sm:$0xff]  }
 0x425   :  { %v6511_v36 = vrot.slane %v6375_v26, %v13058_v62  ;;  %v6559_v11 = vsel %vm3991_vm5, %v6503_v31, %v6499_v49  ;;  %v6013_v56 = vcombine.high %v6005_v22, %v6005_v22  ;;  %v6014_v46 = vcombine.high %v6012_v42, %v6012_v42 }
 0x426   :  { %v6560_v38 = vsel %vm3993_vm6, %v6507_v12, %v6559_v11  ;;  %v6327_v61 = vmax.f32 %v5929_v50, %v11089_v21  ;;  %v6369_v2 = vmax.f32 %v6321_v28, %v6325_v25  ;;  %v6370_v32 = vmax.f32 %v6322_v15, %v6326_v23 }
 0x427   :  { %v6561_v30 = vsel %vm3995_vm7, %v6511_v36, %v6560_v38  ;;  %v6483_v14 = vrot.slane %v6368_v39, %v13058_v62  ;;  %v11106_v1 = vrot.slane %v6005_v22, 9  ;;  %v11107_v29 = vrot.slane %v6013_v56, 9 }
 0x428   :  { %6583 = vst.msk [vmem:[#allocation3 + $0x41] sm:$0xf] %vm6577_vm13, %v6561_v30  ;;  %v6371_v34 = vmax.f32 %v6323_v27, %v6327_v61  ;;  %v6487_v3 = vrot.slane %v6369_v2, %v13058_v62  ;;  %v6491_v52 = vrot.slane %v6370_v32, %v13058_v62  ;;  %v5724_v24 = vadd.f32 %v14095_v44, %v14133_v43 }
 0x429   :  { %v11108_v33 = vrot.slane %v6012_v42, 9  ;;  %v5727_v7 = vadd.f32 %v14141_v4, %v14095_v44  ;;  %v5725_v5 = vadd.f32 %v14095_v44, %v14144_v51  ;;  %v11109_v20 = vrot.slane %v6014_v46, 9 }
 0x42a   :  { %v6495_v10 = vrot.slane %v6371_v34, %v13058_v62  ;;  %v6556_v45 = vsel %vm3991_vm5, %v6487_v3, %v6483_v14  ;;  %v5740_v53 = vmax.f32 %v5724_v24, 0.0  ;;  %v6644_v63 = vpack.c.bf16 %v12224_v9, %v12223_v6 }
 0x42b   :  { %v6557_v28 = vsel %vm3993_vm6, %v6491_v52, %v6556_v45  ;;  %v5743_v43 = vmax.f32 %v5727_v7, 0.0  ;;  %v6344_v15 = vmax.f32 %v6005_v22, %v11106_v1  ;;  %v5741_v4 = vmax.f32 %v5725_v5, 0.0 }
 0x42c   :  { %v6558_v59 = vsel %vm3995_vm7, %v6495_v10, %v6557_v28  ;;  %v5964_v13 = vcombine.high %v5740_v53, %v5740_v53  ;;  %v5971_v19 = vrot.slane %v5740_v53, %v13050_v48  ;;  %v6345_v8 = vmax.f32 %v6013_v56, %v11107_v29  ;;  %11904 = vmatprep.mubr.msk.bf16.mxu0 %vm6678_vm14, %v6644_v63 }
 0x42d   :  { %6582 = vst.msk [vmem:[#allocation3 + $0x39] sm:$0xf] %vm6577_vm13, %v6558_v59  ;;  %v6346_v54 = vmax.f32 %v6012_v42, %v11108_v33  ;;  %v6015_v16 = vcombine.high %v5743_v43, %v5743_v43  ;;  %v6022_v58 = vrot.slane %v5743_v43, %v13050_v48  ;;  %v5981_v57 = vcombine.high %v5741_v4, %v5741_v4 }
 0x42e   :  { %v5978_v44 = vrot.slane %v5964_v13, %v13050_v48  ;;  %v5979_v51 = vcombine.high %v5971_v19, %v5971_v19  ;;  %v11098_v41 = vrot.slane %v5971_v19, 9  ;;  %v6347_v0 = vmax.f32 %v6014_v46, %v11109_v20 }
 0x42f   :  { %v6029_v60 = vrot.slane %v6015_v16, %v13050_v48  ;;  %v6030_v22 = vcombine.high %v6022_v58, %v6022_v58  ;;  %v11110_v18 = vrot.slane %v6022_v58, 9  ;;  %v5988_v50 = vrot.slane %v5741_v4, %v13050_v48  ;;  %v12229_v16 = vld [vmem:[#allocation3 + $0x10] ss:$8 sps:$4 sm:$0xff]  }
 0x430   :  { %v5980_v47 = vcombine.high %v5978_v44, %v5978_v44  ;;  %v11099_v37 = vrot.slane %v5979_v51, 9  ;;  %v11100_v49 = vrot.slane %v5978_v44, 9  ;;  %v6336_v12 = vmax.f32 %v5971_v19, %v11098_v41  ;;  %v12230_v41 = vld [vmem:[%s15293_s5 + $0x8] sm:$0xff]  }
 0x431   :  { %v6031_v35 = vcombine.high %v6029_v60, %v6029_v60  ;;  %v11111_v17 = vrot.slane %v6030_v22, 9  ;;  %v11112_v55 = vrot.slane %v6029_v60, 9  ;;  %v6348_v26 = vmax.f32 %v6022_v58, %v11110_v18  ;;  %v12237_v18 = vld [vmem:[#allocation3 + $0x12] ss:$8 sps:$4 sm:$0xff]  }
 0x432   :  { %v11101_v31 = vrot.slane %v5980_v47, 9  ;;  %v6337_v42 = vmax.f32 %v5979_v51, %v11099_v37  ;;  %v5995_v21 = vrot.slane %v5981_v57, %v13050_v48  ;;  %v6338_v36 = vmax.f32 %v5978_v44, %v11100_v49  ;;  %v12228_v44 = vld [vmem:[#allocation3] ss:$8 sps:$4 sm:$0xff]  }
 0x433   :  { %v11113_v25 = vrot.slane %v6031_v35, 9  ;;  %v6349_v23 = vmax.f32 %v6030_v22, %v11111_v17  ;;  %v6350_v39 = vmax.f32 %v6029_v60, %v11112_v55  ;;  %v6380_v27 = vmax.f32 %v6344_v15, %v6348_v26  ;;  %v12232_v60 = vld [vmem:[%s15293_s5 + $0x18] sm:$0xff]   ;;  %v12236_v37 = vld [vmem:[#allocation3 + $0x2] ss:$8 sps:$4 sm:$0xff]   ;;  %v12239_v17 = vld [vmem:[%s15293_s5 + $0x50] sm:$0xff]  }
 0x434   :  { %v5996_v11 = vcombine.high %v5988_v50, %v5988_v50  ;;  %v5997_v56 = vcombine.high %v5995_v21, %v5995_v21  ;;  %v11102_v38 = vrot.slane %v5988_v50, 9  ;;  %v6339_v61 = vmax.f32 %v5980_v47, %v11101_v31  ;;  %v12233_v47 = vld [vmem:[#allocation3 + $0x30] ss:$8 sps:$4 sm:$0xff]   ;;  %v12243_v31 = vld [vmem:[%s15293_s5 + $0x60] sm:$0xff]  }
 0x435   :  { %v6351_v2 = vmax.f32 %v6031_v35, %v11113_v25  ;;  %v6381_v32 = vmax.f32 %v6345_v8, %v6349_v23  ;;  %v6382_v30 = vmax.f32 %v6346_v54, %v6350_v39  ;;  %v11104_v34 = vrot.slane %v5995_v21, 9  ;;  %v12226_v54 = vld [vmem:[#allocation3 + $0x31] ss:$8 sps:$4 sm:$0xff]   ;;  %v12246_v23 = vld [vmem:[%s15293_s5 + $0x68] sm:$0xff]  }
 0x436   :  { %v11103_v46 = vrot.slane %v5996_v11, 9  ;;  %v11105_v14 = vrot.slane %v5997_v56, 9  ;;  %v6340_v3 = vmax.f32 %v5988_v50, %v11102_v38  ;;  %v6531_v9 = vrot.slane %v6380_v27, %v13058_v62  ;;  %v12238_v50 = vld [vmem:[%s15293_s5 + $0x48] sm:$0xff]   ;;  %v12240_v55 = vld [vmem:[%s15293_s5 + $0x58] sm:$0xff]   ;;  %v12247_v27 = vld [vmem:[%s15293_s5 + $0x70] sm:$0xff]  }
 0x437   :  { %v6383_v52 = vmax.f32 %v6347_v0, %v6351_v2  ;;  %v6535_v1 = vrot.slane %v6381_v32, %v13058_v62  ;;  %v6539_v29 = vrot.slane %v6382_v30, %v13058_v62  ;;  %v6342_v10 = vmax.f32 %v5995_v21, %v11104_v34  ;;  %v12231_v0 = vld [vmem:[%s15293_s5 + $0x10] sm:$0xff]   ;;  %v12253_v38 = vld [vmem:[#allocation3 + $0x19] ss:$8 sps:$4 sm:$0xff]   ;;  %v12254_v30 = vld [vmem:[%s15293_s5 + $0x88] sm:$0xff]  }
 0x438   :  { %v6341_v24 = vmax.f32 %v5996_v11, %v11103_v46  ;;  %v6343_v45 = vmax.f32 %v5997_v56, %v11105_v14  ;;  %v6376_v33 = vmax.f32 %v6336_v12, %v6340_v3  ;;  %v6610_v57 = vpack.c.bf16 %v12229_v16, %v12228_v44  ;;  %v12245_v12 = vld [vmem:[#allocation3 + $0x18] ss:$8 sps:$4 sm:$0xff]   ;;  %v12244_v21 = vld [vmem:[#allocation3 + $0x8] ss:$8 sps:$4 sm:$0xff]  }
 0x439   :  { %v6543_v7 = vrot.slane %v6383_v52, %v13058_v62  ;;  %v6565_v6 = vsel %vm3991_vm5, %v6535_v1, %v6531_v9  ;;  %v6378_v5 = vmax.f32 %v6338_v36, %v6342_v10  ;;  %v6837_v35 = vpack.c.bf16 %v12237_v18, %v12236_v37  ;;  %v12248_v36 = vld [vmem:[%s15293_s5 + $0x78] sm:$0xff]   ;;  %v12251_v56 = vld [vmem:[%s15293_s5 + $0x80] sm:$0xff]   ;;  %v12252_v2 = vld [vmem:[#allocation3 + $0x9] ss:$8 sps:$4 sm:$0xff]  }
 0x43a   :  { %v6566_v28 = vsel %vm3993_vm6, %v6539_v29, %v6565_v6  ;;  %v6377_v53 = vmax.f32 %v6337_v42, %v6341_v24  ;;  %v6379_v59 = vmax.f32 %v6339_v61, %v6343_v45  ;;  %v6515_v43 = vrot.slane %v6376_v33, %v13058_v62  ;;  %v12241_v42 = vld [vmem:[#allocation3 + $0x32] ss:$8 sps:$4 sm:$0xff]   ;;  %v12259_v52 = vld [vmem:[%s15293_s5 + $0xa0] sm:$0xff]   ;;  %v12262_v10 = vld [vmem:[%s15293_s5 + $0xa8] sm:$0xff]  }
 0x43b   :  { %v6567_v20 = vsel %vm3995_vm7, %v6543_v7, %v6566_v28  ;;  %v6523_v15 = vrot.slane %v6378_v5, %v13058_v62  ;;  %v6954_v39 = vpack.c.bf16 %v12245_v12, %v12244_v21  ;;  %v12249_v61 = vld [vmem:[#allocation3 + $0x38] ss:$8 sps:$4 sm:$0xff]   ;;  %v7071_v46 = vpack.c.bf16 %v12253_v38, %v12252_v2  ;;  %v12255_v34 = vld [vmem:[%s15293_s5 + $0x90] sm:$0xff]   ;;  %v12278_v44 = vld [vmem:[%s15293_s5 + $0xe8] sm:$0xff]  }
 0x43c   :  { %6585 = vst.msk [vmem:[#allocation3 + $0x51] sm:$0xf] %vm6577_vm13, %v6567_v20  ;;  %v6519_v63 = vrot.slane %v6377_v53, %v13058_v62  ;;  %v6527_v13 = vrot.slane %v6379_v59, %v13058_v62  ;;  %v12256_v14 = vld [vmem:[%s15293_s5 + $0x98] sm:$0xff]   ;;  %v12260_v29 = vld [vmem:[#allocation3 + $0xa] ss:$8 sps:$4 sm:$0xff]   ;;  %v12267_v28 = vld [vmem:[%s15293_s5 + $0xc0] sm:$0xff]  }
 0x43d   :  { %v12261_v9 = vld [vmem:[#allocation3 + $0x1a] ss:$8 sps:$4 sm:$0xff]   ;;  %v12263_v33 = vld [vmem:[%s15293_s5 + $0xb0] sm:$0xff]   ;;  %v12286_v37 = vld [vmem:[%s15293_s5 + $0x108] sm:$0xff]   ;;  %v12765_v12 = vmov 0  }
 0x43e   :  { %v6562_v19 = vsel %vm3991_vm5, %v6519_v63, %v6515_v43  ;;  %v12257_v1 = vld [vmem:[#allocation3 + $0x39] ss:$8 sps:$4 sm:$0xff]   ;;  %v7188_v45 = vpack.c.bf16 %v12261_v9, %v12260_v29  ;;  %v12270_v43 = vld [vmem:[%s15293_s5 + $0xc8] sm:$0xff]   ;;  %8212 = vmatprep.mubr.bf16.mxu1 %v12765_v12 }
 0x43f   :  { %v6563_v4 = vsel %vm3993_vm6, %v6523_v15, %v6562_v19  ;;  %v12264_v7 = vld [vmem:[%s15293_s5 + $0xb8] sm:$0xff]   ;;  %v12269_v5 = vld [vmem:[#allocation3 + $0x20] ss:$8 sps:$4 sm:$0xff]   ;;  %v12271_v15 = vld [vmem:[%s15293_s5 + $0xd0] sm:$0xff]  }
 0x440   :  { %v6564_v8 = vsel %vm3995_vm7, %v6527_v13, %v6563_v4  ;;  %v12268_v53 = vld [vmem:[#allocation3 + $0x10] ss:$8 sps:$4 sm:$0xff]   ;;  %v12277_v16 = vld [vmem:[#allocation3 + $0x21] ss:$8 sps:$4 sm:$0xff]  }
 0x441   :  { %6584 = vst.msk [vmem:[#allocation3 + $0x49] sm:$0xf] %vm6577_vm13, %v6564_v8  ;;  %v12265_v59 = vld [vmem:[#allocation3 + $0x3a] ss:$8 sps:$4 sm:$0xff]   ;;  %v7306_v63 = vpack.c.bf16 %v12269_v5, %v12268_v53 }
 0x442   :  { %v12272_v13 = vld [vmem:[%s15293_s5 + $0xd8] sm:$0xff]   ;;  %v12275_v8 = vld [vmem:[%s15293_s5 + $0xe0] sm:$0xff]  }
 0x443   :  { %v12274_v4 = vld [vmem:[#allocation3 + $0x50] ss:$8 sps:$4 sm:$0xff]   ;;  %v12285_v18 = vld [vmem:[#allocation3 + $0x22] ss:$8 sps:$4 sm:$0xff]  }
 0x444   :  { %v12294_v21 = vld [vmem:[%s15295_s7 + $0x108] ss:$16 sps:$4 sm:$0xff]   ;;  %v12308_v38 = vld [vmem:[%s15295_s7 + $0x14c] ss:$16 sps:$4 sm:$0xff]   ;;  %v12311_v2 = vld [vmem:[%s15295_s7 + $0x164] ss:$16 sps:$4 sm:$0xff]  }
 0x445   :  { %v12323_v9 = vld [vmem:[%s15295_s7 + $0x1a4] ss:$16 sps:$4 sm:$0xff]   ;;  %v12321_v29 = vld [vmem:[%s15295_s7 + $0x1a0] ss:$16 sps:$4 sm:$0xff]   ;;  %v12336_v5 = vld [vmem:[%s15295_s7 + $0x1e8] ss:$16 sps:$4 sm:$0xff]  }
 0x446   :  { %v12333_v53 = vld [vmem:[%s15295_s7 + $0x1e0] ss:$16 sps:$4 sm:$0xff]  }
 0x448   :  { %v12227_v58 = vld [vmem:[#allocation3 + $0x41] ss:$8 sps:$4 sm:$0xff]  }
 0x449   :  { %v6645_v51 = vpack.c.bf16 %v12227_v58, %v12226_v54  ;;  %v12234_v22 = vld [vmem:[#allocation3 + $0x40] ss:$8 sps:$4 sm:$0xff]   ;;  %v12276_v54 = vld [vmem:[#allocation3 + $0x11] ss:$8 sps:$4 sm:$0xff]  }
 0x44a   :  { %v6611_v49 = vpack.c.bf16 %v12234_v22, %v12233_v47  ;;  %v12242_v26 = vld [vmem:[#allocation3 + $0x42] ss:$8 sps:$4 sm:$0xff]  }
 0x44b   :  { %11905 = vmatmul.mubr.msk.bf16.vlgmr.msra.gmra.mrb[64].mxu0 %vm6678_vm14, %v6645_v51  ;;  %v6838_v25 = vpack.c.bf16 %v12242_v26, %v12241_v42  ;;  %v12250_v11 = vld [vmem:[#allocation3 + $0x48] ss:$8 sps:$4 sm:$0xff]   ;;  %v7423_v51 = vpack.c.bf16 %v12277_v16, %v12276_v54  ;;  %v12283_v22 = vld [vmem:[%s15293_s5 + $0x100] sm:$0xff]  }
 0x44c   :  { %11909 = vmatpush3.bf16.msra.mxu0 %v14089_v40  ;;  %11916 = vmatprep.mubr.msk.bf16.mxu0 %vm6678_vm14, %v6610_v57  ;;  %v12235_v40 = vld [vmem:[%s15293_s5 + $0x40] sm:$0xff]   ;;  %v6955_v32 = vpack.c.bf16 %v12250_v11, %v12249_v61  ;;  %v12258_v3 = vld [vmem:[#allocation3 + $0x49] ss:$8 sps:$4 sm:$0xff]   ;;  %v12280_v57 = vld [vmem:[%s15293_s5 + $0xf8] sm:$0xff]  }
 0x44d   :  { %11910 = vmatprep.subr.bf16.mxu0 %v12230_v41  ;;  %v7072_v24 = vpack.c.bf16 %v12258_v3, %v12257_v1  ;;  %v12266_v6 = vld [vmem:[#allocation3 + $0x4a] ss:$8 sps:$4 sm:$0xff]  }
 0x44e   :  { %v7189_v20 = vpack.c.bf16 %v12266_v6, %v12265_v59  ;;  %v12273_v19 = vld [vmem:[#allocation3 + $0x40] ss:$8 sps:$4 sm:$0xff]   ;;  %v12293_v42 = vld [vmem:[%s15295_s7 + $0x104] ss:$16 sps:$4 sm:$0xff]   ;;  %v12326_v1 = vld [vmem:[%s15295_s7 + $0x1ac] ss:$16 sps:$4 sm:$0xff]  }
 0x44f   :  { %v7307_v58 = vpack.c.bf16 %v12274_v4, %v12273_v19  ;;  %v12305_v11 = vld [vmem:[%s15295_s7 + $0x144] ss:$16 sps:$4 sm:$0xff]   ;;  %v12306_v61 = vld [vmem:[%s15295_s7 + $0x148] ss:$16 sps:$4 sm:$0xff]   ;;  %v12315_v3 = vld [vmem:[%s15295_s7 + $0x180] ss:$16 sps:$4 sm:$0xff]  }
 0x450   :  { %11911 = vmatpush3.bf16.msra.mxu0 %v12230_v41  ;;  %v12279_v41 = vld [vmem:[%s15293_s5 + $0xf0] sm:$0xff]  }
 0x451   :  { %11912 = vmatprep.subr.bf16.mxu0 %v12231_v0  ;;  %v12335_v6 = vld [vmem:[%s15295_s7 + $0x1e4] ss:$16 sps:$4 sm:$0xff]  }
 0x452   :  { %v12341_v59 = vld [vmem:[%s15295_s7 + $0x4] ss:$16 sps:$4 sm:$0xff]  }
 0x454   :  { %11913 = vmatpush3.bf16.msra.mxu0 %v12231_v0  ;;  %v12281_v0 = vld [vmem:[#allocation3 + $0x41] ss:$8 sps:$4 sm:$0xff]  }
 0x455   :  { %11914 = vmatprep.subr.bf16.mxu0 %v12232_v60 }
 0x458   :  { %11915 = vmatpush3.bf16.msra.mxu0 %v12232_v60  ;;  %v12282_v60 = vld [vmem:[#allocation3 + $0x51] ss:$8 sps:$4 sm:$0xff]  }
 0x459   :  { %11920 = vmatprep.subr.bf16.mxu0 %v12235_v40  ;;  %v7424_v47 = vpack.c.bf16 %v12282_v60, %v12281_v0 }
 0x45b   :  { %11917 = vmatmul.mubr.msk.bf16.vlgmr.msra.gmra.mrb[64].mxu0 %vm6678_vm14, %v6611_v49 }
 0x45c   :  { %11921 = vmatpush3.bf16.msra.mxu0 %v12235_v40  ;;  %11928 = vmatprep.mubr.msk.bf16.mxu0 %vm6678_vm14, %v6837_v35  ;;  %v12284_v40 = vld [vmem:[#allocation3 + $0x12] ss:$8 sps:$4 sm:$0xff]  }
 0x45d   :  { %11922 = vmatprep.subr.bf16.mxu0 %v12238_v50  ;;  %v7540_v49 = vpack.c.bf16 %v12285_v18, %v12284_v40  ;;  %v12288_v35 = vld [vmem:[%s15293_s5 + $0x118] sm:$0xff]  }
 0x460   :  { %11923 = vmatpush3.bf16.msra.mxu0 %v12238_v50  ;;  %v12287_v50 = vld [vmem:[%s15293_s5 + $0x110] sm:$0xff]  }
 0x461   :  { %11924 = vmatprep.subr.bf16.mxu0 %v12239_v17 }
 0x464   :  { %11925 = vmatpush3.bf16.msra.mxu0 %v12239_v17  ;;  %v12289_v17 = vld [vmem:[#allocation3 + $0x42] ss:$8 sps:$4 sm:$0xff]  }
 0x465   :  { %11926 = vmatprep.subr.bf16.mxu0 %v12240_v55 }
 0x468   :  { %11927 = vmatpush3.bf16.msra.mxu0 %v12240_v55  ;;  %v12290_v55 = vld [vmem:[#allocation3 + $0x52] ss:$8 sps:$4 sm:$0xff]  }
 0x469   :  { %11932 = vmatprep.subr.bf16.mxu0 %v12243_v31  ;;  %v7541_v26 = vpack.c.bf16 %v12290_v55, %v12289_v17 }
 0x46b   :  { %11929 = vmatmul.mubr.msk.bf16.vlgmr.msra.gmra.mrb[64].mxu0 %vm6678_vm14, %v6838_v25  ;;  %v12296_v25 = vld [vmem:[%s15295_s7 + $0x10c] ss:$16 sps:$4 sm:$0xff]  }
 0x46c   :  { %11933 = vmatpush3.bf16.msra.mxu0 %v12243_v31  ;;  %11940 = vmatprep.mubr.msk.bf16.mxu0 %vm6678_vm14, %v6954_v39  ;;  %v12291_v31 = vld [vmem:[%s15295_s7 + $0x100] ss:$16 sps:$4 sm:$0xff]   ;;  %v12299_v39 = vld [vmem:[%s15295_s7 + $0x124] ss:$16 sps:$4 sm:$0xff]  }
 0x46d   :  { %11934 = vmatprep.subr.bf16.mxu0 %v12246_v23  ;;  %8180 = vmatprep.subr.bf16.mxu1 %v12296_v25 }
 0x46e   :  { %8181 = vmatpush1.bf16.msra.mxu1 %v12294_v21 }
 0x470   :  { %11935 = vmatpush3.bf16.msra.mxu0 %v12246_v23  ;;  %v12297_v23 = vld [vmem:[%s15295_s7 + $0x120] ss:$16 sps:$4 sm:$0xff]  }
 0x471   :  { %11936 = vmatprep.subr.bf16.mxu0 %v12247_v27 }
 0x474   :  { %11937 = vmatpush3.bf16.msra.mxu0 %v12247_v27  ;;  %v12300_v27 = vld [vmem:[%s15295_s7 + $0x128] ss:$16 sps:$4 sm:$0xff]  }
 0x475   :  { %11938 = vmatprep.subr.bf16.mxu0 %v12248_v36 }
 0x478   :  { %11939 = vmatpush3.bf16.msra.mxu0 %v12248_v36  ;;  %v12302_v36 = vld [vmem:[%s15295_s7 + $0x12c] ss:$16 sps:$4 sm:$0xff]  }
 0x479   :  { %11944 = vmatprep.subr.bf16.mxu0 %v12251_v56  ;;  %8182 = vmatprep.subr.bf16.mxu1 %v12302_v36 }
 0x47a   :  { %8183 = vmatpush1.bf16.msra.mxu1 %v12300_v27 }
 0x47b   :  { %11941 = vmatmul.mubr.msk.bf16.vlgmr.msra.gmra.mrb[64].mxu0 %vm6678_vm14, %v6955_v32  ;;  %8184 = vmatprep.subr.bf16.mxu1 %v12308_v38  ;;  %v12314_v32 = vld [vmem:[%s15295_s7 + $0x16c] ss:$16 sps:$4 sm:$0xff]  }
 0x47c   :  { %11945 = vmatpush3.bf16.msra.mxu0 %v12251_v56  ;;  %11952 = vmatprep.mubr.msk.bf16.mxu0 %vm6678_vm14, %v7071_v46  ;;  %v12303_v56 = vld [vmem:[%s15295_s7 + $0x140] ss:$16 sps:$4 sm:$0xff]   ;;  %v12312_v46 = vld [vmem:[%s15295_s7 + $0x168] ss:$16 sps:$4 sm:$0xff]  }
 0x47d   :  { %11946 = vmatprep.subr.bf16.mxu0 %v12254_v30 }
 0x47e   :  { %8185 = vmatpush1.bf16.msra.mxu1 %v12306_v61 }
 0x47f   :  { %8186 = vmatprep.subr.bf16.mxu1 %v12314_v32 }
 0x480   :  { %11947 = vmatpush3.bf16.msra.mxu0 %v12254_v30  ;;  %v12309_v30 = vld [vmem:[%s15295_s7 + $0x160] ss:$16 sps:$4 sm:$0xff]  }
 0x481   :  { %11948 = vmatprep.subr.bf16.mxu0 %v12255_v34 }
 0x482   :  { %8187 = vmatpush1.bf16.msra.mxu1 %v12312_v46 }
 0x484   :  { %11949 = vmatpush3.bf16.msra.mxu0 %v12255_v34  ;;  %v12317_v34 = vld [vmem:[%s15295_s7 + $0x184] ss:$16 sps:$4 sm:$0xff]  }
 0x485   :  { %11950 = vmatprep.subr.bf16.mxu0 %v12256_v14 }
 0x488   :  { %11951 = vmatpush3.bf16.msra.mxu0 %v12256_v14  ;;  %v12320_v14 = vld [vmem:[%s15295_s7 + $0x18c] ss:$16 sps:$4 sm:$0xff]  }
 0x489   :  { %11956 = vmatprep.subr.bf16.mxu0 %v12259_v52  ;;  %8188 = vmatprep.subr.bf16.mxu1 %v12320_v14 }
 0x48b   :  { %11953 = vmatmul.mubr.msk.bf16.vlgmr.msra.gmra.mrb[64].mxu0 %vm6678_vm14, %v7072_v24  ;;  %v12324_v24 = vld [vmem:[%s15295_s7 + $0x1a8] ss:$16 sps:$4 sm:$0xff]  }
 0x48c   :  { %11957 = vmatpush3.bf16.msra.mxu0 %v12259_v52  ;;  %11964 = vmatprep.mubr.msk.bf16.mxu0 %vm6678_vm14, %v7188_v45  ;;  %v12318_v52 = vld [vmem:[%s15295_s7 + $0x188] ss:$16 sps:$4 sm:$0xff]   ;;  %v12332_v45 = vld [vmem:[%s15295_s7 + $0x1cc] ss:$16 sps:$4 sm:$0xff]  }
 0x48d   :  { %11958 = vmatprep.subr.bf16.mxu0 %v12262_v10  ;;  %8189 = vmatpush1.bf16.msra.mxu1 %v12318_v52 }
 0x48e   :  { %8190 = vmatprep.subr.bf16.mxu1 %v12326_v1 }
 0x490   :  { %11959 = vmatpush3.bf16.msra.mxu0 %v12262_v10  ;;  %v12329_v10 = vld [vmem:[%s15295_s7 + $0x1c4] ss:$16 sps:$4 sm:$0xff]  }
 0x491   :  { %11960 = vmatprep.subr.bf16.mxu0 %v12263_v33  ;;  %8191 = vmatpush1.bf16.msra.mxu1 %v12324_v24 }
 0x492   :  { %8192 = vmatprep.subr.bf16.mxu1 %v12332_v45 }
 0x494   :  { %11961 = vmatpush3.bf16.msra.mxu0 %v12263_v33  ;;  %v12327_v33 = vld [vmem:[%s15295_s7 + $0x1c0] ss:$16 sps:$4 sm:$0xff]  }
 0x495   :  { %11962 = vmatprep.subr.bf16.mxu0 %v12264_v7 }
 0x498   :  { %11963 = vmatpush3.bf16.msra.mxu0 %v12264_v7  ;;  %v12330_v7 = vld [vmem:[%s15295_s7 + $0x1c8] ss:$16 sps:$4 sm:$0xff]  }
 0x499   :  { %11968 = vmatprep.subr.bf16.mxu0 %v12267_v28  ;;  %8193 = vmatpush1.bf16.msra.mxu1 %v12330_v7 }
 0x49b   :  { %11965 = vmatmul.mubr.msk.bf16.vlgmr.msra.gmra.mrb[64].mxu0 %vm6678_vm14, %v7189_v20  ;;  %v12344_v20 = vld [vmem:[%s15295_s7 + $0xc] ss:$16 sps:$4 sm:$0xff]  }
 0x49c   :  { %11969 = vmatpush3.bf16.msra.mxu0 %v12267_v28  ;;  %11976 = vmatprep.mubr.msk.bf16.mxu0 %vm6678_vm14, %v7306_v63  ;;  %v12338_v28 = vld [vmem:[%s15295_s7 + $0x1ec] ss:$16 sps:$4 sm:$0xff]  }
 0x49d   :  { %11970 = vmatprep.subr.bf16.mxu0 %v12270_v43  ;;  %8194 = vmatprep.subr.bf16.mxu1 %v12338_v28 }
 0x49e   :  { %8195 = vmatpush1.bf16.msra.mxu1 %v12336_v5 }
 0x49f   :  { %8422 = vmatprep.subr.bf16.mxu1 %v12344_v20 }
 0x4a0   :  { %11971 = vmatpush3.bf16.msra.mxu0 %v12270_v43  ;;  %v11168_v43 = vld [vmem:[%s15296_s6] ss:$0 sm:$0xff] }
 0x4a1   :  { %11972 = vmatprep.subr.bf16.mxu0 %v12271_v15 }
 0x4a4   :  { %11973 = vmatpush3.bf16.msra.mxu0 %v12271_v15 }
 0x4a5   :  { %11974 = vmatprep.subr.bf16.mxu0 %v12272_v13 }
 0x4a8   :  { %11975 = vmatpush3.bf16.msra.mxu0 %v12272_v13 }
 0x4a9   :  { %11980 = vmatprep.subr.bf16.mxu0 %v12275_v8 }
 0x4ab   :  { %11977 = vmatmul.mubr.msk.bf16.vlgmr.msra.gmra.mrb[64].mxu0 %vm6678_vm14, %v7307_v58 }
 0x4ac   :  { %11981 = vmatpush3.bf16.msra.mxu0 %v12275_v8  ;;  %11988 = vmatprep.mubr.msk.bf16.mxu0 %vm6678_vm14, %v7423_v51 }
 0x4ad   :  { %11982 = vmatprep.subr.bf16.mxu0 %v12278_v44 }
 0x4b0   :  { %11983 = vmatpush3.bf16.msra.mxu0 %v12278_v44 }
 0x4b1   :  { %11984 = vmatprep.subr.bf16.mxu0 %v12279_v41 }
 0x4b4   :  { %11985 = vmatpush3.bf16.msra.mxu0 %v12279_v41 }
 0x4b5   :  { %11986 = vmatprep.subr.bf16.mxu0 %v12280_v57 }
 0x4b8   :  { %11987 = vmatpush3.bf16.msra.mxu0 %v12280_v57 }
 0x4b9   :  { %11992 = vmatprep.subr.bf16.mxu0 %v12283_v22 }
 0x4bb   :  { %11989 = vmatmul.mubr.msk.bf16.vlgmr.msra.gmra.mrb[64].mxu0 %vm6678_vm14, %v7424_v47 }
 0x4bc   :  { %11993 = vmatpush3.bf16.msra.mxu0 %v12283_v22  ;;  %12000 = vmatprep.mubr.msk.bf16.mxu0 %vm6678_vm14, %v7540_v49 }
 0x4bd   :  { %11994 = vmatprep.subr.bf16.mxu0 %v12286_v37 }
 0x4c0   :  { %11995 = vmatpush3.bf16.msra.mxu0 %v12286_v37 }
 0x4c1   :  { %11996 = vmatprep.subr.bf16.mxu0 %v12287_v50 }
 0x4c4   :  { %11997 = vmatpush3.bf16.msra.mxu0 %v12287_v50 }
 0x4c5   :  { %11998 = vmatprep.subr.bf16.mxu0 %v12288_v35 }
 0x4c8   :  { %11999 = vmatpush3.bf16.msra.mxu0 %v12288_v35 }
 0x4c9   :  { %8139 = vmatprep.subr.bf16.mxu0 %v12293_v42 }
 0x4cb   :  { %12001 = vmatmul.mubr.msk.bf16.vlgmr.msra.gmra.mrb[64].mxu0 %vm6678_vm14, %v7541_v26 }
 0x4cc   :  { %8171 = vmatprep.mubr.bf16.mxu0 %v12765_v12  ;;  %8140 = vmatpush1.bf16.msra.mxu0 %v12291_v31 }
 0x4cd   :  { %8141 = vmatprep.subr.bf16.mxu0 %v12299_v39 }
 0x4d0   :  { %8142 = vmatpush1.bf16.msra.mxu0 %v12297_v23 }
 0x4d1   :  { %8143 = vmatprep.subr.bf16.mxu0 %v12305_v11 }
 0x4d4   :  { %8144 = vmatpush1.bf16.msra.mxu0 %v12303_v56 }
 0x4d5   :  { %8145 = vmatprep.subr.bf16.mxu0 %v12311_v2 }
 0x4d8   :  { %8146 = vmatpush1.bf16.msra.mxu0 %v12309_v30 }
 0x4d9   :  { %8147 = vmatprep.subr.bf16.mxu0 %v12317_v34 }
 0x4dc   :  { %8148 = vmatpush1.bf16.msra.mxu0 %v12315_v3 }
 0x4dd   :  { %8149 = vmatprep.subr.bf16.mxu0 %v12323_v9 }
 0x4e0   :  { %8150 = vmatpush1.bf16.msra.mxu0 %v12321_v29 }
 0x4e1   :  { %8151 = vmatprep.subr.bf16.mxu0 %v12329_v10 }
 0x4e4   :  { %8152 = vmatpush1.bf16.msra.mxu0 %v12327_v33 }
 0x4e5   :  { %8153 = vmatprep.subr.bf16.mxu0 %v12335_v6 }
 0x4e8   :  { %8154 = vmatpush1.bf16.msra.mxu0 %v12333_v53 }
 0x4e9   :  { %8381 = vmatprep.subr.bf16.mxu0 %v12341_v59 }
 0x59e   :  { %v12002_v63 = vpop.f32.mrb[64].mxu0 }
 0x59f   :  { %v7642_v15 = vadd.f32 %v12002_v63, %v11168_v43  ;;  %v7614_v13 = vpop.f32.mrb[65].mxu0 }
 0x5a0   :  { %v7640_v19 = vadd.f32 %v11168_v43, %v7614_v13  ;;  %v12003_v4 = vpop.f32.mrb[66].mxu0 }
 0x5a1   :  { %v7646_v8 = vmax.f32 %v7642_v15, 0.0  ;;  %v7643_v54 = vadd.f32 %v12003_v4, %v11168_v43  ;;  %v7617_v16 = vpop.f32.mrb[67].mxu0 }
 0x5a2   :  { %v7644_v58 = vmax.f32 %v7640_v19, 0.0  ;;  %v7641_v44 = vadd.f32 %v11168_v43, %v7617_v16 }
 0x5a3   :  { %v7686_v51 = vcombine.high %v7646_v8, %v7646_v8  ;;  %v7693_v41 = vrot.slane %v7646_v8, %v13050_v48  ;;  %v7647_v57 = vmax.f32 %v7643_v54, 0.0 }
 0x5a4   :  { %v7652_v0 = vcombine.high %v7644_v58, %v7644_v58  ;;  %v7659_v60 = vrot.slane %v7644_v58, %v13050_v48  ;;  %v7645_v22 = vmax.f32 %v7641_v44, 0.0 }
 0x5a5   :  { %v7700_v40 = vrot.slane %v7686_v51, %v13050_v48  ;;  %v7701_v18 = vcombine.high %v7693_v41, %v7693_v41  ;;  %v11177_v47 = vrot.slane %v7693_v41, 9  ;;  %v7703_v37 = vcombine.high %v7647_v57, %v7647_v57 }
 0x5a6   :  { %v7666_v49 = vrot.slane %v7652_v0, %v13050_v48  ;;  %v7667_v50 = vcombine.high %v7659_v60, %v7659_v60  ;;  %v11169_v35 = vrot.slane %v7659_v60, 9  ;;  %v7710_v17 = vrot.slane %v7647_v57, %v13050_v48 }
 0x5a7   :  { %v7702_v55 = vcombine.high %v7700_v40, %v7700_v40  ;;  %v11178_v26 = vrot.slane %v7701_v18, 9  ;;  %v11179_v31 = vrot.slane %v7700_v40, 9  ;;  %v7792_v42 = vmax.f32 %v7693_v41, %v11177_v47 }
 0x5a8   :  { %v7668_v21 = vcombine.high %v7666_v49, %v7666_v49  ;;  %v11170_v25 = vrot.slane %v7667_v50, 9  ;;  %v11171_v23 = vrot.slane %v7666_v49, 9  ;;  %v7784_v39 = vmax.f32 %v7659_v60, %v11169_v35 }
 0x5a9   :  { %v11180_v27 = vrot.slane %v7702_v55, 9  ;;  %v7793_v36 = vmax.f32 %v7701_v18, %v11178_v26  ;;  %v7794_v11 = vmax.f32 %v7700_v40, %v11179_v31  ;;  %v7717_v56 = vrot.slane %v7703_v37, %v13050_v48  ;;  %v12342_v31 = vld [vmem:[%s15295_s7 + $0x8] ss:$16 sps:$4 sm:$0xff]  }
 0x5aa   :  { %v11172_v38 = vrot.slane %v7668_v21, 9  ;;  %v7785_v61 = vmax.f32 %v7667_v50, %v11170_v25  ;;  %v7786_v2 = vmax.f32 %v7666_v49, %v11171_v23  ;;  %v7718_v32 = vcombine.high %v7710_v17, %v7710_v17  ;;  %v12352_v25 = vld [vmem:[%s15295_s7 + $0x2c] ss:$16 sps:$4 sm:$0xff]   ;;  %v12347_v23 = vld [vmem:[%s15295_s7 + $0x20] ss:$16 sps:$4 sm:$0xff]  }
 0x5ab   :  { %v7795_v30 = vmax.f32 %v7702_v55, %v11180_v27  ;;  %v7804_v46 = vmax.f32 %v7792_v42, %v7794_v11  ;;  %v7719_v34 = vcombine.high %v7717_v56, %v7717_v56  ;;  %v11181_v14 = vrot.slane %v7710_v17, 9  ;;  %v12339_v55 = vld [vmem:[%s15295_s7] ss:$16 sps:$4 sm:$0xff]   ;;  %v12349_v42 = vld [vmem:[%s15295_s7 + $0x24] ss:$16 sps:$4 sm:$0xff]  }
 0x5ac   :  { %v7787_v3 = vmax.f32 %v7668_v21, %v11172_v38  ;;  %v7800_v52 = vmax.f32 %v7784_v39, %v7786_v2  ;;  %v11182_v9 = vrot.slane %v7718_v32, 9  ;;  %v11183_v1 = vrot.slane %v7717_v56, 9  ;;  %v12350_v39 = vld [vmem:[%s15295_s7 + $0x28] ss:$16 sps:$4 sm:$0xff]   ;;  %v12355_v27 = vld [vmem:[%s15295_s7 + $0x44] ss:$16 sps:$4 sm:$0xff]  }
 0x5ad   :  { %v7805_v29 = vmax.f32 %v7793_v36, %v7795_v30  ;;  %v7835_v24 = vrot.slane %v7804_v46, %v13058_v62  ;;  %v11184_v10 = vrot.slane %v7719_v34, 9  ;;  %v7796_v33 = vmax.f32 %v7710_v17, %v11181_v14  ;;  %v12358_v36 = vld [vmem:[%s15295_s7 + $0x4c] ss:$16 sps:$4 sm:$0xff]   ;;  %v12353_v11 = vld [vmem:[%s15295_s7 + $0x40] ss:$16 sps:$4 sm:$0xff]  }
 0x5ae   :  { %v7801_v45 = vmax.f32 %v7785_v61, %v7787_v3  ;;  %v7797_v7 = vmax.f32 %v7718_v32, %v11182_v9  ;;  %v7798_v6 = vmax.f32 %v7717_v56, %v11183_v1  ;;  %v7669_v5 = vcombine.high %v7645_v22, %v7645_v22  ;;  %v12356_v56 = vld [vmem:[%s15295_s7 + $0x48] ss:$16 sps:$4 sm:$0xff]   ;;  %v12361_v38 = vld [vmem:[%s15295_s7 + $0x64] ss:$16 sps:$4 sm:$0xff]   ;;  %v12364_v61 = vld [vmem:[%s15295_s7 + $0x6c] ss:$16 sps:$4 sm:$0xff]  }
 0x5af   :  { %v7839_v28 = vrot.slane %v7805_v29, %v13058_v62  ;;  %v7799_v53 = vmax.f32 %v7719_v34, %v11184_v10  ;;  %v7676_v59 = vrot.slane %v7645_v22, %v13050_v48  ;;  %v7819_v20 = vrot.slane %v7800_v52, %v13058_v62  ;;  %v12359_v2 = vld [vmem:[%s15295_s7 + $0x60] ss:$16 sps:$4 sm:$0xff]   ;;  %v12362_v32 = vld [vmem:[%s15295_s7 + $0x68] ss:$16 sps:$4 sm:$0xff]   ;;  %v12367_v30 = vld [vmem:[%s15295_s7 + $0x84] ss:$16 sps:$4 sm:$0xff]  }
 0x5b0   :  { %v7823_v43 = vrot.slane %v7801_v45, %v13058_v62  ;;  %v7806_v63 = vmax.f32 %v7796_v33, %v7798_v6  ;;  %v7683_v19 = vrot.slane %v7669_v5, %v13050_v48  ;;  %v12370_v46 = vld [vmem:[%s15295_s7 + $0x8c] ss:$16 sps:$4 sm:$0xff]   ;;  %v12365_v34 = vld [vmem:[%s15295_s7 + $0x80] ss:$16 sps:$4 sm:$0xff]   ;;  %v12368_v14 = vld [vmem:[%s15295_s7 + $0x88] ss:$16 sps:$4 sm:$0xff]  }
 0x5b1   :  { %v7850_v15 = vsel %vm3991_vm5, %v7839_v28, %v7835_v24  ;;  %v7807_v13 = vmax.f32 %v7797_v7, %v7799_v53  ;;  %v7684_v4 = vcombine.high %v7676_v59, %v7676_v59  ;;  %v11173_v16 = vrot.slane %v7676_v59, 9  ;;  %v12373_v3 = vld [vmem:[%s15295_s7 + $0xa4] ss:$16 sps:$4 sm:$0xff]   ;;  %v12376_v52 = vld [vmem:[%s15295_s7 + $0xac] ss:$16 sps:$4 sm:$0xff]  }
 0x5b2   :  { %7859 = vst [vmem:[#allocation4 + $0x15] sm:$0x3] %v7850_v15  ;;  %v7848_v8 = vsel %vm3991_vm5, %v7823_v43, %v7819_v20  ;;  %v7843_v54 = vrot.slane %v7806_v63, %v13058_v62  ;;  %v7685_v44 = vcombine.high %v7683_v19, %v7683_v19  ;;  %v11175_v41 = vrot.slane %v7683_v19, 9  ;;  %v12371_v9 = vld [vmem:[%s15295_s7 + $0xa0] ss:$16 sps:$4 sm:$0xff]  }
 0x5b3   :  { %7857 = vst [vmem:[#allocation4 + $0x5] sm:$0x3] %v7848_v8  ;;  %v7847_v58 = vrot.slane %v7807_v13, %v13058_v62  ;;  %v11174_v51 = vrot.slane %v7684_v4, 9  ;;  %v7788_v60 = vmax.f32 %v7676_v59, %v11173_v16  ;;  %v12374_v1 = vld [vmem:[%s15295_s7 + $0xa8] ss:$16 sps:$4 sm:$0xff]  }
 0x5b4   :  { %v11176_v0 = vrot.slane %v7685_v44, 9  ;;  %v7790_v22 = vmax.f32 %v7683_v19, %v11175_v41  ;;  %v12379_v29 = vld [vmem:[%s15295_s7 + $0xc4] ss:$16 sps:$4 sm:$0xff]   ;;  %v12382_v24 = vld [vmem:[%s15295_s7 + $0xcc] ss:$16 sps:$4 sm:$0xff]  }
 0x5b5   :  { %v7851_v57 = vsel %vm3991_vm5, %v7847_v58, %v7843_v54  ;;  %v7789_v48 = vmax.f32 %v7684_v4, %v11174_v51  ;;  %v12377_v33 = vld [vmem:[%s15295_s7 + $0xc0] ss:$16 sps:$4 sm:$0xff]   ;;  %v12380_v7 = vld [vmem:[%s15295_s7 + $0xc8] ss:$16 sps:$4 sm:$0xff]   ;;  %v12385_v6 = vld [vmem:[%s15295_s7 + $0xe4] ss:$16 sps:$4 sm:$0xff]  }
 0x5b6   :  { %7860 = vst [vmem:[#allocation4 + $0x19] sm:$0x3] %v7851_v57  ;;  %v7791_v40 = vmax.f32 %v7685_v44, %v11176_v0  ;;  %v7802_v18 = vmax.f32 %v7788_v60, %v7790_v22  ;;  %v12388_v28 = vld [vmem:[%s15295_s7 + $0xec] ss:$16 sps:$4 sm:$0xff]   ;;  %v12383_v53 = vld [vmem:[%s15295_s7 + $0xe0] ss:$16 sps:$4 sm:$0xff]  }
 0x5b7   :  { %v12386_v5 = vld [vmem:[%s15295_s7 + $0xe8] ss:$16 sps:$4 sm:$0xff]   ;;  %v12393_v20 = vld [vmem:[%s15295_s7 + $0x204] ss:$16 sps:$4 sm:$0xff]   ;;  %v12396_v43 = vld [vmem:[%s15295_s7 + $0x20c] ss:$16 sps:$4 sm:$0xff]  }
 0x5b8   :  { %v7803_v47 = vmax.f32 %v7789_v48, %v7791_v40  ;;  %v7827_v50 = vrot.slane %v7802_v18, %v13058_v62  ;;  %v12391_v63 = vld [vmem:[%s15295_s7 + $0x200] ss:$16 sps:$4 sm:$0xff]   ;;  %v12394_v15 = vld [vmem:[%s15295_s7 + $0x208] ss:$16 sps:$4 sm:$0xff]   ;;  %v12399_v13 = vld [vmem:[%s15295_s7 + $0x224] ss:$16 sps:$4 sm:$0xff]  }
 0x5b9   :  { %v12744_v37 = vld.sshfl [vmem:[#allocation4 + $0x11] sm:$0xf pattern:$0x76325410]  ;;  %v12402_v19 = vld [vmem:[%s15295_s7 + $0x22c] ss:$16 sps:$4 sm:$0xff]  }
 0x5ba   :  { %v12745_v49 = vld.sshfl [vmem:[#allocation4 + $0x1] sm:$0xf pattern:$0x76325410]  ;;  %v7831_v35 = vrot.slane %v7803_v47, %v13058_v62  ;;  %v12400_v54 = vld [vmem:[%s15295_s7 + $0x228] ss:$16 sps:$4 sm:$0xff]  }
 0x5bb   :  { %v7944_v26 = vcombine.low %v12745_v49, %v12744_v37  ;;  %v12746_v10 = vld.sshfl [vmem:[#allocation4] sm:$0xf pattern:$0x76325410]  ;;  %v12408_v58 = vld [vmem:[%s15295_s7 + $0x24c] ss:$16 sps:$4 sm:$0xff]  }
 0x5bc   :  { %v7849_v17 = vsel %vm3991_vm5, %v7831_v35, %v7827_v50  ;;  %v12747_v45 = vld.sshfl [vmem:[#allocation4 + $0x10] sm:$0xf pattern:$0x76325410]  ;;  %v12406_v51 = vld [vmem:[%s15295_s7 + $0x248] ss:$16 sps:$4 sm:$0xff]  }
 0x5bd   :  { %7858 = vst [vmem:[#allocation4 + $0x9] sm:$0x3] %v7849_v17  ;;  %v7946_v21 = vpack.c.bf16 %v7944_v26, %v7944_v26  ;;  %v7885_v59 = vcombine.low %v12746_v10, %v12747_v45  ;;  %v12397_v8 = vld [vmem:[%s15295_s7 + $0x220] ss:$16 sps:$4 sm:$0xff]   ;;  %v12405_v16 = vld [vmem:[%s15295_s7 + $0x244] ss:$16 sps:$4 sm:$0xff]  }
 0x5be   :  { %v12403_v44 = vld [vmem:[%s15295_s7 + $0x240] ss:$16 sps:$4 sm:$0xff]   ;;  %v12411_v41 = vld [vmem:[%s15295_s7 + $0x264] ss:$16 sps:$4 sm:$0xff]   ;;  %v12414_v57 = vld [vmem:[%s15295_s7 + $0x26c] ss:$16 sps:$4 sm:$0xff]  }
 0x5bf   :  { %8172 = vmatmul.mubr.bf16.vlgmr.msra.gmra.mrb[68].mxu0 %v7946_v21  ;;  %8213 = vmatmul.mubr.bf16.vlgmr.msra.gmra.mrb[16].mxu1 %v7946_v21  ;;  %v7887_v4 = vpack.c.bf16 %v7885_v59, %v7885_v59  ;;  %v12409_v0 = vld [vmem:[%s15295_s7 + $0x260] ss:$16 sps:$4 sm:$0xff]   ;;  %v12412_v60 = vld [vmem:[%s15295_s7 + $0x268] ss:$16 sps:$4 sm:$0xff]   ;;  %v12417_v22 = vld [vmem:[%s15295_s7 + $0x284] ss:$16 sps:$4 sm:$0xff]  }
 0x5c0   :  { %8382 = vmatpush1.bf16.msra.mxu0 %v12339_v55  ;;  %8423 = vmatpush1.bf16.msra.mxu1 %v12342_v31  ;;  %v12420_v48 = vld [vmem:[%s15295_s7 + $0x28c] ss:$16 sps:$4 sm:$0xff]   ;;  %v12415_v40 = vld [vmem:[%s15295_s7 + $0x280] ss:$16 sps:$4 sm:$0xff]   ;;  %v12418_v18 = vld [vmem:[%s15295_s7 + $0x288] ss:$16 sps:$4 sm:$0xff]  }
 0x5c1   :  { %8383 = vmatprep.subr.bf16.mxu0 %v12349_v42  ;;  %8424 = vmatprep.subr.bf16.mxu1 %v12352_v25  ;;  %v12423_v47 = vld [vmem:[%s15295_s7 + $0x2a4] ss:$16 sps:$4 sm:$0xff]   ;;  %v12426_v37 = vld [vmem:[%s15295_s7 + $0x2ac] ss:$16 sps:$4 sm:$0xff]   ;;  %v12421_v49 = vld [vmem:[%s15295_s7 + $0x2a0] ss:$16 sps:$4 sm:$0xff]  }
 0x5c2   :  { %8413 = vmatprep.mubr.bf16.mxu0 %v12765_v12  ;;  %8454 = vmatprep.mubr.bf16.mxu1 %v12765_v12  ;;  %v12424_v50 = vld [vmem:[%s15295_s7 + $0x2a8] ss:$16 sps:$4 sm:$0xff]   ;;  %v12429_v35 = vld [vmem:[%s15295_s7 + $0x2c4] ss:$16 sps:$4 sm:$0xff]   ;;  %v12432_v17 = vld [vmem:[%s15295_s7 + $0x2cc] ss:$16 sps:$4 sm:$0xff]  }
 0x5c3   :  { %v12748_v55 = vld.sshfl [vmem:[#allocation4 + $0x2] sm:$0xf pattern:$0x76325410]  ;;  %v12430_v42 = vld [vmem:[%s15295_s7 + $0x2c8] ss:$16 sps:$4 sm:$0xff]  }
 0x5c4   :  { %8384 = vmatpush1.bf16.msra.mxu0 %v12347_v23  ;;  %8425 = vmatpush1.bf16.msra.mxu1 %v12350_v39  ;;  %v12749_v26 = vld.sshfl [vmem:[#allocation4 + $0x12] sm:$0xf pattern:$0x76325410]  ;;  %v12438_v25 = vld [vmem:[%s15295_s7 + $0x2ec] ss:$16 sps:$4 sm:$0xff]  }
 0x5c5   :  { %8385 = vmatprep.subr.bf16.mxu0 %v12355_v27  ;;  %8426 = vmatprep.subr.bf16.mxu1 %v12358_v36  ;;  %v12427_v31 = vld [vmem:[%s15295_s7 + $0x2c0] ss:$16 sps:$4 sm:$0xff]   ;;  %v12435_v21 = vld [vmem:[%s15295_s7 + $0x2e4] ss:$16 sps:$4 sm:$0xff]   ;;  %v12436_v39 = vld [vmem:[%s15295_s7 + $0x2e8] ss:$16 sps:$4 sm:$0xff]   ;;  %v8487_v27 = vcombine.low %v12748_v55, %v12749_v26 }
 0x5c6   :  { %v12433_v23 = vld [vmem:[%s15295_s7 + $0x2e0] ss:$16 sps:$4 sm:$0xff]   ;;  %v12443_v36 = vld [vmem:[%s15295_s7 + $0x304] ss:$16 sps:$4 sm:$0xff]   ;;  %v12470_v45 = vld [vmem:[%s15295_s7 + $0x38c] ss:$16 sps:$4 sm:$0xff]  }
 0x5c7   :  { %v12467_v10 = vld [vmem:[%s15295_s7 + $0x384] ss:$16 sps:$4 sm:$0xff]   ;;  %v12520_v26 = vld [vmem:[%s15295_s7 + $0x48c] ss:$16 sps:$4 sm:$0xff]  }
 0x5c8   :  { %8386 = vmatpush1.bf16.msra.mxu0 %v12353_v11  ;;  %8427 = vmatpush1.bf16.msra.mxu1 %v12356_v56  ;;  %v12446_v11 = vld [vmem:[%s15295_s7 + $0x30c] ss:$16 sps:$4 sm:$0xff]   ;;  %v12441_v56 = vld [vmem:[%s15295_s7 + $0x300] ss:$16 sps:$4 sm:$0xff]   ;;  %v12479_v59 = vld [vmem:[%s15295_s7 + $0x3c4] ss:$16 sps:$4 sm:$0xff]  }
 0x5c9   :  { %8387 = vmatprep.subr.bf16.mxu0 %v12361_v38  ;;  %8428 = vmatprep.subr.bf16.mxu1 %v12364_v61  ;;  %v12444_v38 = vld [vmem:[%s15295_s7 + $0x308] ss:$16 sps:$4 sm:$0xff]   ;;  %v8489_v61 = vpack.c.bf16 %v8487_v27, %v8487_v27  ;;  %v12517_v55 = vld [vmem:[%s15295_s7 + $0x484] ss:$16 sps:$4 sm:$0xff]  }
 0x5ca   :  { %v12529_v27 = vld [vmem:[%s15295_s7 + $0x4c4] ss:$16 sps:$4 sm:$0xff]  }
 0x5cc   :  { %8388 = vmatpush1.bf16.msra.mxu0 %v12359_v2  ;;  %8429 = vmatpush1.bf16.msra.mxu1 %v12362_v32  ;;  %v12449_v2 = vld [vmem:[%s15295_s7 + $0x324] ss:$16 sps:$4 sm:$0xff]   ;;  %v12452_v32 = vld [vmem:[%s15295_s7 + $0x32c] ss:$16 sps:$4 sm:$0xff]  }
 0x5cd   :  { %8389 = vmatprep.subr.bf16.mxu0 %v12367_v30  ;;  %8430 = vmatprep.subr.bf16.mxu1 %v12370_v46  ;;  %v12447_v30 = vld [vmem:[%s15295_s7 + $0x320] ss:$16 sps:$4 sm:$0xff]   ;;  %v12450_v46 = vld [vmem:[%s15295_s7 + $0x328] ss:$16 sps:$4 sm:$0xff]  }
 0x5d0   :  { %8390 = vmatpush1.bf16.msra.mxu0 %v12365_v34  ;;  %8431 = vmatpush1.bf16.msra.mxu1 %v12368_v14  ;;  %v12455_v34 = vld [vmem:[%s15295_s7 + $0x344] ss:$16 sps:$4 sm:$0xff]   ;;  %v12458_v14 = vld [vmem:[%s15295_s7 + $0x34c] ss:$16 sps:$4 sm:$0xff]  }
 0x5d1   :  { %8391 = vmatprep.subr.bf16.mxu0 %v12373_v3  ;;  %8432 = vmatprep.subr.bf16.mxu1 %v12376_v52  ;;  %v12453_v3 = vld [vmem:[%s15295_s7 + $0x340] ss:$16 sps:$4 sm:$0xff]   ;;  %v12456_v52 = vld [vmem:[%s15295_s7 + $0x348] ss:$16 sps:$4 sm:$0xff]  }
 0x5d4   :  { %8392 = vmatpush1.bf16.msra.mxu0 %v12371_v9  ;;  %8433 = vmatpush1.bf16.msra.mxu1 %v12374_v1  ;;  %v12461_v9 = vld [vmem:[%s15295_s7 + $0x364] ss:$16 sps:$4 sm:$0xff]   ;;  %v12464_v1 = vld [vmem:[%s15295_s7 + $0x36c] ss:$16 sps:$4 sm:$0xff]  }
 0x5d5   :  { %8393 = vmatprep.subr.bf16.mxu0 %v12379_v29  ;;  %8434 = vmatprep.subr.bf16.mxu1 %v12382_v24  ;;  %v12459_v29 = vld [vmem:[%s15295_s7 + $0x360] ss:$16 sps:$4 sm:$0xff]   ;;  %v12462_v24 = vld [vmem:[%s15295_s7 + $0x368] ss:$16 sps:$4 sm:$0xff]  }
 0x5d8   :  { %8394 = vmatpush1.bf16.msra.mxu0 %v12377_v33  ;;  %8435 = vmatpush1.bf16.msra.mxu1 %v12380_v7  ;;  %v12465_v33 = vld [vmem:[%s15295_s7 + $0x380] ss:$16 sps:$4 sm:$0xff]   ;;  %v12468_v7 = vld [vmem:[%s15295_s7 + $0x388] ss:$16 sps:$4 sm:$0xff]  }
 0x5d9   :  { %8395 = vmatprep.subr.bf16.mxu0 %v12385_v6  ;;  %8436 = vmatprep.subr.bf16.mxu1 %v12388_v28  ;;  %v12473_v6 = vld [vmem:[%s15295_s7 + $0x3a4] ss:$16 sps:$4 sm:$0xff]   ;;  %v12476_v28 = vld [vmem:[%s15295_s7 + $0x3ac] ss:$16 sps:$4 sm:$0xff]  }
 0x5dc   :  { %8396 = vmatpush1.bf16.msra.mxu0 %v12383_v53  ;;  %8437 = vmatpush1.bf16.msra.mxu1 %v12386_v5  ;;  %v12471_v53 = vld [vmem:[%s15295_s7 + $0x3a0] ss:$16 sps:$4 sm:$0xff]   ;;  %v12474_v5 = vld [vmem:[%s15295_s7 + $0x3a8] ss:$16 sps:$4 sm:$0xff]  }
 0x5dd   :  { %8682 = vmatprep.subr.bf16.mxu0 %v12393_v20  ;;  %8723 = vmatprep.subr.bf16.mxu1 %v12396_v43  ;;  %v12482_v20 = vld [vmem:[%s15295_s7 + $0x3cc] ss:$16 sps:$4 sm:$0xff]   ;;  %v12750_v43 = vld.sshfl [vmem:[#allocation4 + $0x4] sm:$0xf pattern:$0x76325410] }
 0x5df   :  { %8414 = vmatmul.mubr.bf16.vlgmr.msra.gmra.mrb[72].mxu0 %v7887_v4  ;;  %8455 = vmatmul.mubr.bf16.vlgmr.msra.gmra.mrb[20].mxu1 %v7887_v4  ;;  %v12488_v4 = vld [vmem:[%s15295_s7 + $0x3ec] ss:$16 sps:$4 sm:$0xff]  }
 0x5e0   :  { %8683 = vmatpush1.bf16.msra.mxu0 %v12391_v63  ;;  %8724 = vmatpush1.bf16.msra.mxu1 %v12394_v15  ;;  %v12751_v63 = vld.sshfl [vmem:[#allocation4 + $0x14] sm:$0xf pattern:$0x76325410]  ;;  %v12477_v15 = vld [vmem:[%s15295_s7 + $0x3c0] ss:$16 sps:$4 sm:$0xff]  }
 0x5e1   :  { %8684 = vmatprep.subr.bf16.mxu0 %v12399_v13  ;;  %8725 = vmatprep.subr.bf16.mxu1 %v12402_v19  ;;  %v12480_v13 = vld [vmem:[%s15295_s7 + $0x3c8] ss:$16 sps:$4 sm:$0xff]   ;;  %v12485_v19 = vld [vmem:[%s15295_s7 + $0x3e4] ss:$16 sps:$4 sm:$0xff]  }
 0x5e2   :  { %8714 = vmatprep.mubr.bf16.mxu0 %v12765_v12  ;;  %8755 = vmatprep.mubr.bf16.mxu1 %v12765_v12 }
 0x5e4   :  { %8685 = vmatpush1.bf16.msra.mxu0 %v12397_v8  ;;  %8726 = vmatpush1.bf16.msra.mxu1 %v12400_v54  ;;  %v12483_v8 = vld [vmem:[%s15295_s7 + $0x3e0] ss:$16 sps:$4 sm:$0xff]   ;;  %v12486_v54 = vld [vmem:[%s15295_s7 + $0x3e8] ss:$16 sps:$4 sm:$0xff]  }
 0x5e5   :  { %8686 = vmatprep.subr.bf16.mxu0 %v12405_v16  ;;  %8727 = vmatprep.subr.bf16.mxu1 %v12408_v58  ;;  %v8792_v16 = vcombine.low %v12750_v43, %v12751_v63  ;;  %v12493_v58 = vld [vmem:[%s15295_s7 + $0x404] ss:$16 sps:$4 sm:$0xff]   ;;  %v12570_v63 = vld [vmem:[%s15295_s7 + $0x58c] ss:$16 sps:$4 sm:$0xff]  }
 0x5e6   :  { %v12567_v43 = vld [vmem:[%s15295_s7 + $0x584] ss:$16 sps:$4 sm:$0xff]  }
 0x5e8   :  { %8687 = vmatpush1.bf16.msra.mxu0 %v12403_v44  ;;  %8728 = vmatpush1.bf16.msra.mxu1 %v12406_v51  ;;  %v12496_v44 = vld [vmem:[%s15295_s7 + $0x40c] ss:$16 sps:$4 sm:$0xff]   ;;  %v12491_v51 = vld [vmem:[%s15295_s7 + $0x400] ss:$16 sps:$4 sm:$0xff]  }
 0x5e9   :  { %8688 = vmatprep.subr.bf16.mxu0 %v12411_v41  ;;  %8729 = vmatprep.subr.bf16.mxu1 %v12414_v57  ;;  %v12494_v41 = vld [vmem:[%s15295_s7 + $0x408] ss:$16 sps:$4 sm:$0xff]   ;;  %v8794_v57 = vpack.c.bf16 %v8792_v16, %v8792_v16 }
 0x5ea   :  { %v12755_v16 = vld.sshfl [vmem:[#allocation4 + $0x16] sm:$0xf pattern:$0x76325410] }
 0x5ec   :  { %8689 = vmatpush1.bf16.msra.mxu0 %v12409_v0  ;;  %8730 = vmatpush1.bf16.msra.mxu1 %v12412_v60  ;;  %v12499_v0 = vld [vmem:[%s15295_s7 + $0x424] ss:$16 sps:$4 sm:$0xff]   ;;  %v12502_v60 = vld [vmem:[%s15295_s7 + $0x42c] ss:$16 sps:$4 sm:$0xff]  }
 0x5ed   :  { %8690 = vmatprep.subr.bf16.mxu0 %v12417_v22  ;;  %8731 = vmatprep.subr.bf16.mxu1 %v12420_v48  ;;  %v12497_v22 = vld [vmem:[%s15295_s7 + $0x420] ss:$16 sps:$4 sm:$0xff]   ;;  %v12500_v48 = vld [vmem:[%s15295_s7 + $0x428] ss:$16 sps:$4 sm:$0xff]  }
 0x5f0   :  { %8691 = vmatpush1.bf16.msra.mxu0 %v12415_v40  ;;  %8732 = vmatpush1.bf16.msra.mxu1 %v12418_v18  ;;  %v12505_v40 = vld [vmem:[%s15295_s7 + $0x444] ss:$16 sps:$4 sm:$0xff]   ;;  %v12508_v18 = vld [vmem:[%s15295_s7 + $0x44c] ss:$16 sps:$4 sm:$0xff]  }
 0x5f1   :  { %8692 = vmatprep.subr.bf16.mxu0 %v12423_v47  ;;  %8733 = vmatprep.subr.bf16.mxu1 %v12426_v37  ;;  %v12503_v47 = vld [vmem:[%s15295_s7 + $0x440] ss:$16 sps:$4 sm:$0xff]   ;;  %v12506_v37 = vld [vmem:[%s15295_s7 + $0x448] ss:$16 sps:$4 sm:$0xff]  }
 0x5f4   :  { %8693 = vmatpush1.bf16.msra.mxu0 %v12421_v49  ;;  %8734 = vmatpush1.bf16.msra.mxu1 %v12424_v50  ;;  %v12511_v49 = vld [vmem:[%s15295_s7 + $0x464] ss:$16 sps:$4 sm:$0xff]   ;;  %v12514_v50 = vld [vmem:[%s15295_s7 + $0x46c] ss:$16 sps:$4 sm:$0xff]  }
 0x5f5   :  { %8694 = vmatprep.subr.bf16.mxu0 %v12429_v35  ;;  %8735 = vmatprep.subr.bf16.mxu1 %v12432_v17  ;;  %v12509_v35 = vld [vmem:[%s15295_s7 + $0x460] ss:$16 sps:$4 sm:$0xff]   ;;  %v12512_v17 = vld [vmem:[%s15295_s7 + $0x468] ss:$16 sps:$4 sm:$0xff]  }
 0x5f8   :  { %8695 = vmatpush1.bf16.msra.mxu0 %v12427_v31  ;;  %8736 = vmatpush1.bf16.msra.mxu1 %v12430_v42  ;;  %v12515_v31 = vld [vmem:[%s15295_s7 + $0x480] ss:$16 sps:$4 sm:$0xff]   ;;  %v12518_v42 = vld [vmem:[%s15295_s7 + $0x488] ss:$16 sps:$4 sm:$0xff]  }
 0x5f9   :  { %8696 = vmatprep.subr.bf16.mxu0 %v12435_v21  ;;  %8737 = vmatprep.subr.bf16.mxu1 %v12438_v25  ;;  %v12523_v21 = vld [vmem:[%s15295_s7 + $0x4a4] ss:$16 sps:$4 sm:$0xff]   ;;  %v12526_v25 = vld [vmem:[%s15295_s7 + $0x4ac] ss:$16 sps:$4 sm:$0xff]  }
 0x5fc   :  { %8697 = vmatpush1.bf16.msra.mxu0 %v12433_v23  ;;  %8738 = vmatpush1.bf16.msra.mxu1 %v12436_v39  ;;  %v12521_v23 = vld [vmem:[%s15295_s7 + $0x4a0] ss:$16 sps:$4 sm:$0xff]   ;;  %v12524_v39 = vld [vmem:[%s15295_s7 + $0x4a8] ss:$16 sps:$4 sm:$0xff]  }
 0x5fd   :  { %8987 = vmatprep.subr.bf16.mxu0 %v12443_v36  ;;  %9028 = vmatprep.subr.bf16.mxu1 %v12446_v11  ;;  %v12532_v36 = vld [vmem:[%s15295_s7 + $0x4cc] ss:$16 sps:$4 sm:$0xff]   ;;  %v12752_v11 = vld.sshfl [vmem:[#allocation4 + $0x5] sm:$0xf pattern:$0x76325410] }
 0x5ff   :  { %8715 = vmatmul.mubr.bf16.vlgmr.msra.gmra.mrb[76].mxu0 %v8489_v61  ;;  %8756 = vmatmul.mubr.bf16.vlgmr.msra.gmra.mrb[24].mxu1 %v8489_v61  ;;  %v12530_v61 = vld [vmem:[%s15295_s7 + $0x4c8] ss:$16 sps:$4 sm:$0xff]  }
 0x600   :  { %8988 = vmatpush1.bf16.msra.mxu0 %v12441_v56  ;;  %9029 = vmatpush1.bf16.msra.mxu1 %v12444_v38  ;;  %v12753_v56 = vld.sshfl [vmem:[#allocation4 + $0x15] sm:$0xf pattern:$0x76325410]  ;;  %v12527_v38 = vld [vmem:[%s15295_s7 + $0x4c0] ss:$16 sps:$4 sm:$0xff]  }
 0x601   :  { %8989 = vmatprep.subr.bf16.mxu0 %v12449_v2  ;;  %9030 = vmatprep.subr.bf16.mxu1 %v12452_v32  ;;  %v12535_v2 = vld [vmem:[%s15295_s7 + $0x4e4] ss:$16 sps:$4 sm:$0xff]   ;;  %v12538_v32 = vld [vmem:[%s15295_s7 + $0x4ec] ss:$16 sps:$4 sm:$0xff]  }
 0x602   :  { %9019 = vmatprep.mubr.bf16.mxu0 %v12765_v12  ;;  %9060 = vmatprep.mubr.bf16.mxu1 %v12765_v12 }
 0x604   :  { %8990 = vmatpush1.bf16.msra.mxu0 %v12447_v30  ;;  %9031 = vmatpush1.bf16.msra.mxu1 %v12450_v46  ;;  %v12533_v30 = vld [vmem:[%s15295_s7 + $0x4e0] ss:$16 sps:$4 sm:$0xff]   ;;  %v12536_v46 = vld [vmem:[%s15295_s7 + $0x4e8] ss:$16 sps:$4 sm:$0xff]  }
 0x605   :  { %8991 = vmatprep.subr.bf16.mxu0 %v12455_v34  ;;  %9032 = vmatprep.subr.bf16.mxu1 %v12458_v14  ;;  %v9097_v34 = vcombine.low %v12752_v11, %v12753_v56  ;;  %v12543_v14 = vld [vmem:[%s15295_s7 + $0x504] ss:$16 sps:$4 sm:$0xff]   ;;  %v12620_v56 = vld [vmem:[%s15295_s7 + $0x68c] ss:$16 sps:$4 sm:$0xff]  }
 0x606   :  { %v12617_v11 = vld [vmem:[%s15295_s7 + $0x684] ss:$16 sps:$4 sm:$0xff]  }
 0x608   :  { %8992 = vmatpush1.bf16.msra.mxu0 %v12453_v3  ;;  %9033 = vmatpush1.bf16.msra.mxu1 %v12456_v52  ;;  %v12546_v3 = vld [vmem:[%s15295_s7 + $0x50c] ss:$16 sps:$4 sm:$0xff]   ;;  %v12541_v52 = vld [vmem:[%s15295_s7 + $0x500] ss:$16 sps:$4 sm:$0xff]  }
 0x609   :  { %8993 = vmatprep.subr.bf16.mxu0 %v12461_v9  ;;  %9034 = vmatprep.subr.bf16.mxu1 %v12464_v1  ;;  %v12544_v9 = vld [vmem:[%s15295_s7 + $0x508] ss:$16 sps:$4 sm:$0xff]   ;;  %v9099_v1 = vpack.c.bf16 %v9097_v34, %v9097_v34 }
 0x60a   :  { %v12756_v34 = vld.sshfl [vmem:[#allocation4 + $0x8] sm:$0xf pattern:$0x76325410] }
 0x60c   :  { %8994 = vmatpush1.bf16.msra.mxu0 %v12459_v29  ;;  %9035 = vmatpush1.bf16.msra.mxu1 %v12462_v24  ;;  %v12549_v29 = vld [vmem:[%s15295_s7 + $0x524] ss:$16 sps:$4 sm:$0xff]   ;;  %v12552_v24 = vld [vmem:[%s15295_s7 + $0x52c] ss:$16 sps:$4 sm:$0xff]  }
 0x60d   :  { %8995 = vmatprep.subr.bf16.mxu0 %v12467_v10  ;;  %9036 = vmatprep.subr.bf16.mxu1 %v12470_v45  ;;  %v12547_v10 = vld [vmem:[%s15295_s7 + $0x520] ss:$16 sps:$4 sm:$0xff]   ;;  %v12550_v45 = vld [vmem:[%s15295_s7 + $0x528] ss:$16 sps:$4 sm:$0xff]  }
 0x610   :  { %8996 = vmatpush1.bf16.msra.mxu0 %v12465_v33  ;;  %9037 = vmatpush1.bf16.msra.mxu1 %v12468_v7  ;;  %v12555_v33 = vld [vmem:[%s15295_s7 + $0x544] ss:$16 sps:$4 sm:$0xff]   ;;  %v12558_v7 = vld [vmem:[%s15295_s7 + $0x54c] ss:$16 sps:$4 sm:$0xff]  }
 0x611   :  { %8997 = vmatprep.subr.bf16.mxu0 %v12473_v6  ;;  %9038 = vmatprep.subr.bf16.mxu1 %v12476_v28  ;;  %v12553_v6 = vld [vmem:[%s15295_s7 + $0x540] ss:$16 sps:$4 sm:$0xff]   ;;  %v12556_v28 = vld [vmem:[%s15295_s7 + $0x548] ss:$16 sps:$4 sm:$0xff]  }
 0x614   :  { %8998 = vmatpush1.bf16.msra.mxu0 %v12471_v53  ;;  %9039 = vmatpush1.bf16.msra.mxu1 %v12474_v5  ;;  %v12561_v53 = vld [vmem:[%s15295_s7 + $0x564] ss:$16 sps:$4 sm:$0xff]   ;;  %v12564_v5 = vld [vmem:[%s15295_s7 + $0x56c] ss:$16 sps:$4 sm:$0xff]  }
 0x615   :  { %8999 = vmatprep.subr.bf16.mxu0 %v12479_v59  ;;  %9040 = vmatprep.subr.bf16.mxu1 %v12482_v20  ;;  %v12559_v59 = vld [vmem:[%s15295_s7 + $0x560] ss:$16 sps:$4 sm:$0xff]   ;;  %v12562_v20 = vld [vmem:[%s15295_s7 + $0x568] ss:$16 sps:$4 sm:$0xff]  }
 0x618   :  { %9000 = vmatpush1.bf16.msra.mxu0 %v12477_v15  ;;  %9041 = vmatpush1.bf16.msra.mxu1 %v12480_v13  ;;  %v12565_v15 = vld [vmem:[%s15295_s7 + $0x580] ss:$16 sps:$4 sm:$0xff]   ;;  %v12568_v13 = vld [vmem:[%s15295_s7 + $0x588] ss:$16 sps:$4 sm:$0xff]  }
 0x619   :  { %9001 = vmatprep.subr.bf16.mxu0 %v12485_v19  ;;  %9042 = vmatprep.subr.bf16.mxu1 %v12488_v4  ;;  %v12573_v19 = vld [vmem:[%s15295_s7 + $0x5a4] ss:$16 sps:$4 sm:$0xff]   ;;  %v12576_v4 = vld [vmem:[%s15295_s7 + $0x5ac] ss:$16 sps:$4 sm:$0xff]  }
 0x61c   :  { %9002 = vmatpush1.bf16.msra.mxu0 %v12483_v8  ;;  %9043 = vmatpush1.bf16.msra.mxu1 %v12486_v54  ;;  %v12571_v8 = vld [vmem:[%s15295_s7 + $0x5a0] ss:$16 sps:$4 sm:$0xff]   ;;  %v12574_v54 = vld [vmem:[%s15295_s7 + $0x5a8] ss:$16 sps:$4 sm:$0xff]  }
 0x61d   :  { %9292 = vmatprep.subr.bf16.mxu0 %v12493_v58  ;;  %9333 = vmatprep.subr.bf16.mxu1 %v12496_v44  ;;  %v12579_v58 = vld [vmem:[%s15295_s7 + $0x5c4] ss:$16 sps:$4 sm:$0xff]   ;;  %v12582_v44 = vld [vmem:[%s15295_s7 + $0x5cc] ss:$16 sps:$4 sm:$0xff]  }
 0x61f   :  { %9020 = vmatmul.mubr.bf16.vlgmr.msra.gmra.mrb[80].mxu0 %v8794_v57  ;;  %9061 = vmatmul.mubr.bf16.vlgmr.msra.gmra.mrb[28].mxu1 %v8794_v57  ;;  %v12580_v57 = vld [vmem:[%s15295_s7 + $0x5c8] ss:$16 sps:$4 sm:$0xff]  }
 0x620   :  { %9293 = vmatpush1.bf16.msra.mxu0 %v12491_v51  ;;  %9334 = vmatpush1.bf16.msra.mxu1 %v12494_v41  ;;  %v12754_v51 = vld.sshfl [vmem:[#allocation4 + $0x6] sm:$0xf pattern:$0x76325410]  ;;  %v12577_v41 = vld [vmem:[%s15295_s7 + $0x5c0] ss:$16 sps:$4 sm:$0xff]  }
 0x621   :  { %9294 = vmatprep.subr.bf16.mxu0 %v12499_v0  ;;  %9335 = vmatprep.subr.bf16.mxu1 %v12502_v60  ;;  %v12585_v0 = vld [vmem:[%s15295_s7 + $0x5e4] ss:$16 sps:$4 sm:$0xff]   ;;  %v12588_v60 = vld [vmem:[%s15295_s7 + $0x5ec] ss:$16 sps:$4 sm:$0xff]  }
 0x622   :  { %9324 = vmatprep.mubr.bf16.mxu0 %v12765_v12  ;;  %9365 = vmatprep.mubr.bf16.mxu1 %v12765_v12 }
 0x624   :  { %9295 = vmatpush1.bf16.msra.mxu0 %v12497_v22  ;;  %9336 = vmatpush1.bf16.msra.mxu1 %v12500_v48  ;;  %v12583_v22 = vld [vmem:[%s15295_s7 + $0x5e0] ss:$16 sps:$4 sm:$0xff]   ;;  %v12586_v48 = vld [vmem:[%s15295_s7 + $0x5e8] ss:$16 sps:$4 sm:$0xff]  }
 0x625   :  { %9296 = vmatprep.subr.bf16.mxu0 %v12505_v40  ;;  %9337 = vmatprep.subr.bf16.mxu1 %v12508_v18  ;;  %v9402_v40 = vcombine.low %v12754_v51, %v12755_v16  ;;  %v12593_v18 = vld [vmem:[%s15295_s7 + $0x604] ss:$16 sps:$4 sm:$0xff]   ;;  %v12659_v16 = vld [vmem:[%s15295_s7 + $0x760] ss:$16 sps:$4 sm:$0xff]   ;;  %v12670_v51 = vld [vmem:[%s15295_s7 + $0x78c] ss:$16 sps:$4 sm:$0xff]  }
 0x628   :  { %9297 = vmatpush1.bf16.msra.mxu0 %v12503_v47  ;;  %9338 = vmatpush1.bf16.msra.mxu1 %v12506_v37  ;;  %v12596_v47 = vld [vmem:[%s15295_s7 + $0x60c] ss:$16 sps:$4 sm:$0xff]   ;;  %v12591_v37 = vld [vmem:[%s15295_s7 + $0x600] ss:$16 sps:$4 sm:$0xff]  }
 0x629   :  { %9298 = vmatprep.subr.bf16.mxu0 %v12511_v49  ;;  %9339 = vmatprep.subr.bf16.mxu1 %v12514_v50  ;;  %v12594_v49 = vld [vmem:[%s15295_s7 + $0x608] ss:$16 sps:$4 sm:$0xff]   ;;  %v9404_v50 = vpack.c.bf16 %v9402_v40, %v9402_v40 }
 0x62a   :  { %v12758_v40 = vld.sshfl [vmem:[#allocation4 + $0x9] sm:$0xf pattern:$0x76325410] }
 0x62c   :  { %9299 = vmatpush1.bf16.msra.mxu0 %v12509_v35  ;;  %9340 = vmatpush1.bf16.msra.mxu1 %v12512_v17  ;;  %v12599_v35 = vld [vmem:[%s15295_s7 + $0x624] ss:$16 sps:$4 sm:$0xff]   ;;  %v12602_v17 = vld [vmem:[%s15295_s7 + $0x62c] ss:$16 sps:$4 sm:$0xff]  }
 0x62d   :  { %9300 = vmatprep.subr.bf16.mxu0 %v12517_v55  ;;  %9341 = vmatprep.subr.bf16.mxu1 %v12520_v26  ;;  %v12597_v55 = vld [vmem:[%s15295_s7 + $0x620] ss:$16 sps:$4 sm:$0xff]   ;;  %v12600_v26 = vld [vmem:[%s15295_s7 + $0x628] ss:$16 sps:$4 sm:$0xff]  }
 0x630   :  { %9301 = vmatpush1.bf16.msra.mxu0 %v12515_v31  ;;  %9342 = vmatpush1.bf16.msra.mxu1 %v12518_v42  ;;  %v12605_v31 = vld [vmem:[%s15295_s7 + $0x644] ss:$16 sps:$4 sm:$0xff]   ;;  %v12608_v42 = vld [vmem:[%s15295_s7 + $0x64c] ss:$16 sps:$4 sm:$0xff]  }
 0x631   :  { %9302 = vmatprep.subr.bf16.mxu0 %v12523_v21  ;;  %9343 = vmatprep.subr.bf16.mxu1 %v12526_v25  ;;  %v12603_v21 = vld [vmem:[%s15295_s7 + $0x640] ss:$16 sps:$4 sm:$0xff]   ;;  %v12606_v25 = vld [vmem:[%s15295_s7 + $0x648] ss:$16 sps:$4 sm:$0xff]  }
 0x634   :  { %9303 = vmatpush1.bf16.msra.mxu0 %v12521_v23  ;;  %9344 = vmatpush1.bf16.msra.mxu1 %v12524_v39  ;;  %v12611_v23 = vld [vmem:[%s15295_s7 + $0x664] ss:$16 sps:$4 sm:$0xff]   ;;  %v12614_v39 = vld [vmem:[%s15295_s7 + $0x66c] ss:$16 sps:$4 sm:$0xff]  }
 0x635   :  { %9304 = vmatprep.subr.bf16.mxu0 %v12529_v27  ;;  %9345 = vmatprep.subr.bf16.mxu1 %v12532_v36  ;;  %v12609_v27 = vld [vmem:[%s15295_s7 + $0x660] ss:$16 sps:$4 sm:$0xff]   ;;  %v12612_v36 = vld [vmem:[%s15295_s7 + $0x668] ss:$16 sps:$4 sm:$0xff]  }
 0x638   :  { %9305 = vmatpush1.bf16.msra.mxu0 %v12527_v38  ;;  %9346 = vmatpush1.bf16.msra.mxu1 %v12530_v61  ;;  %v12615_v38 = vld [vmem:[%s15295_s7 + $0x680] ss:$16 sps:$4 sm:$0xff]   ;;  %v12618_v61 = vld [vmem:[%s15295_s7 + $0x688] ss:$16 sps:$4 sm:$0xff]  }
 0x639   :  { %9306 = vmatprep.subr.bf16.mxu0 %v12535_v2  ;;  %9347 = vmatprep.subr.bf16.mxu1 %v12538_v32  ;;  %v12623_v2 = vld [vmem:[%s15295_s7 + $0x6a4] ss:$16 sps:$4 sm:$0xff]   ;;  %v12626_v32 = vld [vmem:[%s15295_s7 + $0x6ac] ss:$16 sps:$4 sm:$0xff]  }
 0x63c   :  { %9307 = vmatpush1.bf16.msra.mxu0 %v12533_v30  ;;  %9348 = vmatpush1.bf16.msra.mxu1 %v12536_v46  ;;  %v12621_v30 = vld [vmem:[%s15295_s7 + $0x6a0] ss:$16 sps:$4 sm:$0xff]   ;;  %v12624_v46 = vld [vmem:[%s15295_s7 + $0x6a8] ss:$16 sps:$4 sm:$0xff]  }
 0x63d   :  { %9597 = vmatprep.subr.bf16.mxu0 %v12543_v14  ;;  %9638 = vmatprep.subr.bf16.mxu1 %v12546_v3  ;;  %v12629_v14 = vld [vmem:[%s15295_s7 + $0x6c4] ss:$16 sps:$4 sm:$0xff]   ;;  %v12632_v3 = vld [vmem:[%s15295_s7 + $0x6cc] ss:$16 sps:$4 sm:$0xff]  }
 0x63f   :  { %9325 = vmatmul.mubr.bf16.vlgmr.msra.gmra.mrb[84].mxu0 %v9099_v1  ;;  %9366 = vmatmul.mubr.bf16.vlgmr.msra.gmra.mrb[32].mxu1 %v9099_v1  ;;  %v12630_v1 = vld [vmem:[%s15295_s7 + $0x6c8] ss:$16 sps:$4 sm:$0xff]  }
 0x640   :  { %9598 = vmatpush1.bf16.msra.mxu0 %v12541_v52  ;;  %9639 = vmatpush1.bf16.msra.mxu1 %v12544_v9  ;;  %v12757_v52 = vld.sshfl [vmem:[#allocation4 + $0x18] sm:$0xf pattern:$0x76325410]  ;;  %v12627_v9 = vld [vmem:[%s15295_s7 + $0x6c0] ss:$16 sps:$4 sm:$0xff]  }
 0x641   :  { %9599 = vmatprep.subr.bf16.mxu0 %v12549_v29  ;;  %9640 = vmatprep.subr.bf16.mxu1 %v12552_v24  ;;  %v12635_v29 = vld [vmem:[%s15295_s7 + $0x6e4] ss:$16 sps:$4 sm:$0xff]   ;;  %v12638_v24 = vld [vmem:[%s15295_s7 + $0x6ec] ss:$16 sps:$4 sm:$0xff]  }
 0x642   :  { %9629 = vmatprep.mubr.bf16.mxu0 %v12765_v12  ;;  %9670 = vmatprep.mubr.bf16.mxu1 %v12765_v12 }
 0x644   :  { %9600 = vmatpush1.bf16.msra.mxu0 %v12547_v10  ;;  %9641 = vmatpush1.bf16.msra.mxu1 %v12550_v45  ;;  %v12633_v10 = vld [vmem:[%s15295_s7 + $0x6e0] ss:$16 sps:$4 sm:$0xff]   ;;  %v12636_v45 = vld [vmem:[%s15295_s7 + $0x6e8] ss:$16 sps:$4 sm:$0xff]  }
 0x645   :  { %9601 = vmatprep.subr.bf16.mxu0 %v12555_v33  ;;  %9642 = vmatprep.subr.bf16.mxu1 %v12558_v7  ;;  %v9708_v33 = vcombine.low %v12756_v34, %v12757_v52  ;;  %v12643_v7 = vld [vmem:[%s15295_s7 + $0x704] ss:$16 sps:$4 sm:$0xff]   ;;  %v12697_v34 = vld [vmem:[%s15295_s7 + $0x820] ss:$16 sps:$4 sm:$0xff]   ;;  %v12708_v52 = vld [vmem:[%s15295_s7 + $0x84c] ss:$16 sps:$4 sm:$0xff]  }
 0x648   :  { %9602 = vmatpush1.bf16.msra.mxu0 %v12553_v6  ;;  %9643 = vmatpush1.bf16.msra.mxu1 %v12556_v28  ;;  %v12646_v6 = vld [vmem:[%s15295_s7 + $0x70c] ss:$16 sps:$4 sm:$0xff]   ;;  %v12641_v28 = vld [vmem:[%s15295_s7 + $0x700] ss:$16 sps:$4 sm:$0xff]  }
 0x649   :  { %9603 = vmatprep.subr.bf16.mxu0 %v12561_v53  ;;  %9644 = vmatprep.subr.bf16.mxu1 %v12564_v5  ;;  %v12644_v53 = vld [vmem:[%s15295_s7 + $0x708] ss:$16 sps:$4 sm:$0xff]   ;;  %v9710_v5 = vpack.c.bf16 %v9708_v33, %v9708_v33  ;;  %v12720_v33 = vld [vmem:[%s15295_s7 + $0x88c] ss:$16 sps:$4 sm:$0xff]  }
 0x64c   :  { %9604 = vmatpush1.bf16.msra.mxu0 %v12559_v59  ;;  %9645 = vmatpush1.bf16.msra.mxu1 %v12562_v20  ;;  %v12649_v59 = vld [vmem:[%s15295_s7 + $0x724] ss:$16 sps:$4 sm:$0xff]   ;;  %v12652_v20 = vld [vmem:[%s15295_s7 + $0x72c] ss:$16 sps:$4 sm:$0xff]  }
 0x64d   :  { %9605 = vmatprep.subr.bf16.mxu0 %v12567_v43  ;;  %9646 = vmatprep.subr.bf16.mxu1 %v12570_v63  ;;  %v12647_v43 = vld [vmem:[%s15295_s7 + $0x720] ss:$16 sps:$4 sm:$0xff]   ;;  %v12650_v63 = vld [vmem:[%s15295_s7 + $0x728] ss:$16 sps:$4 sm:$0xff]  }
 0x650   :  { %9606 = vmatpush1.bf16.msra.mxu0 %v12565_v15  ;;  %9647 = vmatpush1.bf16.msra.mxu1 %v12568_v13  ;;  %v12655_v15 = vld [vmem:[%s15295_s7 + $0x744] ss:$16 sps:$4 sm:$0xff]   ;;  %v12658_v13 = vld [vmem:[%s15295_s7 + $0x74c] ss:$16 sps:$4 sm:$0xff]  }
 0x651   :  { %9607 = vmatprep.subr.bf16.mxu0 %v12573_v19  ;;  %9648 = vmatprep.subr.bf16.mxu1 %v12576_v4  ;;  %v12653_v19 = vld [vmem:[%s15295_s7 + $0x740] ss:$16 sps:$4 sm:$0xff]   ;;  %v12656_v4 = vld [vmem:[%s15295_s7 + $0x748] ss:$16 sps:$4 sm:$0xff]  }
 0x654   :  { %9608 = vmatpush1.bf16.msra.mxu0 %v12571_v8  ;;  %9649 = vmatpush1.bf16.msra.mxu1 %v12574_v54  ;;  %v12661_v8 = vld [vmem:[%s15295_s7 + $0x764] ss:$16 sps:$4 sm:$0xff]   ;;  %v12664_v54 = vld [vmem:[%s15295_s7 + $0x76c] ss:$16 sps:$4 sm:$0xff]  }
 0x655   :  { %9609 = vmatprep.subr.bf16.mxu0 %v12579_v58  ;;  %9650 = vmatprep.subr.bf16.mxu1 %v12582_v44  ;;  %v12662_v58 = vld [vmem:[%s15295_s7 + $0x768] ss:$16 sps:$4 sm:$0xff]   ;;  %v12667_v44 = vld [vmem:[%s15295_s7 + $0x784] ss:$16 sps:$4 sm:$0xff]  }
 0x658   :  { %9610 = vmatpush1.bf16.msra.mxu0 %v12577_v41  ;;  %9651 = vmatpush1.bf16.msra.mxu1 %v12580_v57  ;;  %v12665_v41 = vld [vmem:[%s15295_s7 + $0x780] ss:$16 sps:$4 sm:$0xff]   ;;  %v12668_v57 = vld [vmem:[%s15295_s7 + $0x788] ss:$16 sps:$4 sm:$0xff]  }
 0x659   :  { %9611 = vmatprep.subr.bf16.mxu0 %v12585_v0  ;;  %9652 = vmatprep.subr.bf16.mxu1 %v12588_v60  ;;  %v12673_v0 = vld [vmem:[%s15295_s7 + $0x7a4] ss:$16 sps:$4 sm:$0xff]   ;;  %v12676_v60 = vld [vmem:[%s15295_s7 + $0x7ac] ss:$16 sps:$4 sm:$0xff]  }
 0x65c   :  { %9612 = vmatpush1.bf16.msra.mxu0 %v12583_v22  ;;  %9653 = vmatpush1.bf16.msra.mxu1 %v12586_v48  ;;  %v12671_v22 = vld [vmem:[%s15295_s7 + $0x7a0] ss:$16 sps:$4 sm:$0xff]   ;;  %v12674_v48 = vld [vmem:[%s15295_s7 + $0x7a8] ss:$16 sps:$4 sm:$0xff]  }
 0x65d   :  { %9903 = vmatprep.subr.bf16.mxu0 %v12593_v18  ;;  %9944 = vmatprep.subr.bf16.mxu1 %v12596_v47  ;;  %v12679_v18 = vld [vmem:[%s15295_s7 + $0x7c4] ss:$16 sps:$4 sm:$0xff]   ;;  %v12682_v47 = vld [vmem:[%s15295_s7 + $0x7cc] ss:$16 sps:$4 sm:$0xff]  }
 0x65f   :  { %9630 = vmatmul.mubr.bf16.vlgmr.msra.gmra.mrb[88].mxu0 %v9404_v50  ;;  %9671 = vmatmul.mubr.bf16.vlgmr.msra.gmra.mrb[36].mxu1 %v9404_v50 }
 0x660   :  { %9904 = vmatpush1.bf16.msra.mxu0 %v12591_v37  ;;  %9945 = vmatpush1.bf16.msra.mxu1 %v12594_v49  ;;  %v12759_v37 = vld.sshfl [vmem:[#allocation4 + $0x19] sm:$0xf pattern:$0x76325410] }
 0x661   :  { %9905 = vmatprep.subr.bf16.mxu0 %v12599_v35  ;;  %9946 = vmatprep.subr.bf16.mxu1 %v12602_v17 }
 0x662   :  { %9935 = vmatprep.mubr.bf16.mxu0 %v12765_v12  ;;  %9976 = vmatprep.mubr.bf16.mxu1 %v12765_v12 }
 0x664   :  { %9906 = vmatpush1.bf16.msra.mxu0 %v12597_v55  ;;  %9947 = vmatpush1.bf16.msra.mxu1 %v12600_v26 }
 0x665   :  { %9907 = vmatprep.subr.bf16.mxu0 %v12605_v31  ;;  %9948 = vmatprep.subr.bf16.mxu1 %v12608_v42  ;;  %v12677_v31 = vld [vmem:[%s15295_s7 + $0x7c0] ss:$16 sps:$4 sm:$0xff]   ;;  %v12680_v42 = vld [vmem:[%s15295_s7 + $0x7c8] ss:$16 sps:$4 sm:$0xff]  }
 0x668   :  { %9908 = vmatpush1.bf16.msra.mxu0 %v12603_v21  ;;  %9949 = vmatpush1.bf16.msra.mxu1 %v12606_v25 }
 0x669   :  { %9909 = vmatprep.subr.bf16.mxu0 %v12611_v23  ;;  %9950 = vmatprep.subr.bf16.mxu1 %v12614_v39  ;;  %v12685_v23 = vld [vmem:[%s15295_s7 + $0x7e4] ss:$16 sps:$4 sm:$0xff]   ;;  %v12688_v39 = vld [vmem:[%s15295_s7 + $0x7ec] ss:$16 sps:$4 sm:$0xff]  }
 0x66c   :  { %9910 = vmatpush1.bf16.msra.mxu0 %v12609_v27  ;;  %9951 = vmatpush1.bf16.msra.mxu1 %v12612_v36  ;;  %v12683_v27 = vld [vmem:[%s15295_s7 + $0x7e0] ss:$16 sps:$4 sm:$0xff]   ;;  %v12686_v36 = vld [vmem:[%s15295_s7 + $0x7e8] ss:$16 sps:$4 sm:$0xff]  }
 0x66d   :  { %9911 = vmatprep.subr.bf16.mxu0 %v12617_v11  ;;  %9952 = vmatprep.subr.bf16.mxu1 %v12620_v56  ;;  %v10013_v11 = vcombine.low %v12758_v40, %v12759_v37  ;;  %v12693_v56 = vld [vmem:[%s15295_s7 + $0x804] ss:$16 sps:$4 sm:$0xff]   ;;  %v12738_v40 = vld [vmem:[%s15295_s7 + $0x8ec] ss:$16 sps:$4 sm:$0xff]  }
 0x670   :  { %9912 = vmatpush1.bf16.msra.mxu0 %v12615_v38  ;;  %9953 = vmatpush1.bf16.msra.mxu1 %v12618_v61  ;;  %v12696_v38 = vld [vmem:[%s15295_s7 + $0x80c] ss:$16 sps:$4 sm:$0xff]   ;;  %v12691_v61 = vld [vmem:[%s15295_s7 + $0x800] ss:$16 sps:$4 sm:$0xff]  }
 0x671   :  { %9913 = vmatprep.subr.bf16.mxu0 %v12623_v2  ;;  %9954 = vmatprep.subr.bf16.mxu1 %v12626_v32  ;;  %v12694_v2 = vld [vmem:[%s15295_s7 + $0x808] ss:$16 sps:$4 sm:$0xff]   ;;  %v10015_v32 = vpack.c.bf16 %v10013_v11, %v10013_v11 }
 0x674   :  { %9914 = vmatpush1.bf16.msra.mxu0 %v12621_v30  ;;  %9955 = vmatpush1.bf16.msra.mxu1 %v12624_v46  ;;  %v12699_v30 = vld [vmem:[%s15295_s7 + $0x824] ss:$16 sps:$4 sm:$0xff]   ;;  %v12702_v46 = vld [vmem:[%s15295_s7 + $0x82c] ss:$16 sps:$4 sm:$0xff]  }
 0x675   :  { %9915 = vmatprep.subr.bf16.mxu0 %v12629_v14  ;;  %9956 = vmatprep.subr.bf16.mxu1 %v12632_v3  ;;  %v12700_v14 = vld [vmem:[%s15295_s7 + $0x828] ss:$16 sps:$4 sm:$0xff]   ;;  %v12705_v3 = vld [vmem:[%s15295_s7 + $0x844] ss:$16 sps:$4 sm:$0xff]  }
 0x678   :  { %9916 = vmatpush1.bf16.msra.mxu0 %v12627_v9  ;;  %9957 = vmatpush1.bf16.msra.mxu1 %v12630_v1  ;;  %v12703_v9 = vld [vmem:[%s15295_s7 + $0x840] ss:$16 sps:$4 sm:$0xff]   ;;  %v12706_v1 = vld [vmem:[%s15295_s7 + $0x848] ss:$16 sps:$4 sm:$0xff]  }
 0x679   :  { %9917 = vmatprep.subr.bf16.mxu0 %v12635_v29  ;;  %9958 = vmatprep.subr.bf16.mxu1 %v12638_v24  ;;  %v12711_v29 = vld [vmem:[%s15295_s7 + $0x864] ss:$16 sps:$4 sm:$0xff]   ;;  %v12709_v24 = vld [vmem:[%s15295_s7 + $0x860] ss:$16 sps:$4 sm:$0xff]  }
 0x67c   :  { %9918 = vmatpush1.bf16.msra.mxu0 %v12633_v10  ;;  %9959 = vmatpush1.bf16.msra.mxu1 %v12636_v45  ;;  %v12712_v10 = vld [vmem:[%s15295_s7 + $0x868] ss:$16 sps:$4 sm:$0xff]   ;;  %v12717_v45 = vld [vmem:[%s15295_s7 + $0x884] ss:$16 sps:$4 sm:$0xff]  }
 0x67d   :  { %10208 = vmatprep.subr.bf16.mxu0 %v12643_v7  ;;  %10249 = vmatprep.subr.bf16.mxu1 %v12646_v6  ;;  %v12715_v7 = vld [vmem:[%s15295_s7 + $0x880] ss:$16 sps:$4 sm:$0xff]   ;;  %v12718_v6 = vld [vmem:[%s15295_s7 + $0x888] ss:$16 sps:$4 sm:$0xff]  }
 0x67f   :  { %9936 = vmatmul.mubr.bf16.vlgmr.msra.gmra.mrb[92].mxu0 %v9710_v5  ;;  %9977 = vmatmul.mubr.bf16.vlgmr.msra.gmra.mrb[40].mxu1 %v9710_v5  ;;  %v12721_v5 = vld [vmem:[%s15295_s7 + $0x8a0] ss:$16 sps:$4 sm:$0xff]  }
 0x680   :  { %10209 = vmatpush1.bf16.msra.mxu0 %v12641_v28  ;;  %10250 = vmatpush1.bf16.msra.mxu1 %v12644_v53  ;;  %v12723_v28 = vld [vmem:[%s15295_s7 + $0x8a4] ss:$16 sps:$4 sm:$0xff]   ;;  %v12726_v53 = vld [vmem:[%s15295_s7 + $0x8ac] ss:$16 sps:$4 sm:$0xff]  }
 0x681   :  { %10210 = vmatprep.subr.bf16.mxu0 %v12649_v59  ;;  %10251 = vmatprep.subr.bf16.mxu1 %v12652_v20  ;;  %v12724_v59 = vld [vmem:[%s15295_s7 + $0x8a8] ss:$16 sps:$4 sm:$0xff]  }
 0x682   :  { %10240 = vmatprep.mubr.bf16.mxu0 %v12765_v12  ;;  %10281 = vmatprep.mubr.bf16.mxu1 %v12765_v12  ;;  %v12760_v20 = vld.sshfl [vmem:[#allocation4 + $0xa] sm:$0xf pattern:$0x76325410] }
 0x684   :  { %10211 = vmatpush1.bf16.msra.mxu0 %v12647_v43  ;;  %10252 = vmatpush1.bf16.msra.mxu1 %v12650_v63  ;;  %v12729_v43 = vld [vmem:[%s15295_s7 + $0x8c4] ss:$16 sps:$4 sm:$0xff]   ;;  %v12732_v63 = vld [vmem:[%s15295_s7 + $0x8cc] ss:$16 sps:$4 sm:$0xff]  }
 0x685   :  { %10212 = vmatprep.subr.bf16.mxu0 %v12655_v15  ;;  %10253 = vmatprep.subr.bf16.mxu1 %v12658_v13  ;;  %v12761_v15 = vld.sshfl [vmem:[#allocation4 + $0x1a] sm:$0xf pattern:$0x76325410] }
 0x686   :  { %v10318_v37 = vcombine.low %v12760_v20, %v12761_v15 }
 0x688   :  { %10213 = vmatpush1.bf16.msra.mxu0 %v12653_v19  ;;  %10254 = vmatpush1.bf16.msra.mxu1 %v12656_v4 }
 0x689   :  { %10214 = vmatprep.subr.bf16.mxu0 %v12661_v8  ;;  %10255 = vmatprep.subr.bf16.mxu1 %v12664_v54 }
 0x68c   :  { %10215 = vmatpush1.bf16.msra.mxu0 %v12659_v16  ;;  %10256 = vmatpush1.bf16.msra.mxu1 %v12662_v58 }
 0x68d   :  { %10216 = vmatprep.subr.bf16.mxu0 %v12667_v44  ;;  %10257 = vmatprep.subr.bf16.mxu1 %v12670_v51 }
 0x690   :  { %10217 = vmatpush1.bf16.msra.mxu0 %v12665_v41  ;;  %10258 = vmatpush1.bf16.msra.mxu1 %v12668_v57  ;;  %v12727_v57 = vld [vmem:[%s15295_s7 + $0x8c0] ss:$16 sps:$4 sm:$0xff]  }
 0x691   :  { %10218 = vmatprep.subr.bf16.mxu0 %v12673_v0  ;;  %10259 = vmatprep.subr.bf16.mxu1 %v12676_v60  ;;  %v12730_v0 = vld [vmem:[%s15295_s7 + $0x8c8] ss:$16 sps:$4 sm:$0xff]  }
 0x692   :  { %v15142_v49 = vpop.f32.mrb[68].mxu0  ;;  %v15144_v50 = vpop.f32.mrb[16].mxu1 }
 0x693   :  { %v15146_v35 = vpop.f32.mrb[69].mxu0  ;;  %v15148_v17 = vpop.f32.mrb[17].mxu1 }
 0x694   :  { %10219 = vmatpush1.bf16.msra.mxu0 %v12671_v22  ;;  %10260 = vmatpush1.bf16.msra.mxu1 %v12674_v48  ;;  %v8177_v55 = vpop.f32.mrb[70].mxu0  ;;  %v8218_v26 = vpop.f32.mrb[18].mxu1  ;;  %v12735_v48 = vld [vmem:[%s15295_s7 + $0x8e4] ss:$16 sps:$4 sm:$0xff]  }
 0x695   :  { %v8178_v21 = vpop.f32.mrb[71].mxu0  ;;  %v8219_v25 = vpop.f32.mrb[19].mxu1  ;;  %10220 = vmatprep.subr.bf16.mxu0 %v12679_v18  ;;  %10261 = vmatprep.subr.bf16.mxu1 %v12682_v47  ;;  %v12733_v18 = vld [vmem:[%s15295_s7 + $0x8e0] ss:$16 sps:$4 sm:$0xff]   ;;  %v12736_v47 = vld [vmem:[%s15295_s7 + $0x8e8] ss:$16 sps:$4 sm:$0xff]  }
 0x698   :  { %10221 = vmatpush1.bf16.msra.mxu0 %v12677_v31  ;;  %10262 = vmatpush1.bf16.msra.mxu1 %v12680_v42 }
 0x699   :  { %10222 = vmatprep.subr.bf16.mxu0 %v12685_v23  ;;  %10263 = vmatprep.subr.bf16.mxu1 %v12688_v39 }
 0x69c   :  { %10223 = vmatpush1.bf16.msra.mxu0 %v12683_v27  ;;  %10264 = vmatpush1.bf16.msra.mxu1 %v12686_v36 }
 0x69d   :  { %10513 = vmatprep.subr.bf16.mxu0 %v12693_v56  ;;  %10554 = vmatprep.subr.bf16.mxu1 %v12696_v38 }
 0x69f   :  { %10241 = vmatmul.mubr.bf16.vlgmr.msra.gmra.mrb[96].mxu0 %v10015_v32  ;;  %10282 = vmatmul.mubr.bf16.vlgmr.msra.gmra.mrb[44].mxu1 %v10015_v32 }
 0x6a0   :  { %10514 = vmatpush1.bf16.msra.mxu0 %v12691_v61  ;;  %10555 = vmatpush1.bf16.msra.mxu1 %v12694_v2 }
 0x6a1   :  { %10515 = vmatprep.subr.bf16.mxu0 %v12699_v30  ;;  %10556 = vmatprep.subr.bf16.mxu1 %v12702_v46 }
 0x6a2   :  { %10545 = vmatprep.mubr.bf16.mxu0 %v12765_v12  ;;  %10586 = vmatprep.mubr.bf16.mxu1 %v12765_v12  ;;  %v12714_v12 = vld [vmem:[%s15295_s7 + $0x86c] ss:$16 sps:$4 sm:$0xff]  }
 0x6a4   :  { %10516 = vmatpush1.bf16.msra.mxu0 %v12697_v34  ;;  %10557 = vmatpush1.bf16.msra.mxu1 %v12700_v14 }
 0x6a5   :  { %10517 = vmatprep.subr.bf16.mxu0 %v12705_v3  ;;  %10558 = vmatprep.subr.bf16.mxu1 %v12708_v52 }
 0x6a8   :  { %10518 = vmatpush1.bf16.msra.mxu0 %v12703_v9  ;;  %10559 = vmatpush1.bf16.msra.mxu1 %v12706_v1 }
 0x6a9   :  { %10519 = vmatprep.subr.bf16.mxu0 %v12711_v29  ;;  %10560 = vmatprep.subr.bf16.mxu1 %v12714_v12 }
 0x6ac   :  { %10520 = vmatpush1.bf16.msra.mxu0 %v12709_v24  ;;  %10561 = vmatpush1.bf16.msra.mxu1 %v12712_v10 }
 0x6ad   :  { %10521 = vmatprep.subr.bf16.mxu0 %v12717_v45  ;;  %10562 = vmatprep.subr.bf16.mxu1 %v12720_v33 }
 0x6b0   :  { %10522 = vmatpush1.bf16.msra.mxu0 %v12715_v7  ;;  %10563 = vmatpush1.bf16.msra.mxu1 %v12718_v6 }
 0x6b1   :  { %10523 = vmatprep.subr.bf16.mxu0 %v12723_v28  ;;  %10564 = vmatprep.subr.bf16.mxu1 %v12726_v53 }
 0x6b2   :  { %v8415_v13 = vpop.f32.mrb[72].mxu0  ;;  %v8456_v19 = vpop.f32.mrb[20].mxu1 }
 0x6b3   :  { %v8416_v4 = vadd.f32 %v8415_v13, %v15142_v49  ;;  %v8457_v8 = vadd.f32 %v8456_v19, %v15144_v50  ;;  %v8417_v54 = vpop.f32.mrb[73].mxu0  ;;  %v8458_v16 = vpop.f32.mrb[21].mxu1  ;;  %v10320_v49 = vpack.c.bf16 %v10318_v37, %v10318_v37 }
 0x6b4   :  { %v8418_v58 = vadd.f32 %v8417_v54, %v15146_v35  ;;  %v8459_v44 = vadd.f32 %v8458_v16, %v15148_v17  ;;  %v8419_v51 = vpop.f32.mrb[74].mxu0  ;;  %v8460_v41 = vpop.f32.mrb[22].mxu1  ;;  %10524 = vmatpush1.bf16.msra.mxu0 %v12721_v5  ;;  %10565 = vmatpush1.bf16.msra.mxu1 %v12724_v59 }
 0x6b5   :  { %v8420_v60 = vpop.f32.mrb[75].mxu0  ;;  %v8461_v22 = vpop.f32.mrb[23].mxu1  ;;  %10525 = vmatprep.subr.bf16.mxu0 %v12729_v43  ;;  %10566 = vmatprep.subr.bf16.mxu1 %v12732_v63 }
 0x6b8   :  { %10526 = vmatpush1.bf16.msra.mxu0 %v12727_v57  ;;  %10567 = vmatpush1.bf16.msra.mxu1 %v12730_v0 }
 0x6b9   :  { %10527 = vmatprep.subr.bf16.mxu0 %v12735_v48  ;;  %10568 = vmatprep.subr.bf16.mxu1 %v12738_v40 }
 0x6bc   :  { %10528 = vmatpush1.bf16.msra.mxu0 %v12733_v18  ;;  %10569 = vmatpush1.bf16.msra.mxu1 %v12736_v47 }
 0x6bf   :  { %10546 = vmatmul.mubr.bf16.vlgmr.msra.gmra.mrb[100].mxu0 %v10320_v49  ;;  %10587 = vmatmul.mubr.bf16.vlgmr.msra.gmra.mrb[48].mxu1 %v10320_v49 }
 0x6d2   :  { %v8716_v50 = vpop.f32.mrb[76].mxu0  ;;  %v8757_v35 = vpop.f32.mrb[24].mxu1 }
 0x6d3   :  { %v8764_v17 = vadd.f32 %v8716_v50, %v8416_v4  ;;  %v8766_v55 = vadd.f32 %v8757_v35, %v8457_v8  ;;  %v8718_v26 = vpop.f32.mrb[77].mxu0  ;;  %v8759_v31 = vpop.f32.mrb[25].mxu1 }
 0x6d4   :  { %v8765_v42 = vadd.f32 %v8718_v26, %v8418_v58  ;;  %v8767_v21 = vadd.f32 %v8759_v31, %v8459_v44  ;;  %v8720_v25 = vpop.f32.mrb[78].mxu0  ;;  %v8761_v23 = vpop.f32.mrb[26].mxu1 }
 0x6d5   :  { %v8721_v39 = vpop.f32.mrb[79].mxu0  ;;  %v8762_v27 = vpop.f32.mrb[27].mxu1  ;;  %v15315_v23 = vld [vmem:[#allocation5_spill] sm:$0xff] }
 0x6d6   :  { %v10611_v39 = vsub.s32 2, %v15315_v23  ;;  %v10599_v27 = vld [vmem:[%s15297_s8] sm:$0xf] }
 0x6f2   :  { %v9021_v36 = vpop.f32.mrb[80].mxu0  ;;  %v9062_v11 = vpop.f32.mrb[28].mxu1 }
 0x6f3   :  { %v9069_v56 = vadd.f32 %v9021_v36, %v8764_v17  ;;  %v9071_v38 = vadd.f32 %v9062_v11, %v8766_v55  ;;  %v9023_v61 = vpop.f32.mrb[81].mxu0  ;;  %v9064_v2 = vpop.f32.mrb[29].mxu1  ;;  %v10607_v36 = vsub.s32 1, %v15315_v23  ;;  %v10615_v11 = vsub.s32 3, %v15315_v23 }
 0x6f4   :  { %v9070_v32 = vadd.f32 %v9023_v61, %v8765_v42  ;;  %v9072_v30 = vadd.f32 %v9064_v2, %v8767_v21  ;;  %v9025_v46 = vpop.f32.mrb[82].mxu0  ;;  %v9066_v34 = vpop.f32.mrb[30].mxu1 }
 0x6f5   :  { %v9026_v14 = vpop.f32.mrb[83].mxu0  ;;  %v9067_v3 = vpop.f32.mrb[31].mxu1 }
 0x712   :  { %v9326_v52 = vpop.f32.mrb[84].mxu0  ;;  %v9367_v9 = vpop.f32.mrb[32].mxu1 }
 0x713   :  { %v9374_v1 = vadd.f32 %v9326_v52, %v9069_v56  ;;  %v9376_v29 = vadd.f32 %v9367_v9, %v9071_v38  ;;  %v9328_v12 = vpop.f32.mrb[85].mxu0  ;;  %v9369_v24 = vpop.f32.mrb[33].mxu1  ;;  %v10604_v56 = vrot.slane %v10599_v27, %v13058_v62  ;;  %v10612_v38 = vrot.slane %v10599_v27, %v10611_v39 }
 0x714   :  { %v9375_v10 = vadd.f32 %v9328_v12, %v9070_v32  ;;  %v9377_v45 = vadd.f32 %v9369_v24, %v9072_v30  ;;  %v9330_v33 = vpop.f32.mrb[86].mxu0  ;;  %v9371_v7 = vpop.f32.mrb[34].mxu1  ;;  %v10608_v32 = vrot.slane %v10599_v27, %v10607_v36  ;;  %v10616_v30 = vrot.slane %v10599_v27, %v10615_v11 }
 0x715   :  { %v9331_v6 = vpop.f32.mrb[87].mxu0  ;;  %v9372_v28 = vpop.f32.mrb[35].mxu1 }
 0x732   :  { %v9631_v53 = vpop.f32.mrb[88].mxu0  ;;  %v9672_v5 = vpop.f32.mrb[36].mxu1 }
 0x733   :  { %v9679_v59 = vadd.f32 %v9631_v53, %v9374_v1  ;;  %v9681_v20 = vadd.f32 %v9672_v5, %v9376_v29  ;;  %v9633_v43 = vpop.f32.mrb[89].mxu0  ;;  %v9674_v63 = vpop.f32.mrb[37].mxu1 }
 0x734   :  { %v9680_v15 = vadd.f32 %v9633_v43, %v9375_v10  ;;  %v9682_v13 = vadd.f32 %v9674_v63, %v9377_v45  ;;  %v9635_v19 = vpop.f32.mrb[90].mxu0  ;;  %v9676_v4 = vpop.f32.mrb[38].mxu1 }
 0x735   :  { %v9636_v8 = vpop.f32.mrb[91].mxu0  ;;  %v9677_v54 = vpop.f32.mrb[39].mxu1 }
 0x752   :  { %v9937_v16 = vpop.f32.mrb[92].mxu0  ;;  %v9978_v58 = vpop.f32.mrb[40].mxu1 }
 0x753   :  { %v9985_v44 = vadd.f32 %v9937_v16, %v9679_v59  ;;  %v9987_v51 = vadd.f32 %v9978_v58, %v9681_v20  ;;  %v9939_v41 = vpop.f32.mrb[93].mxu0  ;;  %v9980_v57 = vpop.f32.mrb[41].mxu1 }
 0x754   :  { %v9986_v0 = vadd.f32 %v9939_v41, %v9680_v15  ;;  %v9988_v60 = vadd.f32 %v9980_v57, %v9682_v13  ;;  %v9941_v22 = vpop.f32.mrb[94].mxu0  ;;  %v9982_v48 = vpop.f32.mrb[42].mxu1 }
 0x755   :  { %v9942_v40 = vpop.f32.mrb[95].mxu0  ;;  %v9983_v18 = vpop.f32.mrb[43].mxu1 }
 0x772   :  { %v10242_v47 = vpop.f32.mrb[96].mxu0  ;;  %v10283_v37 = vpop.f32.mrb[44].mxu1 }
 0x773   :  { %v10290_v49 = vadd.f32 %v10242_v47, %v9985_v44  ;;  %v10292_v50 = vadd.f32 %v10283_v37, %v9987_v51  ;;  %v10244_v35 = vpop.f32.mrb[97].mxu0  ;;  %v10285_v17 = vpop.f32.mrb[45].mxu1 }
 0x774   :  { %v10291_v55 = vadd.f32 %v10244_v35, %v9986_v0  ;;  %v10293_v26 = vadd.f32 %v10285_v17, %v9988_v60  ;;  %v10246_v31 = vpop.f32.mrb[98].mxu0  ;;  %v10287_v42 = vpop.f32.mrb[46].mxu1 }
 0x775   :  { %v10247_v21 = vpop.f32.mrb[99].mxu0  ;;  %v10288_v25 = vpop.f32.mrb[47].mxu1 }
 0x792   :  { %v10547_v61 = vpop.f32.mrb[100].mxu0  ;;  %v10588_v2 = vpop.f32.mrb[48].mxu1 }
 0x793   :  { %v10595_v46 = vadd.f32 %v10547_v61, %v10290_v49  ;;  %v10597_v34 = vadd.f32 %v10588_v2, %v10292_v50  ;;  %v10549_v14 = vpop.f32.mrb[101].mxu0  ;;  %v10590_v3 = vpop.f32.mrb[49].mxu1 }
 0x794   :  { %v10596_v52 = vadd.f32 %v10549_v14, %v10291_v55  ;;  %v10598_v9 = vadd.f32 %v10590_v3, %v10293_v26  ;;  %v10551_v1 = vpop.f32.mrb[102].mxu0  ;;  %v10592_v29 = vpop.f32.mrb[50].mxu1 }
 0x795   :  { %v10621_v12 = vadd.f32 %v10604_v56, %v10595_v46  ;;  %v10623_v24 = vadd.f32 %v10612_v38, %v10597_v34  ;;  %v10552_v10 = vpop.f32.mrb[103].mxu0  ;;  %v10593_v45 = vpop.f32.mrb[51].mxu1 }
 0x796   :  { %v10622_v33 = vadd.f32 %v10608_v32, %v10596_v52  ;;  %v10624_v7 = vadd.f32 %v10616_v30, %v10598_v9 }
 0x797   :  { %v10625_v62 = vmax.f32 %v10621_v12, 0.0  ;;  %v10627_v6 = vmax.f32 %v10623_v24, 0.0 }
 0x798   :  { %v10626_v28 = vmax.f32 %v10622_v33, 0.0  ;;  %v10628_v53 = vmax.f32 %v10624_v7, 0.0 }
 0x799   :  { %10629 = vst [vmem:[%s15298_s9] sm:$0xff] %v10625_v62  ;;  %10631 = vst [vmem:[%s15298_s9 + $0x10] sm:$0xff] %v10627_v6 }
 0x79a   :  { %10630 = vst [vmem:[%s15298_s9 + $0x8] sm:$0xff] %v10626_v28  ;;  %10632 = vst [vmem:[%s15298_s9 + $0x18] sm:$0xff] %v10628_v53 }

</bundles_post_ra>
